<compile_context>
chip_gen: v7x
topology: tpu7x:2x2x1
jax: 0.10.0
libtpu: 0.0.40
codegen_flags: <defaults>
</compile_context>

<pallas_src>
import functools

import jax
import jax.numpy as jnp
from jax import lax
from jax.experimental import pallas as pl
from jax.experimental.pallas import tpu as pltpu

K = 5
FEATURE_DIM = 32
HIDDEN1 = 8
HIDDEN2 = 128
OUT_DIM = K
NUM_HEADS = 2  # head 0 = mean readout, head 1 = log_std readout

KF = K * FEATURE_DIM                  # 160
KH1 = K * HIDDEN1                     # 40
H1T = NUM_HEADS * KH1                 # 80
HH = NUM_HEADS * HIDDEN2              # 256 (fused hidden state width)
G = 4 * HH                            # 1024 (fused gate width)


# ------------------------------ fused kernel ------------------------------- #

def _policy_net_kernel(x_ref, noise_ref, w1_ref, wihhh_ref, bl_ref, w2_ref,
                       out_ref, *, B, S):
    """Whole PolicyNet forward (both heads fused) in one gridless kernel.

    x_ref:      (S*B, K*F)  f32, rows (s,b)-major, cols (k,f)-major
    noise_ref:  (B, OUT_DIM) f32
    w1_ref:     (K*F + 1, 2*K*H1) f32   rows [0:K*F]=block-diag W1, last row = b1
    wihhh_ref:  (2*K*H1 + 2*H2, 4*2*H2) bf16   rows [0:80]=W_ih_bd, [80:336]=W_hh_bd
    bl_ref:     (1, 4*2*H2) f32          fused LSTM bias (b_ih + b_hh)
    w2_ref:     (2*H2 + 1, 2*OUT_DIM) f32  rows [0:256]=block-diag W2, last row = b2
    out_ref:    (3, B, OUT_DIM) f32      [mean, std, action]
    """
    x2d = x_ref[...]                                          # (S*B, KF)

    # ---- fc1 for both heads & all k in ONE matmul, then ReLU ---------------
    w1 = w1_ref[0:KF, :]                                      # (160, 80)
    b1 = w1_ref[KF:KF + 1, :]                                 # (1, 80)
    h1 = jnp.maximum(
        jnp.dot(x2d, w1, preferred_element_type=jnp.float32) + b1, 0.0
    )                                                         # (S*B, 80)

    # ---- LSTM input projection for ALL timesteps, both heads, one matmul ---
    wih = wihhh_ref[0:H1T, :]                                 # (80, 1024) bf16
    whh = wihhh_ref[H1T:H1T + HH, :]                          # (256, 1024) bf16
    xw = (jnp.dot(h1.astype(jnp.bfloat16), wih,
                  preferred_element_type=jnp.float32)
          + bl_ref[...])                                      # (S*B, 1024)

    # ---- fused 2-head recurrence (fully unrolled; S small & static) --------
    def lstm_cell(gates, cs):
        # fused gate layout: [i0,i1 | f0,f1 | o0,o1 | g0,g1], each block HIDDEN2
        sig = jax.nn.sigmoid(gates[:, 0:3 * HH])
        g_g = jnp.tanh(gates[:, 3 * HH:4 * HH])
        i_g = sig[:, 0:HH]
        f_g = sig[:, HH:2 * HH]
        o_g = sig[:, 2 * HH:3 * HH]
        cs = f_g * cs + i_g * g_g
        hs = o_g * jnp.tanh(cs)
        return hs, cs

    cs = jnp.zeros((B, HH), jnp.float32)
    # t = 0: hs is all zeros -> skip the first W_hh matmul entirely.
    hs, cs = lstm_cell(xw[0:B, :], cs)
    for t in range(1, S):
        gates = xw[t * B:(t + 1) * B, :] + jnp.dot(
            hs.astype(jnp.bfloat16), whh, preferred_element_type=jnp.float32)
        hs, cs = lstm_cell(gates, cs)

    # ---- fc2 for both heads in ONE matmul ----------------------------------
    w2 = w2_ref[0:HH, :]                                      # (256, 10)
    b2 = w2_ref[HH:HH + 1, :]                                 # (1, 10)
    out2 = jnp.dot(hs, w2, preferred_element_type=jnp.float32) + b2   # (B, 10)

    mean = out2[:, 0:OUT_DIM]
    log_std = jnp.clip(out2[:, OUT_DIM:2 * OUT_DIM], -20.0, 2.0)
    std = jnp.exp(log_std)
    action = mean + std * noise_ref[...]

    # single packed output -> one writeback DMA
    out_ref[0] = mean
    out_ref[1] = std
    out_ref[2] = action


# -------------------------------- wrapper ----------------------------------- #

def policy_net(x, packed, noise):
    """x: (B, S, K, F) f32 -> (mean, std, action), each (B, K)."""
    B, S, Kk, F = x.shape
    # (B,S,K,F) -> (S,B,K,F) -> (S*B, K*F): time-major rows, (k,f)-major cols.
    x2d = x.transpose(1, 0, 2, 3).reshape(S * B, Kk * F)

    vmem = functools.partial(pl.BlockSpec, memory_space=pltpu.MemorySpace.VMEM)
    out = pl.pallas_call(
        functools.partial(_policy_net_kernel, B=B, S=S),
        out_shape=jax.ShapeDtypeStruct((3, B, OUT_DIM), jnp.float32),
        in_specs=[vmem()] * 6,
        out_specs=vmem(),
    )(x2d, noise,
      packed["w1_pack"], packed["wih_whh"], packed["b_lstm"], packed["w2_pack"])
    return out[0], out[1], out[2]


# ----------------------------- parameter init -------------------------------- #

def init_policy_params(key):
    """Master (f32, per-head, PyTorch-like) parameters."""
    ks = jax.random.split(key, 8)

    def u(kk, shape, fan_in):
        bound = 1.0 / float(fan_in) ** 0.5
        return jax.random.uniform(kk, shape, jnp.float32, -bound, bound)

    F, H1, H2 = FEATURE_DIM, HIDDEN1, HIDDEN2
    return {
        "w1":   u(ks[0], (NUM_HEADS, F, H1), F),
        "b1":   u(ks[1], (NUM_HEADS, H1), F),
        # gate column order (i, f, g, o) like PyTorch; rows are (k, H1)-major
        "w_ih": u(ks[2], (NUM_HEADS, KH1, 4 * H2), H2),
        "w_hh": u(ks[3], (NUM_HEADS, H2, 4 * H2), H2),
        "b_ih": u(ks[4], (NUM_HEADS, 4 * H2), H2),
        "b_hh": u(ks[5], (NUM_HEADS, 4 * H2), H2),
        "w2":   u(ks[6], (NUM_HEADS, H2, OUT_DIM), H2),
        "b2":   u(ks[7], (NUM_HEADS, OUT_DIM), H2),
    }


def pack_params(p):
    """Host-side block-diagonal / gate-interleaved packing for the fused kernel."""
    F, H1, H2 = FEATURE_DIM, HIDDEN1, HIDDEN2

    # fc1 block-diagonal + bias row -> (K*F + 1, 2*K*H1)
    w1_bd = jnp.zeros((KF, H1T), jnp.float32)
    b1_bd = jnp.zeros((1, H1T), jnp.float32)
    for h in range(NUM_HEADS):
        for k in range(K):
            c0 = h * KH1 + k * H1
            w1_bd = w1_bd.at[k * F:(k + 1) * F, c0:c0 + H1].set(p["w1"][h])
            b1_bd = b1_bd.at[0, c0:c0 + H1].set(p["b1"][h])
    w1_pack = jnp.concatenate([w1_bd, b1_bd], axis=0)          # (161, 80)

    # gate re-order: per-head (i, f, g, o) -> fused [i0,i1 | f0,f1 | o0,o1 | g0,g1]
    src_gate = {"i": 0, "f": 1, "g": 2, "o": 3}
    dst_gate = {"i": 0, "f": 1, "o": 2, "g": 3}

    def remap_cols(w_h, h):
        out = jnp.zeros((w_h.shape[0], G), jnp.float32)
        for gname in ("i", "f", "o", "g"):
            s = src_gate[gname] * H2
            d = (dst_gate[gname] * NUM_HEADS + h) * H2
            out = out.at[:, d:d + H2].set(w_h[:, s:s + H2])
        return out

    wih_bd = jnp.zeros((H1T, G), jnp.float32)
    whh_bd = jnp.zeros((HH, G), jnp.float32)
    bl_bd = jnp.zeros((1, G), jnp.float32)
    for h in range(NUM_HEADS):
        wih_bd = wih_bd.at[h * KH1:(h + 1) * KH1, :].add(remap_cols(p["w_ih"][h], h))
        whh_bd = whh_bd.at[h * H2:(h + 1) * H2, :].add(remap_cols(p["w_hh"][h], h))
        bl_bd = bl_bd.at[:, :].add(
            remap_cols((p["b_ih"][h] + p["b_hh"][h])[None, :], h))
    # big weights stored bf16 (MXU-native on v5e/v6e/v7x); accumulation stays f32
    wih_whh = jnp.concatenate([wih_bd, whh_bd], axis=0).astype(jnp.bfloat16)  # (336, 1024)

    # fc2 block-diagonal + bias row -> (2*H2 + 1, 2*OUT_DIM)
    w2_bd = jnp.zeros((HH, NUM_HEADS * OUT_DIM), jnp.float32)
    b2_bd = jnp.zeros((1, NUM_HEADS * OUT_DIM), jnp.float32)
    for h in range(NUM_HEADS):
        w2_bd = w2_bd.at[h * H2:(h + 1) * H2,
                         h * OUT_DIM:(h + 1) * OUT_DIM].set(p["w2"][h])
        b2_bd = b2_bd.at[0, h * OUT_DIM:(h + 1) * OUT_DIM].set(p["b2"][h])
    w2_pack = jnp.concatenate([w2_bd, b2_bd], axis=0)          # (257, 10)

    return {"w1_pack": w1_pack, "wih_whh": wih_whh,
            "b_lstm": bl_bd, "w2_pack": w2_pack}


# -------------------------- pure-JAX reference ------------------------------- #

def _reference(x, params, noise):
    B, S, Kk, F = x.shape
    H = HIDDEN2
    hp = lax.Precision.HIGHEST
    outs = []
    for h in range(NUM_HEADS):
        h1 = jax.nn.relu(
            jnp.einsum("bskf,fc->bskc", x, params["w1"][h], precision=hp)
            + params["b1"][h])
        seq = h1.reshape(B, S, Kk * HIDDEN1)
        hs = jnp.zeros((B, H), jnp.float32)
        cs = jnp.zeros((B, H), jnp.float32)
        bias = params["b_ih"][h] + params["b_hh"][h]
        for t in range(S):
            gates = (jnp.dot(seq[:, t, :], params["w_ih"][h], precision=hp)
                     + jnp.dot(hs, params["w_hh"][h], precision=hp) + bias)
            i_g = jax.nn.sigmoid(gates[:, 0 * H:1 * H])
            f_g = jax.nn.sigmoid(gates[:, 1 * H:2 * H])
            g_g = jnp.tanh(gates[:, 2 * H:3 * H])
            o_g = jax.nn.sigmoid(gates[:, 3 * H:4 * H])
            cs = f_g * cs + i_g * g_g
            hs = o_g * jnp.tanh(cs)
        outs.append(jnp.dot(hs, params["w2"][h], precision=hp) + params["b2"][h])
    mean = outs[0]
    std = jnp.exp(jnp.clip(outs[1], -20.0, 2.0))
    return mean, std, mean + std * noise


# ---------------------------------- main ------------------------------------- #

if __name__ == "__main__":
    key = jax.random.PRNGKey(0)
    kx, kn, kp = jax.random.split(key, 3)

    B, S = 2, 8
    x = jax.random.normal(kx, (B, S, K, FEATURE_DIM), jnp.float32)
    noise = jax.random.normal(kn, (B, OUT_DIM), jnp.float32)
    params = init_policy_params(kp)
    packed = pack_params(params)

    mean, std, action = jax.jit(policy_net)(x, packed, noise)
    jax.block_until_ready((mean, std, action))

    assert mean.shape == (B, K) and std.shape == (B, K) and action.shape == (B, K)
    assert bool(jnp.all(std > 0.0))

    r_mean, r_std, r_action = _reference(x, params, noise)
    # bf16 storage of the large LSTM weights -> slightly looser tolerance.
    assert bool(jnp.allclose(mean, r_mean, rtol=1e-2, atol=1e-2))
    assert bool(jnp.allclose(std, r_std, rtol=1e-2, atol=1e-2))
    assert bool(jnp.allclose(action, r_action, rtol=1e-2, atol=1e-2))

    print("KERNEL_OK")
</pallas_src>

<mosaic_0001>
module attributes {stable_mosaic.version = 11 : i64} {
  func.func @_policy_net_kernel(%arg0: memref<16x160xf32, #tpu.memory_space<vmem>>, %arg1: memref<2x5xf32, #tpu.memory_space<vmem>>, %arg2: memref<161x80xf32, #tpu.memory_space<vmem>>, %arg3: memref<336x1024xbf16, #tpu.memory_space<vmem>>, %arg4: memref<1x1024xf32, #tpu.memory_space<vmem>>, %arg5: memref<257x10xf32, #tpu.memory_space<vmem>>, %arg6: memref<3x2x5xf32, #tpu.memory_space<vmem>>) attributes {dimension_semantics = [], scalar_prefetch = 0 : i64, scratch_operands = 0 : i64, tpu.core_type = #tpu.core_type<tc>} {
    %c0 = arith.constant 0 : index
    %c0_0 = arith.constant 0 : index
    %0 = vector.load %arg0[%c0, %c0_0] : memref<16x160xf32, #tpu.memory_space<vmem>>, vector<16x160xf32>
    %c0_1 = arith.constant 0 : index
    %c0_2 = arith.constant 0 : index
    %1 = vector.load %arg2[%c0_1, %c0_2] : memref<161x80xf32, #tpu.memory_space<vmem>>, vector<160x80xf32>
    %c160 = arith.constant 160 : index
    %c0_3 = arith.constant 0 : index
    %2 = vector.load %arg2[%c160, %c0_3] : memref<161x80xf32, #tpu.memory_space<vmem>>, vector<1x80xf32>
    %cst = arith.constant dense<0.000000e+00> : vector<16x80xf32>
    %3 = tpu.matmul %0, %1, %cst {dimension_numbers = #tpu.dot_dimension_numbers<[1], [0], [0], [1], [0, 0, 1, 1], [], []>} : vector<16x160xf32>, vector<160x80xf32>, vector<16x80xf32> -> vector<16x80xf32>
    %4 = vector.broadcast %2 : vector<1x80xf32> to vector<16x80xf32>
    %5 = arith.addf %3, %4 : vector<16x80xf32>
    %cst_4 = arith.constant 0.000000e+00 : f32
    %6 = vector.broadcast %cst_4 : f32 to vector<16x80xf32>
    %7 = arith.maximumf %5, %6 : vector<16x80xf32>
    %c0_5 = arith.constant 0 : index
    %c0_6 = arith.constant 0 : index
    %8 = vector.load %arg3[%c0_5, %c0_6] : memref<336x1024xbf16, #tpu.memory_space<vmem>>, vector<80x1024xbf16>
    %c80 = arith.constant 80 : index
    %c0_7 = arith.constant 0 : index
    %9 = vector.load %arg3[%c80, %c0_7] : memref<336x1024xbf16, #tpu.memory_space<vmem>>, vector<256x1024xbf16>
    %10 = arith.truncf %7 : vector<16x80xf32> to vector<16x80xbf16>
    %cst_8 = arith.constant dense<0.000000e+00> : vector<16x1024xf32>
    %11 = tpu.matmul %10, %8, %cst_8 {dimension_numbers = #tpu.dot_dimension_numbers<[1], [0], [0], [1], [0, 0, 1, 1], [], []>} : vector<16x80xbf16>, vector<80x1024xbf16>, vector<16x1024xf32> -> vector<16x1024xf32>
    %c0_9 = arith.constant 0 : index
    %c0_10 = arith.constant 0 : index
    %12 = vector.load %arg4[%c0_9, %c0_10] : memref<1x1024xf32, #tpu.memory_space<vmem>>, vector<1x1024xf32>
    %13 = vector.broadcast %12 : vector<1x1024xf32> to vector<16x1024xf32>
    %14 = arith.addf %11, %13 : vector<16x1024xf32>
    %cst_11 = arith.constant 0.000000e+00 : f32
    %15 = vector.broadcast %cst_11 : f32 to vector<2x256xf32>
    %16 = vector.extract_strided_slice %14 {offsets = [0, 0], sizes = [2, 1024], strides = [1, 1]} : vector<16x1024xf32> to vector<2x1024xf32>
    %17 = vector.extract_strided_slice %16 {offsets = [0, 0], sizes = [2, 768], strides = [1, 1]} : vector<2x1024xf32> to vector<2x768xf32>
    %18 = arith.negf %17 : vector<2x768xf32>
    %19 = math.exp %18 : vector<2x768xf32>
    %cst_12 = arith.constant 1.000000e+00 : f32
    %20 = vector.broadcast %cst_12 : f32 to vector<2x768xf32>
    %21 = arith.addf %20, %19 : vector<2x768xf32>
    %22 = arith.divf %20, %21 : vector<2x768xf32>
    %23 = vector.extract_strided_slice %16 {offsets = [0, 768], sizes = [2, 256], strides = [1, 1]} : vector<2x1024xf32> to vector<2x256xf32>
    %24 = math.tanh %23 : vector<2x256xf32>
    %25 = vector.extract_strided_slice %22 {offsets = [0, 0], sizes = [2, 256], strides = [1, 1]} : vector<2x768xf32> to vector<2x256xf32>
    %26 = vector.extract_strided_slice %22 {offsets = [0, 256], sizes = [2, 256], strides = [1, 1]} : vector<2x768xf32> to vector<2x256xf32>
    %27 = vector.extract_strided_slice %22 {offsets = [0, 512], sizes = [2, 256], strides = [1, 1]} : vector<2x768xf32> to vector<2x256xf32>
    %28 = arith.mulf %26, %15 : vector<2x256xf32>
    %29 = arith.mulf %25, %24 : vector<2x256xf32>
    %30 = arith.addf %28, %29 : vector<2x256xf32>
    %31 = math.tanh %30 : vector<2x256xf32>
    %32 = arith.mulf %27, %31 : vector<2x256xf32>
    %33 = vector.extract_strided_slice %14 {offsets = [2, 0], sizes = [2, 1024], strides = [1, 1]} : vector<16x1024xf32> to vector<2x1024xf32>
    %34 = arith.truncf %32 : vector<2x256xf32> to vector<2x256xbf16>
    %cst_13 = arith.constant dense<0.000000e+00> : vector<2x1024xf32>
    %35 = tpu.matmul %34, %9, %cst_13 {dimension_numbers = #tpu.dot_dimension_numbers<[1], [0], [0], [1], [0, 0, 1, 1], [], []>} : vector<2x256xbf16>, vector<256x1024xbf16>, vector<2x1024xf32> -> vector<2x1024xf32>
    %36 = arith.addf %33, %35 : vector<2x1024xf32>
    %37 = vector.extract_strided_slice %36 {offsets = [0, 0], sizes = [2, 768], strides = [1, 1]} : vector<2x1024xf32> to vector<2x768xf32>
    %38 = arith.negf %37 : vector<2x768xf32>
    %39 = math.exp %38 : vector<2x768xf32>
    %cst_14 = arith.constant 1.000000e+00 : f32
    %40 = vector.broadcast %cst_14 : f32 to vector<2x768xf32>
    %41 = arith.addf %40, %39 : vector<2x768xf32>
    %42 = arith.divf %40, %41 : vector<2x768xf32>
    %43 = vector.extract_strided_slice %36 {offsets = [0, 768], sizes = [2, 256], strides = [1, 1]} : vector<2x1024xf32> to vector<2x256xf32>
    %44 = math.tanh %43 : vector<2x256xf32>
    %45 = vector.extract_strided_slice %42 {offsets = [0, 0], sizes = [2, 256], strides = [1, 1]} : vector<2x768xf32> to vector<2x256xf32>
    %46 = vector.extract_strided_slice %42 {offsets = [0, 256], sizes = [2, 256], strides = [1, 1]} : vector<2x768xf32> to vector<2x256xf32>
    %47 = vector.extract_strided_slice %42 {offsets = [0, 512], sizes = [2, 256], strides = [1, 1]} : vector<2x768xf32> to vector<2x256xf32>
    %48 = arith.mulf %46, %30 : vector<2x256xf32>
    %49 = arith.mulf %45, %44 : vector<2x256xf32>
    %50 = arith.addf %48, %49 : vector<2x256xf32>
    %51 = math.tanh %50 : vector<2x256xf32>
    %52 = arith.mulf %47, %51 : vector<2x256xf32>
    %53 = vector.extract_strided_slice %14 {offsets = [4, 0], sizes = [2, 1024], strides = [1, 1]} : vector<16x1024xf32> to vector<2x1024xf32>
    %54 = arith.truncf %52 : vector<2x256xf32> to vector<2x256xbf16>
    %cst_15 = arith.constant dense<0.000000e+00> : vector<2x1024xf32>
    %55 = tpu.matmul %54, %9, %cst_15 {dimension_numbers = #tpu.dot_dimension_numbers<[1], [0], [0], [1], [0, 0, 1, 1], [], []>} : vector<2x256xbf16>, vector<256x1024xbf16>, vector<2x1024xf32> -> vector<2x1024xf32>
    %56 = arith.addf %53, %55 : vector<2x1024xf32>
    %57 = vector.extract_strided_slice %56 {offsets = [0, 0], sizes = [2, 768], strides = [1, 1]} : vector<2x1024xf32> to vector<2x768xf32>
    %58 = arith.negf %57 : vector<2x768xf32>
    %59 = math.exp %58 : vector<2x768xf32>
    %cst_16 = arith.constant 1.000000e+00 : f32
    %60 = vector.broadcast %cst_16 : f32 to vector<2x768xf32>
    %61 = arith.addf %60, %59 : vector<2x768xf32>
    %62 = arith.divf %60, %61 : vector<2x768xf32>
    %63 = vector.extract_strided_slice %56 {offsets = [0, 768], sizes = [2, 256], strides = [1, 1]} : vector<2x1024xf32> to vector<2x256xf32>
    %64 = math.tanh %63 : vector<2x256xf32>
    %65 = vector.extract_strided_slice %62 {offsets = [0, 0], sizes = [2, 256], strides = [1, 1]} : vector<2x768xf32> to vector<2x256xf32>
    %66 = vector.extract_strided_slice %62 {offsets = [0, 256], sizes = [2, 256], strides = [1, 1]} : vector<2x768xf32> to vector<2x256xf32>
    %67 = vector.extract_strided_slice %62 {offsets = [0, 512], sizes = [2, 256], strides = [1, 1]} : vector<2x768xf32> to vector<2x256xf32>
    %68 = arith.mulf %66, %50 : vector<2x256xf32>
    %69 = arith.mulf %65, %64 : vector<2x256xf32>
    %70 = arith.addf %68, %69 : vector<2x256xf32>
    %71 = math.tanh %70 : vector<2x256xf32>
    %72 = arith.mulf %67, %71 : vector<2x256xf32>
    %73 = vector.extract_strided_slice %14 {offsets = [6, 0], sizes = [2, 1024], strides = [1, 1]} : vector<16x1024xf32> to vector<2x1024xf32>
    %74 = arith.truncf %72 : vector<2x256xf32> to vector<2x256xbf16>
    %cst_17 = arith.constant dense<0.000000e+00> : vector<2x1024xf32>
    %75 = tpu.matmul %74, %9, %cst_17 {dimension_numbers = #tpu.dot_dimension_numbers<[1], [0], [0], [1], [0, 0, 1, 1], [], []>} : vector<2x256xbf16>, vector<256x1024xbf16>, vector<2x1024xf32> -> vector<2x1024xf32>
    %76 = arith.addf %73, %75 : vector<2x1024xf32>
    %77 = vector.extract_strided_slice %76 {offsets = [0, 0], sizes = [2, 768], strides = [1, 1]} : vector<2x1024xf32> to vector<2x768xf32>
    %78 = arith.negf %77 : vector<2x768xf32>
    %79 = math.exp %78 : vector<2x768xf32>
    %cst_18 = arith.constant 1.000000e+00 : f32
    %80 = vector.broadcast %cst_18 : f32 to vector<2x768xf32>
    %81 = arith.addf %80, %79 : vector<2x768xf32>
    %82 = arith.divf %80, %81 : vector<2x768xf32>
    %83 = vector.extract_strided_slice %76 {offsets = [0, 768], sizes = [2, 256], strides = [1, 1]} : vector<2x1024xf32> to vector<2x256xf32>
    %84 = math.tanh %83 : vector<2x256xf32>
    %85 = vector.extract_strided_slice %82 {offsets = [0, 0], sizes = [2, 256], strides = [1, 1]} : vector<2x768xf32> to vector<2x256xf32>
    %86 = vector.extract_strided_slice %82 {offsets = [0, 256], sizes = [2, 256], strides = [1, 1]} : vector<2x768xf32> to vector<2x256xf32>
    %87 = vector.extract_strided_slice %82 {offsets = [0, 512], sizes = [2, 256], strides = [1, 1]} : vector<2x768xf32> to vector<2x256xf32>
    %88 = arith.mulf %86, %70 : vector<2x256xf32>
    %89 = arith.mulf %85, %84 : vector<2x256xf32>
    %90 = arith.addf %88, %89 : vector<2x256xf32>
    %91 = math.tanh %90 : vector<2x256xf32>
    %92 = arith.mulf %87, %91 : vector<2x256xf32>
    %93 = vector.extract_strided_slice %14 {offsets = [8, 0], sizes = [2, 1024], strides = [1, 1]} : vector<16x1024xf32> to vector<2x1024xf32>
    %94 = arith.truncf %92 : vector<2x256xf32> to vector<2x256xbf16>
    %cst_19 = arith.constant dense<0.000000e+00> : vector<2x1024xf32>
    %95 = tpu.matmul %94, %9, %cst_19 {dimension_numbers = #tpu.dot_dimension_numbers<[1], [0], [0], [1], [0, 0, 1, 1], [], []>} : vector<2x256xbf16>, vector<256x1024xbf16>, vector<2x1024xf32> -> vector<2x1024xf32>
    %96 = arith.addf %93, %95 : vector<2x1024xf32>
    %97 = vector.extract_strided_slice %96 {offsets = [0, 0], sizes = [2, 768], strides = [1, 1]} : vector<2x1024xf32> to vector<2x768xf32>
    %98 = arith.negf %97 : vector<2x768xf32>
    %99 = math.exp %98 : vector<2x768xf32>
    %cst_20 = arith.constant 1.000000e+00 : f32
    %100 = vector.broadcast %cst_20 : f32 to vector<2x768xf32>
    %101 = arith.addf %100, %99 : vector<2x768xf32>
    %102 = arith.divf %100, %101 : vector<2x768xf32>
    %103 = vector.extract_strided_slice %96 {offsets = [0, 768], sizes = [2, 256], strides = [1, 1]} : vector<2x1024xf32> to vector<2x256xf32>
    %104 = math.tanh %103 : vector<2x256xf32>
    %105 = vector.extract_strided_slice %102 {offsets = [0, 0], sizes = [2, 256], strides = [1, 1]} : vector<2x768xf32> to vector<2x256xf32>
    %106 = vector.extract_strided_slice %102 {offsets = [0, 256], sizes = [2, 256], strides = [1, 1]} : vector<2x768xf32> to vector<2x256xf32>
    %107 = vector.extract_strided_slice %102 {offsets = [0, 512], sizes = [2, 256], strides = [1, 1]} : vector<2x768xf32> to vector<2x256xf32>
    %108 = arith.mulf %106, %90 : vector<2x256xf32>
    %109 = arith.mulf %105, %104 : vector<2x256xf32>
    %110 = arith.addf %108, %109 : vector<2x256xf32>
    %111 = math.tanh %110 : vector<2x256xf32>
    %112 = arith.mulf %107, %111 : vector<2x256xf32>
    %113 = vector.extract_strided_slice %14 {offsets = [10, 0], sizes = [2, 1024], strides = [1, 1]} : vector<16x1024xf32> to vector<2x1024xf32>
    %114 = arith.truncf %112 : vector<2x256xf32> to vector<2x256xbf16>
    %cst_21 = arith.constant dense<0.000000e+00> : vector<2x1024xf32>
    %115 = tpu.matmul %114, %9, %cst_21 {dimension_numbers = #tpu.dot_dimension_numbers<[1], [0], [0], [1], [0, 0, 1, 1], [], []>} : vector<2x256xbf16>, vector<256x1024xbf16>, vector<2x1024xf32> -> vector<2x1024xf32>
    %116 = arith.addf %113, %115 : vector<2x1024xf32>
    %117 = vector.extract_strided_slice %116 {offsets = [0, 0], sizes = [2, 768], strides = [1, 1]} : vector<2x1024xf32> to vector<2x768xf32>
    %118 = arith.negf %117 : vector<2x768xf32>
    %119 = math.exp %118 : vector<2x768xf32>
    %cst_22 = arith.constant 1.000000e+00 : f32
    %120 = vector.broadcast %cst_22 : f32 to vector<2x768xf32>
    %121 = arith.addf %120, %119 : vector<2x768xf32>
    %122 = arith.divf %120, %121 : vector<2x768xf32>
    %123 = vector.extract_strided_slice %116 {offsets = [0, 768], sizes = [2, 256], strides = [1, 1]} : vector<2x1024xf32> to vector<2x256xf32>
    %124 = math.tanh %123 : vector<2x256xf32>
    %125 = vector.extract_strided_slice %122 {offsets = [0, 0], sizes = [2, 256], strides = [1, 1]} : vector<2x768xf32> to vector<2x256xf32>
    %126 = vector.extract_strided_slice %122 {offsets = [0, 256], sizes = [2, 256], strides = [1, 1]} : vector<2x768xf32> to vector<2x256xf32>
    %127 = vector.extract_strided_slice %122 {offsets = [0, 512], sizes = [2, 256], strides = [1, 1]} : vector<2x768xf32> to vector<2x256xf32>
    %128 = arith.mulf %126, %110 : vector<2x256xf32>
    %129 = arith.mulf %125, %124 : vector<2x256xf32>
    %130 = arith.addf %128, %129 : vector<2x256xf32>
    %131 = math.tanh %130 : vector<2x256xf32>
    %132 = arith.mulf %127, %131 : vector<2x256xf32>
    %133 = vector.extract_strided_slice %14 {offsets = [12, 0], sizes = [2, 1024], strides = [1, 1]} : vector<16x1024xf32> to vector<2x1024xf32>
    %134 = arith.truncf %132 : vector<2x256xf32> to vector<2x256xbf16>
    %cst_23 = arith.constant dense<0.000000e+00> : vector<2x1024xf32>
    %135 = tpu.matmul %134, %9, %cst_23 {dimension_numbers = #tpu.dot_dimension_numbers<[1], [0], [0], [1], [0, 0, 1, 1], [], []>} : vector<2x256xbf16>, vector<256x1024xbf16>, vector<2x1024xf32> -> vector<2x1024xf32>
    %136 = arith.addf %133, %135 : vector<2x1024xf32>
    %137 = vector.extract_strided_slice %136 {offsets = [0, 0], sizes = [2, 768], strides = [1, 1]} : vector<2x1024xf32> to vector<2x768xf32>
    %138 = arith.negf %137 : vector<2x768xf32>
    %139 = math.exp %138 : vector<2x768xf32>
    %cst_24 = arith.constant 1.000000e+00 : f32
    %140 = vector.broadcast %cst_24 : f32 to vector<2x768xf32>
    %141 = arith.addf %140, %139 : vector<2x768xf32>
    %142 = arith.divf %140, %141 : vector<2x768xf32>
    %143 = vector.extract_strided_slice %136 {offsets = [0, 768], sizes = [2, 256], strides = [1, 1]} : vector<2x1024xf32> to vector<2x256xf32>
    %144 = math.tanh %143 : vector<2x256xf32>
    %145 = vector.extract_strided_slice %142 {offsets = [0, 0], sizes = [2, 256], strides = [1, 1]} : vector<2x768xf32> to vector<2x256xf32>
    %146 = vector.extract_strided_slice %142 {offsets = [0, 256], sizes = [2, 256], strides = [1, 1]} : vector<2x768xf32> to vector<2x256xf32>
    %147 = vector.extract_strided_slice %142 {offsets = [0, 512], sizes = [2, 256], strides = [1, 1]} : vector<2x768xf32> to vector<2x256xf32>
    %148 = arith.mulf %146, %130 : vector<2x256xf32>
    %149 = arith.mulf %145, %144 : vector<2x256xf32>
    %150 = arith.addf %148, %149 : vector<2x256xf32>
    %151 = math.tanh %150 : vector<2x256xf32>
    %152 = arith.mulf %147, %151 : vector<2x256xf32>
    %153 = vector.extract_strided_slice %14 {offsets = [14, 0], sizes = [2, 1024], strides = [1, 1]} : vector<16x1024xf32> to vector<2x1024xf32>
    %154 = arith.truncf %152 : vector<2x256xf32> to vector<2x256xbf16>
    %cst_25 = arith.constant dense<0.000000e+00> : vector<2x1024xf32>
    %155 = tpu.matmul %154, %9, %cst_25 {dimension_numbers = #tpu.dot_dimension_numbers<[1], [0], [0], [1], [0, 0, 1, 1], [], []>} : vector<2x256xbf16>, vector<256x1024xbf16>, vector<2x1024xf32> -> vector<2x1024xf32>
    %156 = arith.addf %153, %155 : vector<2x1024xf32>
    %157 = vector.extract_strided_slice %156 {offsets = [0, 0], sizes = [2, 768], strides = [1, 1]} : vector<2x1024xf32> to vector<2x768xf32>
    %158 = arith.negf %157 : vector<2x768xf32>
    %159 = math.exp %158 : vector<2x768xf32>
    %cst_26 = arith.constant 1.000000e+00 : f32
    %160 = vector.broadcast %cst_26 : f32 to vector<2x768xf32>
    %161 = arith.addf %160, %159 : vector<2x768xf32>
    %162 = arith.divf %160, %161 : vector<2x768xf32>
    %163 = vector.extract_strided_slice %156 {offsets = [0, 768], sizes = [2, 256], strides = [1, 1]} : vector<2x1024xf32> to vector<2x256xf32>
    %164 = math.tanh %163 : vector<2x256xf32>
    %165 = vector.extract_strided_slice %162 {offsets = [0, 0], sizes = [2, 256], strides = [1, 1]} : vector<2x768xf32> to vector<2x256xf32>
    %166 = vector.extract_strided_slice %162 {offsets = [0, 256], sizes = [2, 256], strides = [1, 1]} : vector<2x768xf32> to vector<2x256xf32>
    %167 = vector.extract_strided_slice %162 {offsets = [0, 512], sizes = [2, 256], strides = [1, 1]} : vector<2x768xf32> to vector<2x256xf32>
    %168 = arith.mulf %166, %150 : vector<2x256xf32>
    %169 = arith.mulf %165, %164 : vector<2x256xf32>
    %170 = arith.addf %168, %169 : vector<2x256xf32>
    %171 = math.tanh %170 : vector<2x256xf32>
    %172 = arith.mulf %167, %171 : vector<2x256xf32>
    %c0_27 = arith.constant 0 : index
    %c0_28 = arith.constant 0 : index
    %173 = vector.load %arg5[%c0_27, %c0_28] : memref<257x10xf32, #tpu.memory_space<vmem>>, vector<256x10xf32>
    %c256 = arith.constant 256 : index
    %c0_29 = arith.constant 0 : index
    %174 = vector.load %arg5[%c256, %c0_29] : memref<257x10xf32, #tpu.memory_space<vmem>>, vector<1x10xf32>
    %cst_30 = arith.constant dense<0.000000e+00> : vector<2x10xf32>
    %175 = tpu.matmul %172, %173, %cst_30 {dimension_numbers = #tpu.dot_dimension_numbers<[1], [0], [0], [1], [0, 0, 1, 1], [], []>} : vector<2x256xf32>, vector<256x10xf32>, vector<2x10xf32> -> vector<2x10xf32>
    %176 = vector.broadcast %174 : vector<1x10xf32> to vector<2x10xf32>
    %177 = arith.addf %175, %176 : vector<2x10xf32>
    %178 = vector.extract_strided_slice %177 {offsets = [0, 0], sizes = [2, 5], strides = [1, 1]} : vector<2x10xf32> to vector<2x5xf32>
    %179 = vector.extract_strided_slice %177 {offsets = [0, 5], sizes = [2, 5], strides = [1, 1]} : vector<2x10xf32> to vector<2x5xf32>
    %cst_31 = arith.constant -2.000000e+01 : f32
    %cst_32 = arith.constant 2.000000e+00 : f32
    %180 = vector.broadcast %cst_31 : f32 to vector<2x5xf32>
    %181 = arith.maximumf %180, %179 : vector<2x5xf32>
    %182 = vector.broadcast %cst_32 : f32 to vector<2x5xf32>
    %183 = arith.minimumf %182, %181 : vector<2x5xf32>
    %184 = math.exp %183 : vector<2x5xf32>
    %c0_33 = arith.constant 0 : index
    %c0_34 = arith.constant 0 : index
    %185 = vector.load %arg1[%c0_33, %c0_34] : memref<2x5xf32, #tpu.memory_space<vmem>>, vector<2x5xf32>
    %186 = arith.mulf %184, %185 : vector<2x5xf32>
    %187 = arith.addf %178, %186 : vector<2x5xf32>
    %c0_35 = arith.constant 0 : index
    %c0_36 = arith.constant 0 : index
    %c0_37 = arith.constant 0 : index
    %188 = vector.load %arg6[%c0_35, %c0_36, %c0_37] : memref<3x2x5xf32, #tpu.memory_space<vmem>>, vector<1x2x5xf32>
    %189 = vector.shape_cast %188 : vector<1x2x5xf32> to vector<2x5xf32>
    %190 = vector.shape_cast %178 : vector<2x5xf32> to vector<1x2x5xf32>
    tpu.vector_store %arg6[%c0_35, %c0_36, %c0_37], %190 {strides = array<i32>} : memref<3x2x5xf32, #tpu.memory_space<vmem>>, vector<1x2x5xf32>,
    %c1 = arith.constant 1 : index
    %c0_38 = arith.constant 0 : index
    %c0_39 = arith.constant 0 : index
    %191 = vector.load %arg6[%c1, %c0_38, %c0_39] : memref<3x2x5xf32, #tpu.memory_space<vmem>>, vector<1x2x5xf32>
    %192 = vector.shape_cast %191 : vector<1x2x5xf32> to vector<2x5xf32>
    %193 = vector.shape_cast %184 : vector<2x5xf32> to vector<1x2x5xf32>
    tpu.vector_store %arg6[%c1, %c0_38, %c0_39], %193 {strides = array<i32>} : memref<3x2x5xf32, #tpu.memory_space<vmem>>, vector<1x2x5xf32>,
    %c2 = arith.constant 2 : index
    %c0_40 = arith.constant 0 : index
    %c0_41 = arith.constant 0 : index
    %194 = vector.load %arg6[%c2, %c0_40, %c0_41] : memref<3x2x5xf32, #tpu.memory_space<vmem>>, vector<1x2x5xf32>
    %195 = vector.shape_cast %194 : vector<1x2x5xf32> to vector<2x5xf32>
    %196 = vector.shape_cast %187 : vector<2x5xf32> to vector<1x2x5xf32>
    tpu.vector_store %arg6[%c2, %c0_40, %c0_41], %196 {strides = array<i32>} : memref<3x2x5xf32, #tpu.memory_space<vmem>>, vector<1x2x5xf32>,
    return
  }
}

</mosaic_0001>

<bundles_post_ra>
// kernel: policy_net.1
= control target key start
LH: loop header
LB: loop body
LE: loop exit
PB: predicated region body
PF: predicated region fallthrough
CT: control target
= control target key end

     0   :  { %11 = vsyncpa [#allocation3], 0  ;;  %s3951_s21 = smov [#allocation2]   ;;  %s5569_s0 = inlined_call_operand.vmem [shape: f32[16,160], index: 0, kind: input, shape index: {}]   ;;  %s5570_s1 = inlined_call_operand.vmem [shape: f32[2,5], index: 1, kind: input, shape index: {}]   ;;  %s5571_s2 = inlined_call_operand.vmem [shape: f32[161,80], index: 2, kind: input, shape index: {}]   ;;  %s5572_s3 = inlined_call_operand.hbm [shape: bf16[336,1024], index: 3, kind: input, shape index: {}]   ;;  %s5573_s4 = inlined_call_operand.vmem [shape: f32[1,1024], index: 4, kind: input, shape index: {}]   ;;  %s5574_s5 = inlined_call_operand.vmem [shape: f32[257,10], index: 5, kind: input, shape index: {}]   ;;  %s5575_s6 = inlined_call_operand.vmem [shape: f32[3,2,5], index: 6, kind: output, shape index: {}]  }
   0x1   :  { %s23_s22 = sshll.u32 %s3951_s21, 4  ;;  %s3927_s25 = scalar_lea.hbm %s5572_s3, 21504  ;;  %s24_s22 = int_to_ptr.vmem [resolvable:$true] %s23_s22 }
   0x2   :  { %p3928_p0 = scmp.ne.s32.totalorder %s5572_s3, %s3927_s25  ;;  %p3931_p1 = scmp.lt.u32.totalorder %s3927_s25, %s5572_s3 }
   0x4   :  { %p3933_p2 = pnand %p3931_p1, %p3928_p0 }
   0x6   :  { %3936 = shalt.err (!%p3933_p2)
}
   0x7   :  { %s3937_s30 = scalar_lea.vmem %s24_s22, 21504  ;;  %p3942_p4 = scmp.lt.s32.totalorder %s24_s22, %s24_s22 }
   0x8   :  { %p3938_p3 = scmp.ne.s32.totalorder %s24_s22, %s3937_s30  ;;  %p3943_p5 = scmp.lt.s32.totalorder %s3937_s30, %s3937_s30 }
   0xa   :  { %p3944_p6 = por %p3943_p5, %p3942_p4 }
   0xc   :  { %p3945_p7 = pnand %p3944_p6, %p3938_p3 }
   0xe   :  { %3948 = shalt.err (!%p3945_p7)
}
   0xf   :  { %s3952_s7 = smov 512   ;;  %s3953_s8 = smov 32  }
  0x10   :  { %29 = dma.hbm_to_vmem [thread:$0]  %s5572_s3, 21504, %s24_s22, [#allocation3], %s3952_s7, %s3952_s7, %s3953_s8  }
  0x11   :  { %3949 = dma.done.wait [#allocation3], 21504  }
  0x12   :  { %3950 = vsyncadd [#allocation3], 4294945792  ;;  %v3954_v0 = vmov 0.0|0.0   ;;  %v42_v1 = vld [vmem:[%s5571_s2] sm:$0xff]  ;;  %v43_v2 = vld [vmem:[%s5571_s2 + $0x8] sm:$0xff]  ;;  %vm67_vm0 = vcmask 261120  }
  0x13   :  { %3600 = vmatprep.subr.bf16.mxu0 %v3954_v0  ;;  %v44_v3 = vld [vmem:[%s5571_s2 + $0x10] sm:$0xff]  ;;  %v3601_v4 = vpack.c.bf16 %v43_v2, %v42_v1  ;;  %v45_v5 = vld [vmem:[%s5571_s2 + $0x18] sm:$0xff]  ;;  %v46_v7 = vld [vmem:[%s5571_s2 + $0x20] sm:$0xff]  ;;  %v3955_v59 = vmov 0   ;;  %vm562_vm1 = vcmask 654336   ;;  %s3956_s19 = smov 5  }
  0x14   :  { %v3604_v6 = vpack.c.bf16 %v45_v5, %v44_v3  ;;  %v47_v8 = vld [vmem:[%s5571_s2 + $0x28] sm:$0xff]  ;;  %v48_v11 = vld [vmem:[%s5571_s2 + $0x30] sm:$0xff]  ;;  %v49_v12 = vld [vmem:[%s5571_s2 + $0x38] sm:$0xff]  ;;  %598 = vmatprep.mubr.bf16.mxu1 %v3955_v59  ;;  %vm3324_vm2 = vcmask 33792   ;;  %s3957_s23 = smov 123  }
  0x15   :  { %3602 = vmatpush1.bf16.msra.mxu0 %v3601_v4  ;;  %v39_v9 = vld [vmem:[%s5569_s0 + $0x8] sm:$0xff]  ;;  %v3607_v10 = vpack.c.bf16 %v47_v8, %v46_v7  ;;  %v151_v13 = vld [vmem:[#allocation2] sm:$0xff]  ;;  %v3610_v22 = vpack.c.bf16 %v49_v12, %v48_v11  ;;  %v52_v28 = vld [vmem:[%s5571_s2 + $0x50] sm:$0xff] }
  0x16   :  { %3603 = vmatprep.subr.bf16.mxu0 %v3954_v0  ;;  %3340 = vmatprep.mubr.msk.f32.mxu0 %vm67_vm0, %v39_v9  ;;  %v155_v14 = vld [vmem:[#allocation2 + $0x20] sm:$0xff]  ;;  %v51_v24 = vld [vmem:[%s5571_s2 + $0x48] sm:$0xff]  ;;  %v53_v29 = vld [vmem:[%s5571_s2 + $0x58] sm:$0xff] }
  0x17   :  { %v159_v15 = vld [vmem:[#allocation2 + $0x40] sm:$0xff]  ;;  %v3343_v16 = vcombine.high %v151_v13, %v155_v14  ;;  %v3342_v17 = vcombine.low %v151_v13, %v155_v14  ;;  %v3616_v31 = vpack.c.bf16 %v53_v29, %v52_v28  ;;  %v55_v33 = vld [vmem:[%s5571_s2 + $0x68] sm:$0xff]  ;;  %v56_v35 = vld [vmem:[%s5571_s2 + $0x70] sm:$0xff] }
  0x18   :  { %v163_v18 = vld [vmem:[#allocation2 + $0x60] sm:$0xff]  ;;  %v57_v36 = vld [vmem:[%s5571_s2 + $0x78] sm:$0xff]  ;;  %v59_v39 = vld [vmem:[%s5571_s2 + $0x88] sm:$0xff] }
  0x19   :  { %3605 = vmatpush1.bf16.msra.mxu0 %v3604_v6  ;;  %v3351_v19 = vcombine.high %v159_v15, %v163_v18  ;;  %v167_v20 = vld [vmem:[#allocation2 + $0x80] sm:$0xff]  ;;  %566 = vmatprep.subr.bf16.mxu1 %v3343_v16  ;;  %v3350_v25 = vcombine.low %v159_v15, %v163_v18  ;;  %v3622_v37 = vpack.c.bf16 %v57_v36, %v56_v35  ;;  %v60_v41 = vld [vmem:[%s5571_s2 + $0x90] sm:$0xff]  ;;  %v61_v42 = vld [vmem:[%s5571_s2 + $0x98] sm:$0xff] }
  0x1a   :  { %3606 = vmatprep.subr.bf16.mxu0 %v3954_v0  ;;  %v171_v21 = vld [vmem:[#allocation2 + $0xa0] sm:$0xff]  ;;  %567 = vmatpush1.bf16.msra.mxu1 %v3342_v17  ;;  %v3628_v43 = vpack.c.bf16 %v61_v42, %v60_v41  ;;  %v41_v45 = vld [vmem:[%s5569_s0 + $0x18] sm:$0xff]  ;;  %v40_v46 = vld [vmem:[%s5569_s0 + $0x10] sm:$0xff] }
  0x1b   :  { %v50_v23 = vld [vmem:[%s5571_s2 + $0x40] sm:$0xff]  ;;  %568 = vmatprep.subr.bf16.mxu1 %v3351_v19  ;;  %v3359_v26 = vcombine.high %v167_v20, %v171_v21  ;;  %v3358_v30 = vcombine.low %v167_v20, %v171_v21  ;;  %v152_v55 = vld [vmem:[#allocation2 + $0x8] sm:$0xff]  ;;  %v153_v21 = vld [vmem:[#allocation2 + $0x10] sm:$0xff] }
  0x1c   :  { %v3613_v27 = vpack.c.bf16 %v51_v24, %v50_v23  ;;  %v54_v32 = vld [vmem:[%s5571_s2 + $0x60] sm:$0xff]  ;;  %v156_v56 = vld [vmem:[#allocation2 + $0x28] sm:$0xff]  ;;  %v169_v29 = vld [vmem:[#allocation2 + $0x90] sm:$0xff] }
  0x1d   :  { %3608 = vmatpush1.bf16.msra.mxu0 %v3607_v10  ;;  %v3619_v34 = vpack.c.bf16 %v55_v33, %v54_v32  ;;  %v58_v38 = vld [vmem:[%s5571_s2 + $0x80] sm:$0xff]  ;;  %v3345_v57 = vcombine.high %v152_v55, %v156_v56  ;;  %v3344_v58 = vcombine.low %v152_v55, %v156_v56  ;;  %v160_v3 = vld [vmem:[#allocation2 + $0x48] sm:$0xff]  ;;  %v177_v33 = vld [vmem:[#allocation2 + $0xd0] sm:$0xff] }
  0x1e   :  { %3609 = vmatprep.subr.bf16.mxu0 %v3954_v0  ;;  %569 = vmatpush1.bf16.msra.mxu1 %v3350_v25  ;;  %v3625_v40 = vpack.c.bf16 %v59_v39, %v58_v38  ;;  %v38_v44 = vld [vmem:[%s5569_s0] sm:$0xff]  ;;  %v164_v4 = vld [vmem:[#allocation2 + $0x68] sm:$0xff]  ;;  %v161_v25 = vld [vmem:[#allocation2 + $0x50] sm:$0xff] }
  0x1f   :  { %570 = vmatprep.subr.bf16.mxu1 %v3359_v26  ;;  %v175_v47 = vld [vmem:[#allocation2 + $0xc0] sm:$0xff]  ;;  %v3353_v8 = vcombine.high %v160_v3, %v164_v4  ;;  %v168_v9 = vld [vmem:[#allocation2 + $0x88] sm:$0xff]  ;;  %v3352_v11 = vcombine.low %v160_v3, %v164_v4  ;;  %v165_v26 = vld [vmem:[#allocation2 + $0x70] sm:$0xff] }
  0x20   :  { %v179_v48 = vld [vmem:[#allocation2 + $0xe0] sm:$0xff]  ;;  %v172_v10 = vld [vmem:[#allocation2 + $0xa8] sm:$0xff]  ;;  %v3355_v28 = vcombine.high %v161_v25, %v165_v26  ;;  %v189_v38 = vld [vmem:[#allocation2 + $0x130] sm:$0xff] }
  0x21   :  { %3611 = vmatpush1.bf16.msra.mxu0 %v3610_v22  ;;  %v3367_v49 = vcombine.high %v175_v47, %v179_v48  ;;  %v3366_v50 = vcombine.low %v175_v47, %v179_v48  ;;  %v183_v51 = vld [vmem:[#allocation2 + $0x100] sm:$0xff]  ;;  %v3361_v12 = vcombine.high %v168_v9, %v172_v10  ;;  %v176_v13 = vld [vmem:[#allocation2 + $0xc8] sm:$0xff]  ;;  %v3360_v15 = vcombine.low %v168_v9, %v172_v10  ;;  %v157_v22 = vld [vmem:[#allocation2 + $0x30] sm:$0xff] }
  0x22   :  { %3612 = vmatprep.subr.bf16.mxu0 %v3954_v0  ;;  %571 = vmatpush1.bf16.msra.mxu1 %v3358_v30  ;;  %v187_v52 = vld [vmem:[#allocation2 + $0x120] sm:$0xff]  ;;  %v180_v14 = vld [vmem:[#allocation2 + $0xe8] sm:$0xff]  ;;  %v3347_v24 = vcombine.high %v153_v21, %v157_v22  ;;  %v173_v30 = vld [vmem:[#allocation2 + $0xb0] sm:$0xff] }
  0x23   :  { %572 = vmatprep.subr.bf16.mxu1 %v3367_v49  ;;  %v3375_v53 = vcombine.high %v183_v51, %v187_v52  ;;  %v3374_v54 = vcombine.low %v183_v51, %v187_v52  ;;  %v3339_v60 = vld [vmem:[%s5571_s2 + $0xa0] ss:$0 sm:$0xff]  ;;  %v3369_v16 = vcombine.high %v176_v13, %v180_v14  ;;  %v184_v17 = vld [vmem:[#allocation2 + $0x108] sm:$0xff]  ;;  %v3368_v19 = vcombine.low %v176_v13, %v180_v14  ;;  %v154_v41 = vld [vmem:[#allocation2 + $0x18] sm:$0xff] }
  0x24   :  { %v188_v18 = vld [vmem:[#allocation2 + $0x128] sm:$0xff]  ;;  %v3363_v32 = vcombine.high %v169_v29, %v173_v30  ;;  %v3362_v35 = vcombine.low %v169_v29, %v173_v30  ;;  %v158_v42 = vld [vmem:[#allocation2 + $0x38] sm:$0xff]  ;;  %v207_v14 = vld [vmem:[#allocation2 + $0x1c0] sm:$0xff] }
  0x25   :  { %3614 = vmatpush1.bf16.msra.mxu0 %v3613_v27  ;;  %v3377_v20 = vcombine.high %v184_v17, %v188_v18  ;;  %v3376_v23 = vcombine.low %v184_v17, %v188_v18  ;;  %v3346_v27 = vcombine.low %v153_v21, %v157_v22  ;;  %v3348_v47 = vcombine.low %v154_v41, %v158_v42  ;;  %v170_v49 = vld [vmem:[#allocation2 + $0x98] sm:$0xff]  ;;  %v204_v10 = vld [vmem:[#allocation2 + $0x1a8] sm:$0xff]  ;;  %v215_v22 = vld [vmem:[#allocation2 + $0x200] sm:$0xff] }
  0x26   :  { %3615 = vmatprep.subr.bf16.mxu0 %v3954_v0  ;;  %573 = vmatpush1.bf16.msra.mxu1 %v3366_v50  ;;  %v174_v50 = vld [vmem:[#allocation2 + $0xb8] sm:$0xff]  ;;  %v212_v18 = vld [vmem:[#allocation2 + $0x1e8] sm:$0xff]  ;;  %v223_v30 = vld [vmem:[#allocation2 + $0x240] sm:$0xff] }
  0x27   :  { %574 = vmatprep.subr.bf16.mxu1 %v3375_v53  ;;  %v3365_v52 = vcombine.high %v170_v49, %v174_v50  ;;  %v178_v53 = vld [vmem:[#allocation2 + $0xd8] sm:$0xff]  ;;  %v3364_v55 = vcombine.low %v170_v49, %v174_v50  ;;  %v244_v50 = vld [vmem:[#allocation2 + $0x2e8] sm:$0xff] }
  0x29   :  { %3617 = vmatpush1.bf16.msra.mxu0 %v3616_v31  ;;  %v3354_v31 = vcombine.low %v161_v25, %v165_v26  ;;  %v220_v26 = vld [vmem:[#allocation2 + $0x228] sm:$0xff] }
  0x2a   :  { %3618 = vmatprep.subr.bf16.mxu0 %v3954_v0  ;;  %575 = vmatpush1.bf16.msra.mxu1 %v3374_v54  ;;  %v182_v54 = vld [vmem:[#allocation2 + $0xf8] sm:$0xff] }
  0x2b   :  { %609 = vmatprep.subr.bf16.mxu1 %v3345_v57  ;;  %v3373_v56 = vcombine.high %v178_v53, %v182_v54  ;;  %v186_v57 = vld [vmem:[#allocation2 + $0x118] sm:$0xff] }
  0x2d   :  { %3620 = vmatpush1.bf16.msra.mxu0 %v3619_v34  ;;  %v181_v34 = vld [vmem:[#allocation2 + $0xf0] sm:$0xff] }
  0x2e   :  { %3621 = vmatprep.subr.bf16.mxu0 %v3954_v0  ;;  %v3371_v36 = vcombine.high %v177_v33, %v181_v34  ;;  %v3370_v39 = vcombine.low %v177_v33, %v181_v34  ;;  %v228_v34 = vld [vmem:[#allocation2 + $0x268] sm:$0xff] }
  0x31   :  { %3623 = vmatpush1.bf16.msra.mxu0 %v3622_v37  ;;  %v185_v37 = vld [vmem:[#allocation2 + $0x110] sm:$0xff] }
  0x32   :  { %3624 = vmatprep.subr.bf16.mxu0 %v3954_v0 }
  0x35   :  { %3626 = vmatpush1.bf16.msra.mxu0 %v3625_v40  ;;  %v3379_v40 = vcombine.high %v185_v37, %v189_v38 }
  0x36   :  { %3627 = vmatprep.subr.bf16.mxu0 %v3954_v0 }
  0x39   :  { %3629 = vmatpush1.bf16.msra.mxu0 %v3628_v43  ;;  %v3378_v43 = vcombine.low %v185_v37, %v189_v38  ;;  %v231_v38 = vld [vmem:[#allocation2 + $0x280] sm:$0xff] }
  0x3c   :  { %139 = vmatmul.mubr.f32.vlgmr.msra.gmra.mrb[0].mxu0 %v38_v44  ;;  %v3349_v44 = vcombine.high %v154_v41, %v158_v42  ;;  %v236_v42 = vld [vmem:[#allocation2 + $0x2a8] sm:$0xff] }
  0x3d   :  { %3341 = vmatprep.mubr.msk.f32.mxu0 %vm67_vm0, %v41_v45  ;;  %v162_v45 = vld [vmem:[#allocation2 + $0x58] sm:$0xff] }
  0x40   :  { %144 = vmatmul.mubr.f32.gmra.mrb[2].mxu0 %v40_v46  ;;  %v166_v46 = vld [vmem:[#allocation2 + $0x78] sm:$0xff] }
  0x41   :  { %v3357_v48 = vcombine.high %v162_v45, %v166_v46  ;;  %v3356_v51 = vcombine.low %v162_v45, %v166_v46  ;;  %v239_v46 = vld [vmem:[#allocation2 + $0x2c0] sm:$0xff] }
 0x10f   :  { %v140_v61 = vpop.f32.mrb[0].mxu0 }
 0x110   :  { %v142_v62 = vpop.f32.mrb[1].mxu0  ;;  %v141_v63 = vadd.f32 %v3339_v60, %v140_v61 }
 0x112   :  { %v149_v5 = vmax.f32 %v141_v63, 0.0  ;;  %v195_v63 = vld [vmem:[#allocation2 + $0x160] sm:$0xff] }
 0x113   :  { %v145_v0 = vpop.f32.mrb[2].mxu0 }
 0x114   :  { %v146_v1 = vadd.f32 %v3339_v60, %v145_v0  ;;  %v147_v2 = vpop.f32.mrb[3].mxu0  ;;  %v3372_v60 = vcombine.low %v178_v53, %v182_v54  ;;  %v192_v0 = vld [vmem:[#allocation2 + $0x148] sm:$0xff]  ;;  %v247_v54 = vld [vmem:[#allocation2 + $0x300] sm:$0xff] }
 0x115   :  { %v196_v2 = vld [vmem:[#allocation2 + $0x168] sm:$0xff] }
 0x116   :  { %v150_v6 = vmax.f32 %v146_v1, 0.0  ;;  %v4108_v3 = vcombine.high %v192_v0, %v196_v2 }
 0x118   :  { %v4093_v7 = vpack.c.bf16 %v150_v6, %v149_v5  ;;  %5867 = vst [vmem:[#allocation6_spill] sm:$0xff] %v4108_v3  ;;  %v4112_v5 = vcombine.low %v192_v0, %v196_v2  ;;  %v199_v6 = vld [vmem:[#allocation2 + $0x180] sm:$0xff]  ;;  %v256_v0 = vld [vmem:[#allocation2 + $0x348] sm:$0xff] }
 0x11a   :  { %3382 = vmatmul.mubr.msk.bf16.vlgmr.msra.gmra.mrb[0].mxu1 %vm562_vm1, %v4093_v7  ;;  %5869 = vst [vmem:[#allocation8_spill] sm:$0xff] %v4112_v5 }
 0x11b   :  { %610 = vmatpush1.bf16.msra.mxu1 %v3344_v58  ;;  %641 = vmatprep.mubr.bf16.mxu1 %v3955_v59  ;;  %v190_v58 = vld [vmem:[#allocation2 + $0x138] sm:$0xff] }
 0x11c   :  { %611 = vmatprep.subr.bf16.mxu1 %v3353_v8  ;;  %v3381_v61 = vcombine.high %v186_v57, %v190_v58  ;;  %v3380_v62 = vcombine.low %v186_v57, %v190_v58  ;;  %v200_v8 = vld [vmem:[#allocation2 + $0x188] sm:$0xff] }
 0x11d   :  { %v4124_v13 = vcombine.low %v200_v8, %v204_v10  ;;  %v252_v58 = vld [vmem:[#allocation2 + $0x328] sm:$0xff] }
 0x11f   :  { %612 = vmatpush1.bf16.msra.mxu1 %v3352_v11  ;;  %v4120_v11 = vcombine.high %v200_v8, %v204_v10  ;;  %5873 = vst [vmem:[#allocation12_spill] sm:$0xff] %v4124_v13 }
 0x120   :  { %613 = vmatprep.subr.bf16.mxu1 %v3361_v12 }
 0x121   :  { %5871 = vst [vmem:[#allocation10_spill] sm:$0xff] %v4120_v11 }
 0x123   :  { %614 = vmatpush1.bf16.msra.mxu1 %v3360_v15  ;;  %v211_v15 = vld [vmem:[#allocation2 + $0x1e0] sm:$0xff] }
 0x124   :  { %615 = vmatprep.subr.bf16.mxu1 %v3369_v16  ;;  %v208_v16 = vld [vmem:[#allocation2 + $0x1c8] sm:$0xff]  ;;  %v4130_v17 = vcombine.high %v207_v14, %v211_v15 }
 0x125   :  { %v4136_v21 = vcombine.low %v208_v16, %v212_v18 }
 0x126   :  { %5874 = vst [vmem:[#allocation13_spill] sm:$0xff] %v4130_v17 }
 0x127   :  { %616 = vmatpush1.bf16.msra.mxu1 %v3368_v19  ;;  %v4132_v19 = vcombine.high %v208_v16, %v212_v18  ;;  %5877 = vst [vmem:[#allocation16_spill] sm:$0xff] %v4136_v21  ;;  %v264_v16 = vld [vmem:[#allocation2 + $0x388] sm:$0xff] }
 0x128   :  { %617 = vmatprep.subr.bf16.mxu1 %v3377_v20  ;;  %v4134_v20 = vcombine.low %v207_v14, %v211_v15  ;;  %v263_v14 = vld [vmem:[#allocation2 + $0x380] sm:$0xff] }
 0x129   :  { %5875 = vst [vmem:[#allocation14_spill] sm:$0xff] %v4132_v19  ;;  %v267_v15 = vld [vmem:[#allocation2 + $0x3a0] sm:$0xff] }
 0x12a   :  { %5876 = vst [vmem:[#allocation15_spill] sm:$0xff] %v4134_v20  ;;  %v4214_v18 = vcombine.high %v263_v14, %v267_v15 }
 0x12b   :  { %618 = vmatpush1.bf16.msra.mxu1 %v3376_v23  ;;  %v219_v23 = vld [vmem:[#allocation2 + $0x220] sm:$0xff] }
 0x12c   :  { %652 = vmatprep.subr.bf16.mxu1 %v3347_v24  ;;  %v216_v24 = vld [vmem:[#allocation2 + $0x208] sm:$0xff]  ;;  %v4142_v25 = vcombine.high %v215_v22, %v219_v23  ;;  %5902 = vst [vmem:[#allocation41_spill] sm:$0xff] %v4214_v18 }
 0x12d   :  { %v4148_v29 = vcombine.low %v216_v24, %v220_v26 }
 0x12e   :  { %3383 = vmatmul.mubr.msk.bf16.vlgmr.msra.gmra.mrb[4].mxu1 %vm562_vm1, %v4093_v7  ;;  %5878 = vst [vmem:[#allocation17_spill] sm:$0xff] %v4142_v25 }
 0x12f   :  { %653 = vmatpush1.bf16.msra.mxu1 %v3346_v27  ;;  %684 = vmatprep.mubr.bf16.mxu1 %v3955_v59  ;;  %v4144_v27 = vcombine.high %v216_v24, %v220_v26  ;;  %5881 = vst [vmem:[#allocation20_spill] sm:$0xff] %v4148_v29  ;;  %v4218_v24 = vcombine.low %v263_v14, %v267_v15  ;;  %v292_v14 = vld [vmem:[#allocation2 + $0x468] sm:$0xff] }
 0x130   :  { %654 = vmatprep.subr.bf16.mxu1 %v3355_v28  ;;  %v4146_v28 = vcombine.low %v215_v22, %v219_v23  ;;  %v268_v22 = vld [vmem:[#allocation2 + $0x3a8] sm:$0xff] }
 0x131   :  { %5879 = vst [vmem:[#allocation18_spill] sm:$0xff] %v4144_v27  ;;  %v4216_v23 = vcombine.high %v264_v16, %v268_v22  ;;  %5904 = vst [vmem:[#allocation43_spill] sm:$0xff] %v4218_v24  ;;  %v4220_v26 = vcombine.low %v264_v16, %v268_v22  ;;  %v295_v16 = vld [vmem:[#allocation2 + $0x480] sm:$0xff] }
 0x132   :  { %5880 = vst [vmem:[#allocation19_spill] sm:$0xff] %v4146_v28  ;;  %v299_v22 = vld [vmem:[#allocation2 + $0x4a0] sm:$0xff] }
 0x133   :  { %655 = vmatpush1.bf16.msra.mxu1 %v3354_v31  ;;  %v227_v31 = vld [vmem:[#allocation2 + $0x260] sm:$0xff]  ;;  %5903 = vst [vmem:[#allocation42_spill] sm:$0xff] %v4216_v23  ;;  %5905 = vst [vmem:[#allocation44_spill] sm:$0xff] %v4220_v26 }
 0x134   :  { %656 = vmatprep.subr.bf16.mxu1 %v3363_v32  ;;  %v224_v32 = vld [vmem:[#allocation2 + $0x248] sm:$0xff]  ;;  %v4154_v33 = vcombine.high %v223_v30, %v227_v31 }
 0x135   :  { %v4160_v37 = vcombine.low %v224_v32, %v228_v34 }
 0x136   :  { %5882 = vst [vmem:[#allocation21_spill] sm:$0xff] %v4154_v33 }
 0x137   :  { %657 = vmatpush1.bf16.msra.mxu1 %v3362_v35  ;;  %v4156_v35 = vcombine.high %v224_v32, %v228_v34  ;;  %5885 = vst [vmem:[#allocation24_spill] sm:$0xff] %v4160_v37  ;;  %v272_v32 = vld [vmem:[#allocation2 + $0x3c8] sm:$0xff] }
 0x138   :  { %658 = vmatprep.subr.bf16.mxu1 %v3371_v36  ;;  %v4158_v36 = vcombine.low %v223_v30, %v227_v31  ;;  %v271_v30 = vld [vmem:[#allocation2 + $0x3c0] sm:$0xff] }
 0x139   :  { %5883 = vst [vmem:[#allocation22_spill] sm:$0xff] %v4156_v35  ;;  %v275_v31 = vld [vmem:[#allocation2 + $0x3e0] sm:$0xff] }
 0x13a   :  { %5884 = vst [vmem:[#allocation23_spill] sm:$0xff] %v4158_v36  ;;  %v4226_v34 = vcombine.high %v271_v30, %v275_v31 }
 0x13b   :  { %659 = vmatpush1.bf16.msra.mxu1 %v3370_v39  ;;  %v235_v39 = vld [vmem:[#allocation2 + $0x2a0] sm:$0xff] }
 0x13c   :  { %660 = vmatprep.subr.bf16.mxu1 %v3379_v40  ;;  %v232_v40 = vld [vmem:[#allocation2 + $0x288] sm:$0xff]  ;;  %v4166_v41 = vcombine.high %v231_v38, %v235_v39  ;;  %5906 = vst [vmem:[#allocation45_spill] sm:$0xff] %v4226_v34 }
 0x13d   :  { %v4172_v45 = vcombine.low %v232_v40, %v236_v42 }
 0x13e   :  { %5886 = vst [vmem:[#allocation25_spill] sm:$0xff] %v4166_v41 }
 0x13f   :  { %661 = vmatpush1.bf16.msra.mxu1 %v3378_v43  ;;  %v4168_v43 = vcombine.high %v232_v40, %v236_v42  ;;  %5889 = vst [vmem:[#allocation28_spill] sm:$0xff] %v4172_v45  ;;  %v4230_v40 = vcombine.low %v271_v30, %v275_v31 }
 0x140   :  { %695 = vmatprep.subr.bf16.mxu1 %v3349_v44  ;;  %v4170_v44 = vcombine.low %v231_v38, %v235_v39  ;;  %v276_v38 = vld [vmem:[#allocation2 + $0x3e8] sm:$0xff] }
 0x141   :  { %5887 = vst [vmem:[#allocation26_spill] sm:$0xff] %v4168_v43  ;;  %v4228_v39 = vcombine.high %v272_v32, %v276_v38  ;;  %5908 = vst [vmem:[#allocation47_spill] sm:$0xff] %v4230_v40  ;;  %v4232_v42 = vcombine.low %v272_v32, %v276_v38  ;;  %v4258_v32 = vcombine.high %v295_v16, %v299_v22  ;;  %v296_v38 = vld [vmem:[#allocation2 + $0x488] sm:$0xff] }
 0x142   :  { %3384 = vmatmul.mubr.msk.bf16.vlgmr.msra.gmra.mrb[8].mxu1 %vm562_vm1, %v4093_v7  ;;  %5888 = vst [vmem:[#allocation27_spill] sm:$0xff] %v4170_v44 }
 0x143   :  { %696 = vmatpush1.bf16.msra.mxu1 %v3348_v47  ;;  %727 = vmatprep.mubr.bf16.mxu1 %v3955_v59  ;;  %v191_v59 = vld [vmem:[#allocation2 + $0x140] sm:$0xff]  ;;  %5907 = vst [vmem:[#allocation46_spill] sm:$0xff] %v4228_v39  ;;  %5909 = vst [vmem:[#allocation48_spill] sm:$0xff] %v4232_v42 }
 0x144   :  { %697 = vmatprep.subr.bf16.mxu1 %v3357_v48  ;;  %v4106_v1 = vcombine.high %v191_v59, %v195_v63  ;;  %v4110_v4 = vcombine.low %v191_v59, %v195_v63  ;;  %v243_v47 = vld [vmem:[#allocation2 + $0x2e0] sm:$0xff]  ;;  %v240_v48 = vld [vmem:[#allocation2 + $0x2c8] sm:$0xff]  ;;  %5918 = vst [vmem:[#allocation57_spill] sm:$0xff] %v4258_v32 }
 0x145   :  { %v4178_v49 = vcombine.high %v239_v46, %v243_v47  ;;  %v4184_v53 = vcombine.low %v240_v48, %v244_v50  ;;  %v255_v59 = vld [vmem:[#allocation2 + $0x340] sm:$0xff] }
 0x146   :  { %5866 = vst [vmem:[#allocation5_spill] sm:$0xff] %v4106_v1  ;;  %5868 = vst [vmem:[#allocation7_spill] sm:$0xff] %v4110_v4  ;;  %1428 = vmatprep.subr.bf16.mxu0 %v4106_v1  ;;  %v259_v63 = vld [vmem:[#allocation2 + $0x360] sm:$0xff] }
 0x147   :  { %698 = vmatpush1.bf16.msra.mxu1 %v3356_v51  ;;  %1429 = vmatpush1.bf16.msra.mxu0 %v4110_v4  ;;  %5890 = vst [vmem:[#allocation29_spill] sm:$0xff] %v4178_v49  ;;  %v4180_v51 = vcombine.high %v240_v48, %v244_v50  ;;  %5893 = vst [vmem:[#allocation32_spill] sm:$0xff] %v4184_v53  ;;  %v4202_v2 = vcombine.high %v255_v59, %v259_v63  ;;  %v280_v48 = vld [vmem:[#allocation2 + $0x408] sm:$0xff] }
 0x148   :  { %699 = vmatprep.subr.bf16.mxu1 %v3365_v52  ;;  %v4182_v52 = vcombine.low %v239_v46, %v243_v47  ;;  %v4206_v8 = vcombine.low %v255_v59, %v259_v63  ;;  %v279_v46 = vld [vmem:[#allocation2 + $0x400] sm:$0xff] }
 0x149   :  { %5891 = vst [vmem:[#allocation30_spill] sm:$0xff] %v4180_v51  ;;  %5898 = vst [vmem:[#allocation37_spill] sm:$0xff] %v4202_v2  ;;  %v283_v47 = vld [vmem:[#allocation2 + $0x420] sm:$0xff] }
 0x14a   :  { %5892 = vst [vmem:[#allocation31_spill] sm:$0xff] %v4182_v52  ;;  %5900 = vst [vmem:[#allocation39_spill] sm:$0xff] %v4206_v8  ;;  %v4238_v50 = vcombine.high %v279_v46, %v283_v47  ;;  %v287_v59 = vld [vmem:[#allocation2 + $0x440] sm:$0xff] }
 0x14b   :  { %700 = vmatpush1.bf16.msra.mxu1 %v3364_v55  ;;  %v251_v55 = vld [vmem:[#allocation2 + $0x320] sm:$0xff] }
 0x14c   :  { %701 = vmatprep.subr.bf16.mxu1 %v3373_v56  ;;  %v248_v56 = vld [vmem:[#allocation2 + $0x308] sm:$0xff]  ;;  %v4190_v57 = vcombine.high %v247_v54, %v251_v55  ;;  %5910 = vst [vmem:[#allocation49_spill] sm:$0xff] %v4238_v50  ;;  %v291_v63 = vld [vmem:[#allocation2 + $0x460] sm:$0xff] }
 0x14d   :  { %v4252_v15 = vcombine.low %v287_v59, %v291_v63 }
 0x14e   :  { %5894 = vst [vmem:[#allocation33_spill] sm:$0xff] %v4190_v57 }
 0x14f   :  { %702 = vmatpush1.bf16.msra.mxu1 %v3372_v60  ;;  %v4192_v60 = vcombine.high %v248_v56, %v252_v58  ;;  %5915 = vst [vmem:[#allocation54_spill] sm:$0xff] %v4252_v15 }
 0x150   :  { %703 = vmatprep.subr.bf16.mxu1 %v3381_v61  ;;  %v4194_v61 = vcombine.low %v247_v54, %v251_v55  ;;  %v284_v54 = vld [vmem:[#allocation2 + $0x428] sm:$0xff] }
 0x151   :  { %5895 = vst [vmem:[#allocation34_spill] sm:$0xff] %v4192_v60  ;;  %v4240_v55 = vcombine.high %v280_v48, %v284_v54 }
 0x152   :  { %5896 = vst [vmem:[#allocation35_spill] sm:$0xff] %v4194_v61 }
 0x153   :  { %704 = vmatpush1.bf16.msra.mxu1 %v3380_v62  ;;  %v4196_v62 = vcombine.low %v248_v56, %v252_v58  ;;  %5911 = vst [vmem:[#allocation50_spill] sm:$0xff] %v4240_v55  ;;  %v4242_v56 = vcombine.low %v279_v46, %v283_v47  ;;  %v4244_v58 = vcombine.low %v280_v48, %v284_v54  ;;  %v300_v46 = vld [vmem:[#allocation2 + $0x4a8] sm:$0xff]  ;;  %v303_v47 = vld [vmem:[#allocation2 + $0x4c0] sm:$0xff] }
 0x154   :  { %1469 = vmatprep.subr.bf16.mxu1 %v4108_v3  ;;  %v4261_v48 = vcombine.high %v296_v38, %v300_v46  ;;  %v307_v54 = vld [vmem:[#allocation2 + $0x4e0] sm:$0xff] }
 0x155   :  { %5897 = vst [vmem:[#allocation36_spill] sm:$0xff] %v4196_v62  ;;  %5912 = vst [vmem:[#allocation51_spill] sm:$0xff] %v4242_v56 }
 0x156   :  { %3385 = vmatmul.mubr.msk.bf16.vlgmr.msra.gmra.mrb[12].mxu1 %vm562_vm1, %v4093_v7  ;;  %v203_v7 = vld [vmem:[#allocation2 + $0x1a0] sm:$0xff]  ;;  %5913 = vst [vmem:[#allocation52_spill] sm:$0xff] %v4244_v58  ;;  %5919 = vst [vmem:[#allocation58_spill] sm:$0xff] %v4261_v48 }
 0x157   :  { %1470 = vmatpush1.bf16.msra.mxu1 %v4112_v5  ;;  %v4118_v9 = vcombine.high %v199_v6, %v203_v7  ;;  %v4122_v12 = vcombine.low %v199_v6, %v203_v7  ;;  %v260_v6 = vld [vmem:[#allocation2 + $0x368] sm:$0xff] }
 0x158   :  { %1471 = vmatprep.subr.bf16.mxu1 %v4120_v11  ;;  %v4204_v7 = vcombine.high %v256_v0, %v260_v6  ;;  %v4208_v10 = vcombine.low %v256_v0, %v260_v6  ;;  %v288_v0 = vld [vmem:[#allocation2 + $0x448] sm:$0xff]  ;;  %v4250_v6 = vcombine.high %v287_v59, %v291_v63  ;;  %v4265_v59 = vcombine.low %v295_v16, %v299_v22 }
 0x159   :  { %5870 = vst [vmem:[#allocation9_spill] sm:$0xff] %v4118_v9  ;;  %5872 = vst [vmem:[#allocation11_spill] sm:$0xff] %v4122_v12  ;;  %1430 = vmatprep.subr.bf16.mxu0 %v4118_v9  ;;  %v4254_v30 = vcombine.high %v288_v0, %v292_v14  ;;  %v4256_v31 = vcombine.low %v288_v0, %v292_v14  ;;  %v4269_v63 = vcombine.low %v296_v38, %v300_v46 }
 0x15a   :  { %1431 = vmatpush1.bf16.msra.mxu0 %v4122_v12  ;;  %5899 = vst [vmem:[#allocation38_spill] sm:$0xff] %v4204_v7  ;;  %5901 = vst [vmem:[#allocation40_spill] sm:$0xff] %v4208_v10  ;;  %v4271_v0 = vcombine.high %v303_v47, %v307_v54  ;;  %v4277_v16 = vcombine.low %v303_v47, %v307_v54  ;;  %v194_v54 = vld [vmem:[#allocation2 + $0x158] sm:$0xff] }
 0x15b   :  { %1472 = vmatpush1.bf16.msra.mxu1 %v4124_v13  ;;  %1432 = vmatprep.subr.bf16.mxu0 %v4130_v17  ;;  %5914 = vst [vmem:[#allocation53_spill] sm:$0xff] %v4250_v6  ;;  %5916 = vst [vmem:[#allocation55_spill] sm:$0xff] %v4254_v30 }
 0x15c   :  { %1473 = vmatprep.subr.bf16.mxu1 %v4132_v19  ;;  %5917 = vst [vmem:[#allocation56_spill] sm:$0xff] %v4256_v31  ;;  %5920 = vst [vmem:[#allocation59_spill] sm:$0xff] %v4265_v59 }
 0x15d   :  { %5921 = vst [vmem:[#allocation60_spill] sm:$0xff] %v4269_v63  ;;  %5922 = vst [vmem:[#allocation61_spill] sm:$0xff] %v4271_v0 }
 0x15e   :  { %1433 = vmatpush1.bf16.msra.mxu0 %v4134_v20  ;;  %5924 = vst [vmem:[#allocation63_spill] sm:$0xff] %v4277_v16 }
 0x15f   :  { %1474 = vmatpush1.bf16.msra.mxu1 %v4136_v21  ;;  %1434 = vmatprep.subr.bf16.mxu0 %v4142_v25 }
 0x160   :  { %1475 = vmatprep.subr.bf16.mxu1 %v4144_v27 }
 0x162   :  { %1435 = vmatpush1.bf16.msra.mxu0 %v4146_v28 }
 0x163   :  { %1476 = vmatpush1.bf16.msra.mxu1 %v4148_v29  ;;  %1436 = vmatprep.subr.bf16.mxu0 %v4154_v33 }
 0x164   :  { %1477 = vmatprep.subr.bf16.mxu1 %v4156_v35 }
 0x166   :  { %1437 = vmatpush1.bf16.msra.mxu0 %v4158_v36 }
 0x167   :  { %1478 = vmatpush1.bf16.msra.mxu1 %v4160_v37  ;;  %1438 = vmatprep.subr.bf16.mxu0 %v4166_v41 }
 0x168   :  { %1479 = vmatprep.subr.bf16.mxu1 %v4168_v43 }
 0x16a   :  { %1439 = vmatpush1.bf16.msra.mxu0 %v4170_v44 }
 0x16b   :  { %1480 = vmatpush1.bf16.msra.mxu1 %v4172_v45  ;;  %1440 = vmatprep.subr.bf16.mxu0 %v4178_v49 }
 0x16c   :  { %1481 = vmatprep.subr.bf16.mxu1 %v4180_v51 }
 0x16e   :  { %1441 = vmatpush1.bf16.msra.mxu0 %v4182_v52 }
 0x16f   :  { %1482 = vmatpush1.bf16.msra.mxu1 %v4184_v53  ;;  %1442 = vmatprep.subr.bf16.mxu0 %v4190_v57 }
 0x170   :  { %1483 = vmatprep.subr.bf16.mxu1 %v4192_v60 }
 0x172   :  { %1443 = vmatpush1.bf16.msra.mxu0 %v4194_v61 }
 0x173   :  { %1484 = vmatpush1.bf16.msra.mxu1 %v4196_v62  ;;  %1444 = vmatprep.subr.bf16.mxu0 %v4202_v2 }
 0x174   :  { %1485 = vmatprep.subr.bf16.mxu1 %v4204_v7 }
 0x176   :  { %1445 = vmatpush1.bf16.msra.mxu0 %v4206_v8 }
 0x177   :  { %1486 = vmatpush1.bf16.msra.mxu1 %v4208_v10  ;;  %1446 = vmatprep.subr.bf16.mxu0 %v4214_v18 }
 0x178   :  { %1487 = vmatprep.subr.bf16.mxu1 %v4216_v23 }
 0x17a   :  { %1447 = vmatpush1.bf16.msra.mxu0 %v4218_v24 }
 0x17b   :  { %1488 = vmatpush1.bf16.msra.mxu1 %v4220_v26  ;;  %1448 = vmatprep.subr.bf16.mxu0 %v4226_v34 }
 0x17c   :  { %1489 = vmatprep.subr.bf16.mxu1 %v4228_v39 }
 0x17e   :  { %1449 = vmatpush1.bf16.msra.mxu0 %v4230_v40 }
 0x17f   :  { %1490 = vmatpush1.bf16.msra.mxu1 %v4232_v42  ;;  %1450 = vmatprep.subr.bf16.mxu0 %v4238_v50  ;;  %v312_v50 = vld [vmem:[#allocation2 + $0x508] sm:$0xff] }
 0x180   :  { %1491 = vmatprep.subr.bf16.mxu1 %v4240_v55  ;;  %v315_v55 = vld [vmem:[#allocation2 + $0x520] sm:$0xff] }
 0x182   :  { %1451 = vmatpush1.bf16.msra.mxu0 %v4242_v56  ;;  %v308_v56 = vld [vmem:[#allocation2 + $0x4e8] sm:$0xff] }
 0x183   :  { %1492 = vmatpush1.bf16.msra.mxu1 %v4244_v58  ;;  %1452 = vmatprep.subr.bf16.mxu0 %v4250_v6  ;;  %v304_v58 = vld [vmem:[#allocation2 + $0x4c8] sm:$0xff]  ;;  %v311_v6 = vld [vmem:[#allocation2 + $0x500] sm:$0xff] }
 0x184   :  { %1493 = vmatprep.subr.bf16.mxu1 %v4254_v30  ;;  %v4274_v14 = vcombine.high %v304_v58, %v308_v56  ;;  %v316_v30 = vld [vmem:[#allocation2 + $0x528] sm:$0xff]  ;;  %v4281_v22 = vcombine.low %v304_v58, %v308_v56  ;;  %v4283_v38 = vcombine.high %v311_v6, %v315_v55  ;;  %v193_v56 = vld [vmem:[#allocation2 + $0x150] sm:$0xff] }
 0x185   :  { %v4286_v46 = vcombine.high %v312_v50, %v316_v30  ;;  %v4293_v47 = vcombine.low %v312_v50, %v316_v30  ;;  %v197_v58 = vld [vmem:[#allocation2 + $0x170] sm:$0xff]  ;;  %v322_v30 = vlaneseq }
 0x186   :  { %1453 = vmatpush1.bf16.msra.mxu0 %v4252_v15  ;;  %5923 = vst [vmem:[#allocation62_spill] sm:$0xff] %v4274_v14  ;;  %5925 = vst [vmem:[#allocation64_spill] sm:$0xff] %v4281_v22 }
 0x187   :  { %1494 = vmatpush1.bf16.msra.mxu1 %v4256_v31  ;;  %1454 = vmatprep.subr.bf16.mxu0 %v4258_v32  ;;  %5926 = vst [vmem:[#allocation65_spill] sm:$0xff] %v4283_v38  ;;  %5927 = vst [vmem:[#allocation66_spill] sm:$0xff] %v4286_v46 }
 0x188   :  { %1495 = vmatprep.subr.bf16.mxu1 %v4261_v48  ;;  %v4289_v48 = vcombine.low %v311_v6, %v315_v55  ;;  %5929 = vst [vmem:[#allocation68_spill] sm:$0xff] %v4293_v47  ;;  %v4302_v6 = vcombine.low %v193_v56, %v197_v58 }
 0x18a   :  { %1455 = vmatpush1.bf16.msra.mxu0 %v4265_v59  ;;  %5928 = vst [vmem:[#allocation67_spill] sm:$0xff] %v4289_v48  ;;  %5932 = vst [vmem:[#allocation71_spill] sm:$0xff] %v4302_v6 }
 0x18b   :  { %1496 = vmatpush1.bf16.msra.mxu1 %v4269_v63  ;;  %1456 = vmatprep.subr.bf16.mxu0 %v4271_v0 }
 0x18c   :  { %1497 = vmatprep.subr.bf16.mxu1 %v4274_v14  ;;  %v4298_v14 = vcombine.high %v193_v56, %v197_v58 }
 0x18e   :  { %1457 = vmatpush1.bf16.msra.mxu0 %v4277_v16  ;;  %5930 = vst [vmem:[#allocation69_spill] sm:$0xff] %v4298_v14  ;;  %v198_v16 = vld [vmem:[#allocation2 + $0x178] sm:$0xff] }
 0x18f   :  { %1498 = vmatpush1.bf16.msra.mxu1 %v4281_v22  ;;  %1458 = vmatprep.subr.bf16.mxu0 %v4283_v38  ;;  %v4300_v55 = vcombine.high %v194_v54, %v198_v16  ;;  %v4305_v50 = vcombine.low %v194_v54, %v198_v16 }
 0x190   :  { %1499 = vmatprep.subr.bf16.mxu1 %v4286_v46 }
 0x191   :  { %5931 = vst [vmem:[#allocation70_spill] sm:$0xff] %v4300_v55  ;;  %5933 = vst [vmem:[#allocation72_spill] sm:$0xff] %v4305_v50 }
 0x192   :  { %1459 = vmatpush1.bf16.msra.mxu0 %v4289_v48  ;;  %v323_v48 = vshrl.u32 %v322_v30, 7 }
 0x193   :  { %1500 = vmatpush1.bf16.msra.mxu1 %v4293_v47  ;;  %1510 = vmatprep.subr.bf16.mxu0 %v4298_v14  ;;  %v320_v47 = vld [vmem:[%s5573_s4] sm:$0xff] }
 0x194   :  { %1551 = vmatprep.subr.bf16.mxu1 %v4300_v55  ;;  %v324_v46 = vsub.s32 0, %v323_v48  ;;  %v328_v38 = vsub.s32 1, %v323_v48  ;;  %v332_v54 = vsub.s32 2, %v323_v48  ;;  %v336_v55 = vsub.s32 3, %v323_v48 }
 0x196   :  { %v325_v0 = vrot.slane %v320_v47, %v324_v46  ;;  %v329_v59 = vrot.slane %v320_v47, %v328_v38  ;;  %v333_v30 = vrot.slane %v320_v47, %v332_v54  ;;  %v337_v15 = vrot.slane %v320_v47, %v336_v55 }
 0x197   :  { %v340_v54 = vsub.s32 4, %v323_v48  ;;  %v344_v55 = vsub.s32 5, %v323_v48 }
 0x1ed   :  { %v600_v22 = vpop.f32.mrb[0].mxu1 }
 0x1ee   :  { %v602_v63 = vpop.f32.mrb[1].mxu1  ;;  %v4319_v46 = vadd.f32 %v600_v22, %v325_v0 }
 0x1ef   :  { %v604_v56 = vpop.f32.mrb[2].mxu1  ;;  %v4321_v38 = vadd.f32 %v602_v63, %v329_v59  ;;  %v345_v63 = vrot.slane %v320_v47, %v344_v55 }
 0x1f0   :  { %v4311_v58 = vadd.f32 %v604_v56, %v325_v0  ;;  %v606_v14 = vpop.f32.mrb[3].mxu1  ;;  %5938 = vst [vmem:[#allocation77_spill] sm:$0xff] %v4319_v46  ;;  %v3386_v56 = vmul.f32 -1.442695, %v4319_v46  ;;  %v341_v0 = vrot.slane %v320_v47, %v340_v54  ;;  %v348_v46 = vsub.s32 6, %v323_v48 }
 0x1f1   :  { %v4313_v16 = vadd.f32 %v606_v14, %v329_v59  ;;  %5939 = vst [vmem:[#allocation78_spill] sm:$0xff] %v4321_v38 }
 0x1f2   :  { %5934 = vst [vmem:[#allocation73_spill] sm:$0xff] %v4311_v58  ;;  %3669 = vpow2.f32 %v3386_v56 }
 0x1f3   :  { %5935 = vst [vmem:[#allocation74_spill] sm:$0xff] %v4313_v16  ;;  %v3387_v16 = vmul.f32 -1.442695, %v4321_v38 }
 0x1f5   :  { %3671 = vpow2.f32 %v3387_v16 }
 0x201   :  { %v643_v32 = vpop.f32.mrb[4].mxu1 }
 0x202   :  { %v645_v31 = vpop.f32.mrb[5].mxu1  ;;  %v4324_v14 = vadd.f32 %v643_v32, %v333_v30 }
 0x203   :  { %v647_v42 = vpop.f32.mrb[6].mxu1  ;;  %v4327_v58 = vadd.f32 %v645_v31, %v337_v15 }
 0x204   :  { %v4315_v40 = vadd.f32 %v647_v42, %v333_v30  ;;  %v649_v39 = vpop.f32.mrb[7].mxu1  ;;  %5940 = vst [vmem:[#allocation79_spill] sm:$0xff] %v4324_v14  ;;  %v3388_v42 = vmul.f32 -1.442695, %v4324_v14  ;;  %v352_v14 = vsub.s32 7, %v323_v48 }
 0x205   :  { %v4317_v34 = vadd.f32 %v649_v39, %v337_v15  ;;  %5941 = vst [vmem:[#allocation80_spill] sm:$0xff] %v4327_v58  ;;  %v3389_v39 = vmul.f32 -1.442695, %v4327_v58  ;;  %v3670_v15 = vpop.eup %3669 }
 0x206   :  { %5936 = vst [vmem:[#allocation75_spill] sm:$0xff] %v4315_v40  ;;  %3673 = vpow2.f32 %v3388_v42  ;;  %v3672_v31 = vpop.eup %3671  ;;  %v756_v16 = vadd.f32 1.0, %v3670_v15 }
 0x207   :  { %5937 = vst [vmem:[#allocation76_spill] sm:$0xff] %v4317_v34  ;;  %3675 = vpow2.f32 %v3389_v39  ;;  %v757_v54 = vadd.f32 1.0, %v3672_v31 }
 0x208   :  { %3677 = vrcp.f32 %v756_v16 }
 0x209   :  { %3679 = vrcp.f32 %v757_v54 }
 0x210   :  { %v3674_v58 = vpop.eup %3673 }
 0x211   :  { %v3676_v55 = vpop.eup %3675  ;;  %v758_v42 = vadd.f32 1.0, %v3674_v58 }
 0x212   :  { %v759_v39 = vadd.f32 1.0, %v3676_v55 }
 0x215   :  { %v686_v40 = vpop.f32.mrb[8].mxu1 }
 0x216   :  { %v688_v59 = vpop.f32.mrb[9].mxu1  ;;  %v4335_v56 = vadd.f32 %v686_v40, %v341_v0 }
 0x217   :  { %v690_v22 = vpop.f32.mrb[10].mxu1  ;;  %v4337_v38 = vadd.f32 %v688_v59, %v345_v63 }
 0x218   :  { %v4331_v34 = vadd.f32 %v690_v22, %v341_v0  ;;  %v692_v32 = vpop.f32.mrb[11].mxu1  ;;  %v3390_v22 = vmul.f32 -1.442695, %v4335_v56 }
 0x219   :  { %v4333_v30 = vadd.f32 %v692_v32, %v345_v63  ;;  %5944 = vst [vmem:[#allocation83_spill] sm:$0xff] %v4337_v38  ;;  %v349_v32 = vrot.slane %v320_v47, %v348_v46 }
 0x21a   :  { %5942 = vst [vmem:[#allocation81_spill] sm:$0xff] %v4331_v34  ;;  %v3391_v34 = vmul.f32 -1.442695, %v4337_v38  ;;  %3681 = vpow2.f32 %v3390_v22 }
 0x21b   :  { %5943 = vst [vmem:[#allocation82_spill] sm:$0xff] %v4333_v30  ;;  %v353_v30 = vrot.slane %v320_v47, %v352_v14  ;;  %v3678_v47 = vpop.eup %3677 }
 0x21c   :  { %3683 = vpow2.f32 %v3391_v34  ;;  %v3680_v34 = vpop.eup %3679 }
 0x21d   :  { %3685 = vrcp.f32 %v758_v42 }
 0x21e   :  { %3687 = vrcp.f32 %v759_v39 }
 0x224   :  { %v3682_v14 = vpop.eup %3681 }
 0x225   :  { %v760_v55 = vadd.f32 1.0, %v3682_v14 }
 0x226   :  { %v3684_v31 = vpop.eup %3683 }
 0x227   :  { %v3686_v16 = vpop.eup %3685  ;;  %v761_v42 = vadd.f32 1.0, %v3684_v31 }
 0x228   :  { %v3688_v54 = vpop.eup %3687 }
 0x229   :  { %v729_v40 = vpop.f32.mrb[12].mxu1  ;;  %v777_v38 = vmul.f32 0.0, %v3688_v54  ;;  %v202_v54 = vld [vmem:[#allocation2 + $0x198] sm:$0xff] }
 0x22a   :  { %v4341_v0 = vadd.f32 %v729_v40, %v349_v32  ;;  %v731_v59 = vpop.f32.mrb[13].mxu1  ;;  %v776_v40 = vmul.f32 0.0, %v3686_v16  ;;  %v201_v16 = vld [vmem:[#allocation2 + $0x190] sm:$0xff] }
 0x22b   :  { %v4343_v48 = vadd.f32 %v731_v59, %v353_v30  ;;  %v733_v63 = vpop.f32.mrb[14].mxu1 }
 0x22c   :  { %5945 = vst [vmem:[#allocation84_spill] sm:$0xff] %v4341_v0  ;;  %3689 = vtanh.f32 %v4341_v0  ;;  %v4346_v15 = vadd.f32 %v733_v63, %v349_v32  ;;  %v735_v58 = vpop.f32.mrb[15].mxu1  ;;  %v218_v0 = vld [vmem:[#allocation2 + $0x218] sm:$0xff] }
 0x22d   :  { %5946 = vst [vmem:[#allocation85_spill] sm:$0xff] %v4343_v48  ;;  %3691 = vtanh.f32 %v4343_v48  ;;  %v4349_v46 = vadd.f32 %v735_v58, %v353_v30 }
 0x22e   :  { %5947 = vst [vmem:[#allocation86_spill] sm:$0xff] %v4346_v15  ;;  %3693 = vrcp.f32 %v760_v55 }
 0x22f   :  { %5948 = vst [vmem:[#allocation87_spill] sm:$0xff] %v4349_v46  ;;  %3695 = vrcp.f32 %v761_v42  ;;  %v209_v42 = vld [vmem:[#allocation2 + $0x1d0] sm:$0xff] }
 0x236   :  { %v3690_v22 = vpop.eup %3689 }
 0x237   :  { %v3692_v39 = vpop.eup %3691  ;;  %v778_v59 = vmul.f32 %v3690_v22, %v3678_v47  ;;  %v205_v47 = vld [vmem:[#allocation2 + $0x1b0] sm:$0xff] }
 0x238   :  { %v779_v32 = vmul.f32 %v3692_v39, %v3680_v34  ;;  %v3694_v58 = vpop.eup %3693  ;;  %v206_v34 = vld [vmem:[#allocation2 + $0x1b8] sm:$0xff] }
 0x239   :  { %v4351_v63 = vadd.f32 %v778_v59, %v776_v40  ;;  %v3696_v46 = vpop.eup %3695  ;;  %v4361_v39 = vcombine.high %v202_v54, %v206_v34  ;;  %v213_v40 = vld [vmem:[#allocation2 + $0x1f0] sm:$0xff]  ;;  %v210_v59 = vld [vmem:[#allocation2 + $0x1d8] sm:$0xff] }
 0x23a   :  { %v4353_v30 = vadd.f32 %v779_v32, %v777_v38  ;;  %v4359_v38 = vcombine.high %v201_v16, %v205_v47  ;;  %v214_v32 = vld [vmem:[#allocation2 + $0x1f8] sm:$0xff] }
 0x23b   :  { %3697 = vtanh.f32 %v4351_v63  ;;  %5950 = vst [vmem:[#allocation89_spill] sm:$0xff] %v4361_v39 }
 0x23c   :  { %3699 = vtanh.f32 %v4353_v30  ;;  %5949 = vst [vmem:[#allocation88_spill] sm:$0xff] %v4359_v38 }
 0x245   :  { %v3698_v14 = vpop.eup %3697 }
 0x246   :  { %v3700_v15 = vpop.eup %3699  ;;  %v784_v31 = vmul.f32 %v3698_v14, %v3694_v58  ;;  %v4373_v58 = vcombine.high %v210_v59, %v214_v32  ;;  %v217_v14 = vld [vmem:[#allocation2 + $0x210] sm:$0xff] }
 0x247   :  { %v785_v48 = vmul.f32 %v3700_v15, %v3696_v46  ;;  %v4369_v15 = vcombine.low %v202_v54, %v206_v34  ;;  %v4371_v46 = vcombine.high %v209_v42, %v213_v40 }
 0x248   :  { %v4357_v22 = vpack.c.bf16 %v784_v31, %v784_v31  ;;  %5954 = vst [vmem:[#allocation93_spill] sm:$0xff] %v4373_v58  ;;  %v221_v31 = vld [vmem:[#allocation2 + $0x230] sm:$0xff] }
 0x249   :  { %v787_v55 = vpack.c.bf16 %v785_v48, %v785_v48  ;;  %v4367_v48 = vcombine.low %v201_v16, %v205_v47  ;;  %5952 = vst [vmem:[#allocation91_spill] sm:$0xff] %v4369_v15  ;;  %5953 = vst [vmem:[#allocation92_spill] sm:$0xff] %v4371_v46  ;;  %v4379_v16 = vcombine.low %v209_v42, %v213_v40 }
 0x24a   :  { %v4381_v47 = vcombine.low %v210_v59, %v214_v32  ;;  %v4385_v54 = vcombine.high %v217_v14, %v221_v31  ;;  %v4391_v42 = vcombine.low %v217_v14, %v221_v31 }
 0x24b   :  { %1460 = vmatprep.mubr.bf16.mxu0 %v787_v55  ;;  %1501 = vmatprep.mubr.bf16.mxu1 %v787_v55  ;;  %5951 = vst [vmem:[#allocation90_spill] sm:$0xff] %v4367_v48  ;;  %5955 = vst [vmem:[#allocation94_spill] sm:$0xff] %v4379_v16 }
 0x24c   :  { %1461 = vmatmul.mubr.bf16.vlgmr.msra.gmra.mrb[4].mxu0 %v4357_v22  ;;  %1502 = vmatmul.mubr.bf16.vlgmr.msra.gmra.mrb[16].mxu1 %v4357_v22  ;;  %5956 = vst [vmem:[#allocation95_spill] sm:$0xff] %v4381_v47  ;;  %5957 = vst [vmem:[#allocation96_spill] sm:$0xff] %v4385_v54 }
 0x24d   :  { %1511 = vmatpush1.bf16.msra.mxu0 %v4302_v6  ;;  %1552 = vmatpush1.bf16.msra.mxu1 %v4305_v50  ;;  %v222_v6 = vld [vmem:[#allocation2 + $0x238] sm:$0xff]  ;;  %5959 = vst [vmem:[#allocation98_spill] sm:$0xff] %v4391_v42 }
 0x24e   :  { %1542 = vmatprep.mubr.bf16.mxu0 %v787_v55  ;;  %1583 = vmatprep.mubr.bf16.mxu1 %v787_v55  ;;  %v4387_v34 = vcombine.high %v218_v0, %v222_v6  ;;  %v225_v55 = vld [vmem:[#allocation2 + $0x250] sm:$0xff]  ;;  %v230_v50 = vld [vmem:[#allocation2 + $0x278] sm:$0xff]  ;;  %v4393_v40 = vcombine.low %v218_v0, %v222_v6 }
 0x24f   :  { %1512 = vmatprep.subr.bf16.mxu0 %v4359_v38  ;;  %1553 = vmatprep.subr.bf16.mxu1 %v4361_v39  ;;  %v229_v39 = vld [vmem:[#allocation2 + $0x270] sm:$0xff]  ;;  %v226_v38 = vld [vmem:[#allocation2 + $0x258] sm:$0xff] }
 0x250   :  { %5958 = vst [vmem:[#allocation97_spill] sm:$0xff] %v4387_v34  ;;  %5960 = vst [vmem:[#allocation99_spill] sm:$0xff] %v4393_v40  ;;  %v4397_v59 = vcombine.high %v225_v55, %v229_v39  ;;  %v4399_v32 = vcombine.high %v226_v38, %v230_v50  ;;  %v4403_v14 = vcombine.low %v225_v55, %v229_v39 }
 0x251   :  { %1513 = vmatpush1.bf16.msra.mxu0 %v4367_v48  ;;  %1554 = vmatpush1.bf16.msra.mxu1 %v4369_v15  ;;  %v234_v15 = vld [vmem:[#allocation2 + $0x298] sm:$0xff]  ;;  %v4405_v6 = vcombine.low %v226_v38, %v230_v50 }
 0x252   :  { %1514 = vmatprep.subr.bf16.mxu0 %v4371_v46  ;;  %1555 = vmatprep.subr.bf16.mxu1 %v4373_v58  ;;  %5961 = vst [vmem:[#allocation100_spill] sm:$0xff] %v4397_v59  ;;  %5962 = vst [vmem:[#allocation101_spill] sm:$0xff] %v4399_v32  ;;  %v233_v58 = vld [vmem:[#allocation2 + $0x290] sm:$0xff]  ;;  %v238_v48 = vld [vmem:[#allocation2 + $0x2b8] sm:$0xff] }
 0x253   :  { %v237_v46 = vld [vmem:[#allocation2 + $0x2b0] sm:$0xff]  ;;  %5963 = vst [vmem:[#allocation102_spill] sm:$0xff] %v4403_v14  ;;  %5964 = vst [vmem:[#allocation103_spill] sm:$0xff] %v4405_v6  ;;  %v4411_v31 = vcombine.high %v234_v15, %v238_v48  ;;  %v4417_v50 = vcombine.low %v234_v15, %v238_v48 }
 0x254   :  { %v4409_v0 = vcombine.high %v233_v58, %v237_v46  ;;  %v4415_v39 = vcombine.low %v233_v58, %v237_v46 }
 0x255   :  { %1515 = vmatpush1.bf16.msra.mxu0 %v4379_v16  ;;  %1556 = vmatpush1.bf16.msra.mxu1 %v4381_v47  ;;  %5966 = vst [vmem:[#allocation105_spill] sm:$0xff] %v4411_v31  ;;  %v242_v47 = vld [vmem:[#allocation2 + $0x2d8] sm:$0xff]  ;;  %5968 = vst [vmem:[#allocation107_spill] sm:$0xff] %v4417_v50 }
 0x256   :  { %1516 = vmatprep.subr.bf16.mxu0 %v4385_v54  ;;  %1557 = vmatprep.subr.bf16.mxu1 %v4387_v34  ;;  %5965 = vst [vmem:[#allocation104_spill] sm:$0xff] %v4409_v0  ;;  %v241_v34 = vld [vmem:[#allocation2 + $0x2d0] sm:$0xff]  ;;  %v246_v16 = vld [vmem:[#allocation2 + $0x2f8] sm:$0xff]  ;;  %5967 = vst [vmem:[#allocation106_spill] sm:$0xff] %v4415_v39 }
 0x257   :  { %v245_v54 = vld [vmem:[#allocation2 + $0x2f0] sm:$0xff]  ;;  %v4423_v55 = vcombine.high %v242_v47, %v246_v16  ;;  %v4429_v48 = vcombine.low %v242_v47, %v246_v16 }
 0x258   :  { %v4421_v38 = vcombine.high %v241_v34, %v245_v54  ;;  %v4427_v46 = vcombine.low %v241_v34, %v245_v54 }
 0x259   :  { %1517 = vmatpush1.bf16.msra.mxu0 %v4391_v42  ;;  %1558 = vmatpush1.bf16.msra.mxu1 %v4393_v40  ;;  %5970 = vst [vmem:[#allocation109_spill] sm:$0xff] %v4423_v55  ;;  %v250_v40 = vld [vmem:[#allocation2 + $0x318] sm:$0xff]  ;;  %5972 = vst [vmem:[#allocation111_spill] sm:$0xff] %v4429_v48 }
 0x25a   :  { %1518 = vmatprep.subr.bf16.mxu0 %v4397_v59  ;;  %1559 = vmatprep.subr.bf16.mxu1 %v4399_v32  ;;  %5969 = vst [vmem:[#allocation108_spill] sm:$0xff] %v4421_v38  ;;  %v249_v32 = vld [vmem:[#allocation2 + $0x310] sm:$0xff]  ;;  %v254_v42 = vld [vmem:[#allocation2 + $0x338] sm:$0xff]  ;;  %5971 = vst [vmem:[#allocation110_spill] sm:$0xff] %v4427_v46 }
 0x25b   :  { %v253_v59 = vld [vmem:[#allocation2 + $0x330] sm:$0xff]  ;;  %v4435_v58 = vcombine.high %v250_v40, %v254_v42  ;;  %v4441_v16 = vcombine.low %v250_v40, %v254_v42 }
 0x25c   :  { %v4433_v15 = vcombine.high %v249_v32, %v253_v59  ;;  %v4439_v54 = vcombine.low %v249_v32, %v253_v59 }
 0x25d   :  { %1519 = vmatpush1.bf16.msra.mxu0 %v4403_v14  ;;  %1560 = vmatpush1.bf16.msra.mxu1 %v4405_v6  ;;  %5974 = vst [vmem:[#allocation113_spill] sm:$0xff] %v4435_v58  ;;  %v258_v6 = vld [vmem:[#allocation2 + $0x358] sm:$0xff]  ;;  %5976 = vst [vmem:[#allocation115_spill] sm:$0xff] %v4441_v16 }
 0x25e   :  { %1520 = vmatprep.subr.bf16.mxu0 %v4409_v0  ;;  %1561 = vmatprep.subr.bf16.mxu1 %v4411_v31  ;;  %5973 = vst [vmem:[#allocation112_spill] sm:$0xff] %v4433_v15  ;;  %v257_v31 = vld [vmem:[#allocation2 + $0x350] sm:$0xff]  ;;  %v262_v14 = vld [vmem:[#allocation2 + $0x378] sm:$0xff]  ;;  %5975 = vst [vmem:[#allocation114_spill] sm:$0xff] %v4439_v54 }
 0x25f   :  { %v261_v0 = vld [vmem:[#allocation2 + $0x370] sm:$0xff]  ;;  %v4447_v34 = vcombine.high %v258_v6, %v262_v14  ;;  %v4453_v42 = vcombine.low %v258_v6, %v262_v14 }
 0x260   :  { %v4445_v47 = vcombine.high %v257_v31, %v261_v0  ;;  %v4451_v59 = vcombine.low %v257_v31, %v261_v0 }
 0x261   :  { %1521 = vmatpush1.bf16.msra.mxu0 %v4415_v39  ;;  %1562 = vmatpush1.bf16.msra.mxu1 %v4417_v50  ;;  %5978 = vst [vmem:[#allocation117_spill] sm:$0xff] %v4447_v34  ;;  %v266_v50 = vld [vmem:[#allocation2 + $0x398] sm:$0xff]  ;;  %5980 = vst [vmem:[#allocation119_spill] sm:$0xff] %v4453_v42 }
 0x262   :  { %1522 = vmatprep.subr.bf16.mxu0 %v4421_v38  ;;  %1563 = vmatprep.subr.bf16.mxu1 %v4423_v55  ;;  %5977 = vst [vmem:[#allocation116_spill] sm:$0xff] %v4445_v47  ;;  %v265_v55 = vld [vmem:[#allocation2 + $0x390] sm:$0xff]  ;;  %v270_v39 = vld [vmem:[#allocation2 + $0x3b8] sm:$0xff]  ;;  %5979 = vst [vmem:[#allocation118_spill] sm:$0xff] %v4451_v59 }
 0x263   :  { %v269_v38 = vld [vmem:[#allocation2 + $0x3b0] sm:$0xff]  ;;  %v4459_v32 = vcombine.high %v266_v50, %v270_v39  ;;  %v4465_v14 = vcombine.low %v266_v50, %v270_v39 }
 0x264   :  { %v4457_v40 = vcombine.high %v265_v55, %v269_v38  ;;  %v4463_v0 = vcombine.low %v265_v55, %v269_v38 }
 0x265   :  { %1523 = vmatpush1.bf16.msra.mxu0 %v4427_v46  ;;  %1564 = vmatpush1.bf16.msra.mxu1 %v4429_v48  ;;  %5982 = vst [vmem:[#allocation121_spill] sm:$0xff] %v4459_v32  ;;  %v274_v48 = vld [vmem:[#allocation2 + $0x3d8] sm:$0xff]  ;;  %5984 = vst [vmem:[#allocation123_spill] sm:$0xff] %v4465_v14 }
 0x266   :  { %1524 = vmatprep.subr.bf16.mxu0 %v4433_v15  ;;  %1565 = vmatprep.subr.bf16.mxu1 %v4435_v58  ;;  %5981 = vst [vmem:[#allocation120_spill] sm:$0xff] %v4457_v40  ;;  %v273_v58 = vld [vmem:[#allocation2 + $0x3d0] sm:$0xff]  ;;  %v278_v46 = vld [vmem:[#allocation2 + $0x3f8] sm:$0xff]  ;;  %5983 = vst [vmem:[#allocation122_spill] sm:$0xff] %v4463_v0 }
 0x267   :  { %v277_v15 = vld [vmem:[#allocation2 + $0x3f0] sm:$0xff]  ;;  %v4471_v31 = vcombine.high %v274_v48, %v278_v46  ;;  %v4477_v39 = vcombine.low %v274_v48, %v278_v46 }
 0x268   :  { %v4469_v6 = vcombine.high %v273_v58, %v277_v15  ;;  %v4475_v38 = vcombine.low %v273_v58, %v277_v15 }
 0x269   :  { %1525 = vmatpush1.bf16.msra.mxu0 %v4439_v54  ;;  %1566 = vmatpush1.bf16.msra.mxu1 %v4441_v16  ;;  %5986 = vst [vmem:[#allocation125_spill] sm:$0xff] %v4471_v31  ;;  %v282_v16 = vld [vmem:[#allocation2 + $0x418] sm:$0xff]  ;;  %5988 = vst [vmem:[#allocation127_spill] sm:$0xff] %v4477_v39 }
 0x26a   :  { %1526 = vmatprep.subr.bf16.mxu0 %v4445_v47  ;;  %1567 = vmatprep.subr.bf16.mxu1 %v4447_v34  ;;  %5985 = vst [vmem:[#allocation124_spill] sm:$0xff] %v4469_v6  ;;  %v281_v34 = vld [vmem:[#allocation2 + $0x410] sm:$0xff]  ;;  %v286_v54 = vld [vmem:[#allocation2 + $0x438] sm:$0xff]  ;;  %5987 = vst [vmem:[#allocation126_spill] sm:$0xff] %v4475_v38 }
 0x26b   :  { %v285_v47 = vld [vmem:[#allocation2 + $0x430] sm:$0xff]  ;;  %v4483_v55 = vcombine.high %v282_v16, %v286_v54  ;;  %v4489_v46 = vcombine.low %v282_v16, %v286_v54 }
 0x26c   :  { %v4481_v50 = vcombine.high %v281_v34, %v285_v47  ;;  %v4487_v15 = vcombine.low %v281_v34, %v285_v47 }
 0x26d   :  { %1527 = vmatpush1.bf16.msra.mxu0 %v4451_v59  ;;  %1568 = vmatpush1.bf16.msra.mxu1 %v4453_v42  ;;  %5990 = vst [vmem:[#allocation129_spill] sm:$0xff] %v4483_v55  ;;  %v290_v42 = vld [vmem:[#allocation2 + $0x458] sm:$0xff]  ;;  %5992 = vst [vmem:[#allocation131_spill] sm:$0xff] %v4489_v46 }
 0x26e   :  { %1528 = vmatprep.subr.bf16.mxu0 %v4457_v40  ;;  %1569 = vmatprep.subr.bf16.mxu1 %v4459_v32  ;;  %5989 = vst [vmem:[#allocation128_spill] sm:$0xff] %v4481_v50  ;;  %v289_v32 = vld [vmem:[#allocation2 + $0x450] sm:$0xff]  ;;  %v294_v59 = vld [vmem:[#allocation2 + $0x478] sm:$0xff]  ;;  %5991 = vst [vmem:[#allocation130_spill] sm:$0xff] %v4487_v15 }
 0x26f   :  { %v293_v40 = vld [vmem:[#allocation2 + $0x470] sm:$0xff]  ;;  %v4495_v58 = vcombine.high %v290_v42, %v294_v59  ;;  %v4501_v54 = vcombine.low %v290_v42, %v294_v59 }
 0x270   :  { %v4493_v48 = vcombine.high %v289_v32, %v293_v40  ;;  %v4499_v47 = vcombine.low %v289_v32, %v293_v40 }
 0x271   :  { %1529 = vmatpush1.bf16.msra.mxu0 %v4463_v0  ;;  %1570 = vmatpush1.bf16.msra.mxu1 %v4465_v14  ;;  %5994 = vst [vmem:[#allocation133_spill] sm:$0xff] %v4495_v58  ;;  %v298_v14 = vld [vmem:[#allocation2 + $0x498] sm:$0xff]  ;;  %5996 = vst [vmem:[#allocation135_spill] sm:$0xff] %v4501_v54 }
 0x272   :  { %1530 = vmatprep.subr.bf16.mxu0 %v4469_v6  ;;  %1571 = vmatprep.subr.bf16.mxu1 %v4471_v31  ;;  %5993 = vst [vmem:[#allocation132_spill] sm:$0xff] %v4493_v48  ;;  %v297_v31 = vld [vmem:[#allocation2 + $0x490] sm:$0xff]  ;;  %v302_v0 = vld [vmem:[#allocation2 + $0x4b8] sm:$0xff]  ;;  %5995 = vst [vmem:[#allocation134_spill] sm:$0xff] %v4499_v47 }
 0x273   :  { %v301_v6 = vld [vmem:[#allocation2 + $0x4b0] sm:$0xff]  ;;  %v4507_v34 = vcombine.high %v298_v14, %v302_v0  ;;  %v4513_v59 = vcombine.low %v298_v14, %v302_v0 }
 0x274   :  { %v4505_v16 = vcombine.high %v297_v31, %v301_v6  ;;  %v4511_v40 = vcombine.low %v297_v31, %v301_v6 }
 0x275   :  { %1531 = vmatpush1.bf16.msra.mxu0 %v4475_v38  ;;  %1572 = vmatpush1.bf16.msra.mxu1 %v4477_v39  ;;  %5998 = vst [vmem:[#allocation137_spill] sm:$0xff] %v4507_v34  ;;  %v306_v39 = vld [vmem:[#allocation2 + $0x4d8] sm:$0xff]  ;;  %6000 = vst [vmem:[#allocation139_spill] sm:$0xff] %v4513_v59 }
 0x276   :  { %1532 = vmatprep.subr.bf16.mxu0 %v4481_v50  ;;  %1573 = vmatprep.subr.bf16.mxu1 %v4483_v55  ;;  %5997 = vst [vmem:[#allocation136_spill] sm:$0xff] %v4505_v16  ;;  %v305_v55 = vld [vmem:[#allocation2 + $0x4d0] sm:$0xff]  ;;  %v310_v38 = vld [vmem:[#allocation2 + $0x4f8] sm:$0xff]  ;;  %5999 = vst [vmem:[#allocation138_spill] sm:$0xff] %v4511_v40 }
 0x277   :  { %v309_v50 = vld [vmem:[#allocation2 + $0x4f0] sm:$0xff]  ;;  %v4519_v32 = vcombine.high %v306_v39, %v310_v38  ;;  %v4525_v0 = vcombine.low %v306_v39, %v310_v38  ;;  %v6010_v38 = vld [vmem:[#allocation46_spill] sm:$0xff] }
 0x278   :  { %v4517_v42 = vcombine.high %v305_v55, %v309_v50  ;;  %v4523_v6 = vcombine.low %v305_v55, %v309_v50  ;;  %v6011_v39 = vld [vmem:[#allocation47_spill] sm:$0xff]  ;;  %v6012_v50 = vld [vmem:[#allocation48_spill] sm:$0xff]  ;;  %v6013_v55 = vld [vmem:[#allocation49_spill] sm:$0xff] }
 0x279   :  { %1533 = vmatpush1.bf16.msra.mxu0 %v4487_v15  ;;  %1574 = vmatpush1.bf16.msra.mxu1 %v4489_v46  ;;  %6002 = vst [vmem:[#allocation141_spill] sm:$0xff] %v4519_v32  ;;  %v314_v46 = vld [vmem:[#allocation2 + $0x518] sm:$0xff]  ;;  %6004 = vst [vmem:[#allocation143_spill] sm:$0xff] %v4525_v0 }
 0x27a   :  { %1534 = vmatprep.subr.bf16.mxu0 %v4493_v48  ;;  %1575 = vmatprep.subr.bf16.mxu1 %v4495_v58  ;;  %6001 = vst [vmem:[#allocation140_spill] sm:$0xff] %v4517_v42  ;;  %v313_v58 = vld [vmem:[#allocation2 + $0x510] sm:$0xff]  ;;  %v318_v15 = vld [vmem:[#allocation2 + $0x538] sm:$0xff]  ;;  %6003 = vst [vmem:[#allocation142_spill] sm:$0xff] %v4523_v6 }
 0x27b   :  { %v317_v48 = vld [vmem:[#allocation2 + $0x530] sm:$0xff]  ;;  %v4531_v31 = vcombine.high %v314_v46, %v318_v15 }
 0x27c   :  { %v4529_v14 = vcombine.high %v313_v58, %v317_v48 }
 0x27d   :  { %1535 = vmatpush1.bf16.msra.mxu0 %v4499_v47  ;;  %1576 = vmatpush1.bf16.msra.mxu1 %v4501_v54  ;;  %6006 = vst [vmem:[#allocation145_spill] sm:$0xff] %v4531_v31 }
 0x27e   :  { %1536 = vmatprep.subr.bf16.mxu0 %v4505_v16  ;;  %1577 = vmatprep.subr.bf16.mxu1 %v4507_v34  ;;  %6005 = vst [vmem:[#allocation144_spill] sm:$0xff] %v4529_v14  ;;  %v4535_v34 = vcombine.low %v313_v58, %v317_v48  ;;  %v6016_v48 = vld [vmem:[#allocation52_spill] sm:$0xff]  ;;  %v6017_v58 = vld [vmem:[#allocation53_spill] sm:$0xff] }
 0x280   :  { %6007 = vst [vmem:[#allocation146_spill] sm:$0xff] %v4535_v34 }
 0x281   :  { %1537 = vmatpush1.bf16.msra.mxu0 %v4511_v40  ;;  %1578 = vmatpush1.bf16.msra.mxu1 %v4513_v59  ;;  %v4537_v40 = vcombine.low %v314_v46, %v318_v15  ;;  %v6014_v15 = vld [vmem:[#allocation50_spill] sm:$0xff]  ;;  %v6015_v46 = vld [vmem:[#allocation51_spill] sm:$0xff] }
 0x282   :  { %1538 = vmatprep.subr.bf16.mxu0 %v4517_v42  ;;  %1579 = vmatprep.subr.bf16.mxu1 %v4519_v32 }
 0x283   :  { %6008 = vst [vmem:[#allocation147_spill] sm:$0xff] %v4537_v40 }
 0x285   :  { %1539 = vmatpush1.bf16.msra.mxu0 %v4523_v6  ;;  %1580 = vmatpush1.bf16.msra.mxu1 %v4525_v0 }
 0x286   :  { %1540 = vmatprep.subr.bf16.mxu0 %v4529_v14  ;;  %1581 = vmatprep.subr.bf16.mxu1 %v4531_v31 }
 0x289   :  { %1541 = vmatpush1.bf16.msra.mxu0 %v4535_v34  ;;  %1582 = vmatpush1.bf16.msra.mxu1 %v4537_v40 }
 0x28a   :  { %1686 = vmatprep.subr.bf16.mxu0 %v4106_v1  ;;  %1727 = vmatprep.subr.bf16.mxu1 %v4108_v3 }
 0x28c   :  { %1543 = vmatmul.mubr.bf16.vlgmr.msra.gmra.mrb[8].mxu0 %v4357_v22  ;;  %1584 = vmatmul.mubr.bf16.vlgmr.msra.gmra.mrb[20].mxu1 %v4357_v22  ;;  %v6009_v22 = vld [vmem:[#allocation45_spill] sm:$0xff] }
 0x28d   :  { %1687 = vmatpush1.bf16.msra.mxu0 %v4110_v4  ;;  %1728 = vmatpush1.bf16.msra.mxu1 %v4112_v5 }
 0x28e   :  { %1688 = vmatprep.subr.bf16.mxu0 %v4118_v9  ;;  %1729 = vmatprep.subr.bf16.mxu1 %v4120_v11 }
 0x291   :  { %1689 = vmatpush1.bf16.msra.mxu0 %v4122_v12  ;;  %1730 = vmatpush1.bf16.msra.mxu1 %v4124_v13 }
 0x292   :  { %1690 = vmatprep.subr.bf16.mxu0 %v4130_v17  ;;  %1731 = vmatprep.subr.bf16.mxu1 %v4132_v19 }
 0x295   :  { %1691 = vmatpush1.bf16.msra.mxu0 %v4134_v20  ;;  %1732 = vmatpush1.bf16.msra.mxu1 %v4136_v21 }
 0x296   :  { %1692 = vmatprep.subr.bf16.mxu0 %v4142_v25  ;;  %1733 = vmatprep.subr.bf16.mxu1 %v4144_v27 }
 0x299   :  { %1693 = vmatpush1.bf16.msra.mxu0 %v4146_v28  ;;  %1734 = vmatpush1.bf16.msra.mxu1 %v4148_v29 }
 0x29a   :  { %1694 = vmatprep.subr.bf16.mxu0 %v4154_v33  ;;  %1735 = vmatprep.subr.bf16.mxu1 %v4156_v35 }
 0x29d   :  { %1695 = vmatpush1.bf16.msra.mxu0 %v4158_v36  ;;  %1736 = vmatpush1.bf16.msra.mxu1 %v4160_v37 }
 0x29e   :  { %1696 = vmatprep.subr.bf16.mxu0 %v4166_v41  ;;  %1737 = vmatprep.subr.bf16.mxu1 %v4168_v43 }
 0x2a1   :  { %1697 = vmatpush1.bf16.msra.mxu0 %v4170_v44  ;;  %1738 = vmatpush1.bf16.msra.mxu1 %v4172_v45 }
 0x2a2   :  { %1698 = vmatprep.subr.bf16.mxu0 %v4178_v49  ;;  %1739 = vmatprep.subr.bf16.mxu1 %v4180_v51 }
 0x2a5   :  { %1699 = vmatpush1.bf16.msra.mxu0 %v4182_v52  ;;  %1740 = vmatpush1.bf16.msra.mxu1 %v4184_v53 }
 0x2a6   :  { %1700 = vmatprep.subr.bf16.mxu0 %v4190_v57  ;;  %1741 = vmatprep.subr.bf16.mxu1 %v4192_v60 }
 0x2a9   :  { %1701 = vmatpush1.bf16.msra.mxu0 %v4194_v61  ;;  %1742 = vmatpush1.bf16.msra.mxu1 %v4196_v62 }
 0x2aa   :  { %1702 = vmatprep.subr.bf16.mxu0 %v4202_v2  ;;  %1743 = vmatprep.subr.bf16.mxu1 %v4204_v7  ;;  %v6036_v2 = vld [vmem:[#allocation80_spill] sm:$0xff] }
 0x2ad   :  { %1703 = vmatpush1.bf16.msra.mxu0 %v4206_v8  ;;  %1744 = vmatpush1.bf16.msra.mxu1 %v4208_v10  ;;  %v6035_v8 = vld [vmem:[#allocation79_spill] sm:$0xff] }
 0x2ae   :  { %1704 = vmatprep.subr.bf16.mxu0 %v4214_v18  ;;  %1745 = vmatprep.subr.bf16.mxu1 %v4216_v23 }
 0x2b1   :  { %1705 = vmatpush1.bf16.msra.mxu0 %v4218_v24  ;;  %1746 = vmatpush1.bf16.msra.mxu1 %v4220_v26  ;;  %v6018_v24 = vld [vmem:[#allocation55_spill] sm:$0xff]  ;;  %v6019_v26 = vld [vmem:[#allocation54_spill] sm:$0xff] }
 0x2b2   :  { %1706 = vmatprep.subr.bf16.mxu0 %v6009_v22  ;;  %1747 = vmatprep.subr.bf16.mxu1 %v6010_v38  ;;  %v6020_v22 = vld [vmem:[#allocation56_spill] sm:$0xff]  ;;  %v6021_v38 = vld [vmem:[#allocation57_spill] sm:$0xff] }
 0x2b5   :  { %1707 = vmatpush1.bf16.msra.mxu0 %v6011_v39  ;;  %1748 = vmatpush1.bf16.msra.mxu1 %v6012_v50  ;;  %v6022_v39 = vld [vmem:[#allocation58_spill] sm:$0xff]  ;;  %v6023_v50 = vld [vmem:[#allocation59_spill] sm:$0xff] }
 0x2b6   :  { %1708 = vmatprep.subr.bf16.mxu0 %v6013_v55  ;;  %1749 = vmatprep.subr.bf16.mxu1 %v6014_v15  ;;  %v6024_v55 = vld [vmem:[#allocation60_spill] sm:$0xff]  ;;  %v6025_v15 = vld [vmem:[#allocation61_spill] sm:$0xff] }
 0x2b9   :  { %1709 = vmatpush1.bf16.msra.mxu0 %v6015_v46  ;;  %1750 = vmatpush1.bf16.msra.mxu1 %v6016_v48  ;;  %v6026_v46 = vld [vmem:[#allocation62_spill] sm:$0xff]  ;;  %v6027_v48 = vld [vmem:[#allocation63_spill] sm:$0xff] }
 0x2ba   :  { %1710 = vmatprep.subr.bf16.mxu0 %v6017_v58  ;;  %1751 = vmatprep.subr.bf16.mxu1 %v6018_v24  ;;  %v6028_v58 = vld [vmem:[#allocation64_spill] sm:$0xff]  ;;  %v6029_v24 = vld [vmem:[#allocation65_spill] sm:$0xff] }
 0x2bd   :  { %1711 = vmatpush1.bf16.msra.mxu0 %v6019_v26  ;;  %1752 = vmatpush1.bf16.msra.mxu1 %v6020_v22  ;;  %v6030_v26 = vld [vmem:[#allocation66_spill] sm:$0xff]  ;;  %v6031_v22 = vld [vmem:[#allocation67_spill] sm:$0xff] }
 0x2be   :  { %1712 = vmatprep.subr.bf16.mxu0 %v6021_v38  ;;  %1753 = vmatprep.subr.bf16.mxu1 %v6022_v39  ;;  %v6032_v38 = vld [vmem:[#allocation68_spill] sm:$0xff]  ;;  %v6033_v39 = vld [vmem:[#allocation69_spill] sm:$0xff] }
 0x2c1   :  { %1713 = vmatpush1.bf16.msra.mxu0 %v6023_v50  ;;  %1754 = vmatpush1.bf16.msra.mxu1 %v6024_v55  ;;  %v6034_v50 = vld [vmem:[#allocation70_spill] sm:$0xff] }
 0x2c2   :  { %1714 = vmatprep.subr.bf16.mxu0 %v6025_v15  ;;  %1755 = vmatprep.subr.bf16.mxu1 %v6026_v46 }
 0x2c5   :  { %1715 = vmatpush1.bf16.msra.mxu0 %v6027_v48  ;;  %1756 = vmatpush1.bf16.msra.mxu1 %v6028_v58 }
 0x2c6   :  { %1716 = vmatprep.subr.bf16.mxu0 %v6029_v24  ;;  %1757 = vmatprep.subr.bf16.mxu1 %v6030_v26 }
 0x2c9   :  { %1717 = vmatpush1.bf16.msra.mxu0 %v6031_v22  ;;  %1758 = vmatpush1.bf16.msra.mxu1 %v6032_v38 }
 0x2ca   :  { %1768 = vmatprep.subr.bf16.mxu0 %v6033_v39  ;;  %1809 = vmatprep.subr.bf16.mxu1 %v6034_v50 }
 0x31f   :  { %v1462_v55 = vpop.f32.mrb[4].mxu0  ;;  %v1503_v15 = vpop.f32.mrb[16].mxu1 }
 0x320   :  { %v1602_v23 = vrot.slane %v1503_v15, 6  ;;  %v1464_v46 = vpop.f32.mrb[5].mxu0  ;;  %v1505_v18 = vpop.f32.mrb[17].mxu1 }
 0x321   :  { %v1603_v48 = vrot.slane %v1505_v18, 6  ;;  %v1466_v10 = vpop.f32.mrb[6].mxu0  ;;  %v1507_v58 = vpop.f32.mrb[18].mxu1  ;;  %v1664_v18 = vrot.slane %v4351_v63, 6 }
 0x322   :  { %v1618_v24 = vadd.f32 %v1602_v23, %v6035_v8  ;;  %v1467_v7 = vpop.f32.mrb[7].mxu0  ;;  %v1508_v26 = vpop.f32.mrb[19].mxu1  ;;  %v1665_v23 = vrot.slane %v4353_v30, 6  ;;  %v1600_v8 = vrot.slane %v1462_v55, 6 }
 0x323   :  { %v1619_v22 = vadd.f32 %v1603_v48, %v6036_v2  ;;  %v1601_v48 = vrot.slane %v1464_v46, 6 }
 0x324   :  { %v3522_v62 = vmul.f32 -1.442695, %v1618_v24  ;;  %v6037_v24 = vld [vmem:[#allocation77_spill] sm:$0xff] }
 0x325   :  { %v3523_v38 = vmul.f32 -1.442695, %v1619_v22  ;;  %v1616_v22 = vadd.f32 %v1600_v8, %v6037_v24 }
 0x326   :  { %3701 = vpow2.f32 %v3522_v62  ;;  %v6038_v62 = vld [vmem:[#allocation78_spill] sm:$0xff] }
 0x327   :  { %3703 = vpow2.f32 %v3523_v38  ;;  %v1617_v38 = vadd.f32 %v1601_v48, %v6038_v62  ;;  %v3520_v2 = vmul.f32 -1.442695, %v1616_v22  ;;  %v6039_v22 = vld [vmem:[#allocation84_spill] sm:$0xff]  ;;  %v6041_v62 = vld [vmem:[#allocation85_spill] sm:$0xff] }
 0x330   :  { %v3702_v39 = vpop.eup %3701 }
 0x331   :  { %v1644_v50 = vadd.f32 1.0, %v3702_v39  ;;  %v3704_v61 = vpop.eup %3703  ;;  %v3521_v39 = vmul.f32 -1.442695, %v1617_v38 }
 0x332   :  { %v1645_v15 = vadd.f32 1.0, %v3704_v61 }
 0x333   :  { %3705 = vrcp.f32 %v1644_v50 }
 0x334   :  { %3707 = vrcp.f32 %v1645_v15 }
 0x335   :  { %3709 = vpow2.f32 %v3520_v2 }
 0x336   :  { %3711 = vpow2.f32 %v3521_v39 }
 0x33d   :  { %v3706_v10 = vpop.eup %3705 }
 0x33e   :  { %v1668_v58 = vmul.f32 %v3706_v10, %v1664_v18  ;;  %v3708_v7 = vpop.eup %3707 }
 0x33f   :  { %v1669_v26 = vmul.f32 %v3708_v7, %v1665_v23  ;;  %v3710_v61 = vpop.eup %3709 }
 0x340   :  { %v3712_v50 = vpop.eup %3711  ;;  %v1642_v15 = vadd.f32 1.0, %v3710_v61  ;;  %v6040_v61 = vld [vmem:[#allocation83_spill] sm:$0xff] }
 0x341   :  { %v1643_v63 = vadd.f32 1.0, %v3712_v50 }
 0x342   :  { %3713 = vrcp.f32 %v1642_v15 }
 0x343   :  { %3715 = vrcp.f32 %v1643_v63 }
 0x35f   :  { %v1544_v60 = vpop.f32.mrb[8].mxu0  ;;  %v1585_v18 = vpop.f32.mrb[20].mxu1 }
 0x360   :  { %v1604_v10 = vrot.slane %v1544_v60, 6  ;;  %v1606_v30 = vrot.slane %v1585_v18, 6  ;;  %v1546_v57 = vpop.f32.mrb[9].mxu0  ;;  %v1587_v23 = vpop.f32.mrb[21].mxu1 }
 0x361   :  { %v1605_v55 = vrot.slane %v1546_v57, 6  ;;  %v1607_v46 = vrot.slane %v1587_v23, 6  ;;  %v1548_v7 = vpop.f32.mrb[10].mxu0  ;;  %v1589_v8 = vpop.f32.mrb[22].mxu1 }
 0x362   :  { %v1620_v48 = vadd.f32 %v1604_v10, %v4335_v56  ;;  %v1622_v2 = vadd.f32 %v1606_v30, %v6039_v22  ;;  %v1549_v38 = vpop.f32.mrb[11].mxu0  ;;  %v1590_v39 = vpop.f32.mrb[23].mxu1 }
 0x363   :  { %v1621_v50 = vadd.f32 %v1605_v55, %v6040_v61  ;;  %v1623_v24 = vadd.f32 %v1607_v46, %v6041_v62  ;;  %v3714_v57 = vpop.eup %3713 }
 0x364   :  { %v3524_v60 = vmul.f32 -1.442695, %v1620_v48  ;;  %3717 = vtanh.f32 %v1622_v2  ;;  %v3716_v23 = vpop.eup %3715 }
 0x365   :  { %v3525_v18 = vmul.f32 -1.442695, %v1621_v50  ;;  %3719 = vtanh.f32 %v1623_v24 }
 0x366   :  { %3721 = vpow2.f32 %v3524_v60 }
 0x367   :  { %3723 = vpow2.f32 %v3525_v18 }
 0x36e   :  { %v3718_v15 = vpop.eup %3717 }
 0x36f   :  { %v3720_v7 = vpop.eup %3719  ;;  %v1670_v10 = vmul.f32 %v3718_v15, %v3714_v57  ;;  %v6043_v15 = vld [vmem:[#allocation72_spill] sm:$0xff] }
 0x370   :  { %v3722_v8 = vpop.eup %3721  ;;  %v1671_v30 = vmul.f32 %v3720_v7, %v3716_v23  ;;  %v6044_v7 = vld [vmem:[#allocation88_spill] sm:$0xff] }
 0x371   :  { %v3724_v38 = vpop.eup %3723  ;;  %v1646_v39 = vadd.f32 1.0, %v3722_v8  ;;  %v4621_v63 = vadd.f32 %v1670_v10, %v1668_v58  ;;  %v6045_v10 = vld [vmem:[#allocation89_spill] sm:$0xff]  ;;  %v6046_v8 = vld [vmem:[#allocation90_spill] sm:$0xff] }
 0x372   :  { %v1647_v55 = vadd.f32 1.0, %v3724_v38  ;;  %v4623_v61 = vadd.f32 %v1671_v30, %v1669_v26  ;;  %v6042_v26 = vld [vmem:[#allocation71_spill] sm:$0xff]  ;;  %v6048_v38 = vld [vmem:[#allocation92_spill] sm:$0xff] }
 0x373   :  { %3725 = vrcp.f32 %v1646_v39  ;;  %v6047_v30 = vld [vmem:[#allocation91_spill] sm:$0xff]  ;;  %v6049_v39 = vld [vmem:[#allocation93_spill] sm:$0xff] }
 0x374   :  { %3727 = vtanh.f32 %v4621_v63 }
 0x375   :  { %3729 = vrcp.f32 %v1647_v55  ;;  %v6050_v55 = vld [vmem:[#allocation94_spill] sm:$0xff] }
 0x376   :  { %3731 = vtanh.f32 %v4623_v61 }
 0x37d   :  { %v3726_v24 = vpop.eup %3725 }
 0x37e   :  { %v3728_v46 = vpop.eup %3727 }
 0x37f   :  { %v3730_v48 = vpop.eup %3729  ;;  %v1676_v2 = vmul.f32 %v3728_v46, %v3726_v24  ;;  %v6051_v24 = vld [vmem:[#allocation95_spill] sm:$0xff]  ;;  %v6052_v46 = vld [vmem:[#allocation96_spill] sm:$0xff] }
 0x380   :  { %v3732_v50 = vpop.eup %3731 }
 0x381   :  { %v1677_v60 = vmul.f32 %v3732_v50, %v3730_v48  ;;  %v1678_v18 = vpack.c.bf16 %v1676_v2, %v1676_v2  ;;  %v6053_v48 = vld [vmem:[#allocation97_spill] sm:$0xff]  ;;  %v6054_v2 = vld [vmem:[#allocation98_spill] sm:$0xff]  ;;  %v6055_v50 = vld [vmem:[#allocation99_spill] sm:$0xff] }
 0x383   :  { %v1679_v57 = vpack.c.bf16 %v1677_v60, %v1677_v60  ;;  %v4627_v58 = vrot.slane %v1678_v18, 1  ;;  %v6056_v60 = vld [vmem:[#allocation100_spill] sm:$0xff]  ;;  %v6057_v18 = vld [vmem:[#allocation101_spill] sm:$0xff] }
 0x385   :  { %v1683_v23 = vrot.slane %v1679_v57, 1  ;;  %v6058_v57 = vld [vmem:[#allocation102_spill] sm:$0xff] }
 0x387   :  { %1718 = vmatprep.mubr.bf16.mxu0 %v1683_v23  ;;  %1759 = vmatprep.mubr.bf16.mxu1 %v1683_v23 }
 0x388   :  { %1719 = vmatmul.mubr.bf16.vlgmr.msra.gmra.mrb[12].mxu0 %v4627_v58  ;;  %1760 = vmatmul.mubr.bf16.vlgmr.msra.gmra.mrb[24].mxu1 %v4627_v58 }
 0x389   :  { %1769 = vmatpush1.bf16.msra.mxu0 %v6042_v26  ;;  %1810 = vmatpush1.bf16.msra.mxu1 %v6043_v15 }
 0x38a   :  { %1800 = vmatprep.mubr.bf16.mxu0 %v1683_v23  ;;  %1841 = vmatprep.mubr.bf16.mxu1 %v1683_v23  ;;  %v6059_v23 = vld [vmem:[#allocation103_spill] sm:$0xff] }
 0x38b   :  { %1770 = vmatprep.subr.bf16.mxu0 %v6044_v7  ;;  %1811 = vmatprep.subr.bf16.mxu1 %v6045_v10 }
 0x38d   :  { %1771 = vmatpush1.bf16.msra.mxu0 %v6046_v8  ;;  %1812 = vmatpush1.bf16.msra.mxu1 %v6047_v30 }
 0x38e   :  { %1772 = vmatprep.subr.bf16.mxu0 %v6048_v38  ;;  %1813 = vmatprep.subr.bf16.mxu1 %v6049_v39  ;;  %v6060_v39 = vld [vmem:[#allocation104_spill] sm:$0xff] }
 0x391   :  { %1773 = vmatpush1.bf16.msra.mxu0 %v6050_v55  ;;  %1814 = vmatpush1.bf16.msra.mxu1 %v6051_v24  ;;  %v6061_v55 = vld [vmem:[#allocation105_spill] sm:$0xff]  ;;  %v6062_v24 = vld [vmem:[#allocation106_spill] sm:$0xff] }
 0x392   :  { %1774 = vmatprep.subr.bf16.mxu0 %v6052_v46  ;;  %1815 = vmatprep.subr.bf16.mxu1 %v6053_v48  ;;  %v6063_v46 = vld [vmem:[#allocation107_spill] sm:$0xff]  ;;  %v6064_v48 = vld [vmem:[#allocation108_spill] sm:$0xff] }
 0x395   :  { %1775 = vmatpush1.bf16.msra.mxu0 %v6054_v2  ;;  %1816 = vmatpush1.bf16.msra.mxu1 %v6055_v50  ;;  %v6065_v2 = vld [vmem:[#allocation109_spill] sm:$0xff]  ;;  %v6066_v50 = vld [vmem:[#allocation110_spill] sm:$0xff] }
 0x396   :  { %1776 = vmatprep.subr.bf16.mxu0 %v6056_v60  ;;  %1817 = vmatprep.subr.bf16.mxu1 %v6057_v18  ;;  %v6067_v60 = vld [vmem:[#allocation111_spill] sm:$0xff]  ;;  %v6068_v18 = vld [vmem:[#allocation112_spill] sm:$0xff] }
 0x399   :  { %1777 = vmatpush1.bf16.msra.mxu0 %v6058_v57  ;;  %1818 = vmatpush1.bf16.msra.mxu1 %v6059_v23  ;;  %v6069_v57 = vld [vmem:[#allocation113_spill] sm:$0xff]  ;;  %v6070_v23 = vld [vmem:[#allocation114_spill] sm:$0xff] }
 0x39a   :  { %1778 = vmatprep.subr.bf16.mxu0 %v6060_v39  ;;  %1819 = vmatprep.subr.bf16.mxu1 %v6061_v55  ;;  %v6071_v39 = vld [vmem:[#allocation115_spill] sm:$0xff]  ;;  %v6072_v55 = vld [vmem:[#allocation116_spill] sm:$0xff] }
 0x39d   :  { %1779 = vmatpush1.bf16.msra.mxu0 %v6062_v24  ;;  %1820 = vmatpush1.bf16.msra.mxu1 %v6063_v46  ;;  %v6073_v24 = vld [vmem:[#allocation117_spill] sm:$0xff]  ;;  %v6074_v46 = vld [vmem:[#allocation118_spill] sm:$0xff] }
 0x39e   :  { %1780 = vmatprep.subr.bf16.mxu0 %v6064_v48  ;;  %1821 = vmatprep.subr.bf16.mxu1 %v6065_v2  ;;  %v6075_v48 = vld [vmem:[#allocation119_spill] sm:$0xff]  ;;  %v6076_v2 = vld [vmem:[#allocation120_spill] sm:$0xff] }
 0x3a1   :  { %1781 = vmatpush1.bf16.msra.mxu0 %v6066_v50  ;;  %1822 = vmatpush1.bf16.msra.mxu1 %v6067_v60  ;;  %v6077_v50 = vld [vmem:[#allocation121_spill] sm:$0xff]  ;;  %v6078_v60 = vld [vmem:[#allocation122_spill] sm:$0xff] }
 0x3a2   :  { %1782 = vmatprep.subr.bf16.mxu0 %v6068_v18  ;;  %1823 = vmatprep.subr.bf16.mxu1 %v6069_v57  ;;  %v6079_v18 = vld [vmem:[#allocation123_spill] sm:$0xff]  ;;  %v6080_v57 = vld [vmem:[#allocation124_spill] sm:$0xff] }
 0x3a5   :  { %1783 = vmatpush1.bf16.msra.mxu0 %v6070_v23  ;;  %1824 = vmatpush1.bf16.msra.mxu1 %v6071_v39  ;;  %v6081_v23 = vld [vmem:[#allocation125_spill] sm:$0xff]  ;;  %v6082_v39 = vld [vmem:[#allocation126_spill] sm:$0xff] }
 0x3a6   :  { %1784 = vmatprep.subr.bf16.mxu0 %v6072_v55  ;;  %1825 = vmatprep.subr.bf16.mxu1 %v6073_v24  ;;  %v6083_v55 = vld [vmem:[#allocation127_spill] sm:$0xff]  ;;  %v6084_v24 = vld [vmem:[#allocation128_spill] sm:$0xff] }
 0x3a9   :  { %1785 = vmatpush1.bf16.msra.mxu0 %v6074_v46  ;;  %1826 = vmatpush1.bf16.msra.mxu1 %v6075_v48  ;;  %v6085_v46 = vld [vmem:[#allocation129_spill] sm:$0xff]  ;;  %v6086_v48 = vld [vmem:[#allocation130_spill] sm:$0xff] }
 0x3aa   :  { %1786 = vmatprep.subr.bf16.mxu0 %v6076_v2  ;;  %1827 = vmatprep.subr.bf16.mxu1 %v6077_v50  ;;  %v6087_v2 = vld [vmem:[#allocation131_spill] sm:$0xff]  ;;  %v6088_v50 = vld [vmem:[#allocation132_spill] sm:$0xff] }
 0x3ad   :  { %1787 = vmatpush1.bf16.msra.mxu0 %v6078_v60  ;;  %1828 = vmatpush1.bf16.msra.mxu1 %v6079_v18  ;;  %v6089_v60 = vld [vmem:[#allocation133_spill] sm:$0xff] }
 0x3ae   :  { %1788 = vmatprep.subr.bf16.mxu0 %v6080_v57  ;;  %1829 = vmatprep.subr.bf16.mxu1 %v6081_v23 }
 0x3b1   :  { %1789 = vmatpush1.bf16.msra.mxu0 %v6082_v39  ;;  %1830 = vmatpush1.bf16.msra.mxu1 %v6083_v55  ;;  %v6090_v39 = vld [vmem:[#allocation137_spill] sm:$0xff]  ;;  %v6091_v55 = vld [vmem:[#allocation138_spill] sm:$0xff] }
 0x3b2   :  { %1790 = vmatprep.subr.bf16.mxu0 %v6084_v24  ;;  %1831 = vmatprep.subr.bf16.mxu1 %v6085_v46 }
 0x3b5   :  { %1791 = vmatpush1.bf16.msra.mxu0 %v6086_v48  ;;  %1832 = vmatpush1.bf16.msra.mxu1 %v6087_v2 }
 0x3b6   :  { %1792 = vmatprep.subr.bf16.mxu0 %v6088_v50  ;;  %1833 = vmatprep.subr.bf16.mxu1 %v6089_v60 }
 0x3b9   :  { %1793 = vmatpush1.bf16.msra.mxu0 %v4499_v47  ;;  %1834 = vmatpush1.bf16.msra.mxu1 %v4501_v54 }
 0x3ba   :  { %1794 = vmatprep.subr.bf16.mxu0 %v4505_v16  ;;  %1835 = vmatprep.subr.bf16.mxu1 %v6090_v39 }
 0x3bd   :  { %1795 = vmatpush1.bf16.msra.mxu0 %v6091_v55  ;;  %1836 = vmatpush1.bf16.msra.mxu1 %v4513_v59 }
 0x3be   :  { %1796 = vmatprep.subr.bf16.mxu0 %v4517_v42  ;;  %1837 = vmatprep.subr.bf16.mxu1 %v4519_v32 }
 0x3c1   :  { %1797 = vmatpush1.bf16.msra.mxu0 %v4523_v6  ;;  %1838 = vmatpush1.bf16.msra.mxu1 %v4525_v0 }
 0x3c2   :  { %1798 = vmatprep.subr.bf16.mxu0 %v4529_v14  ;;  %1839 = vmatprep.subr.bf16.mxu1 %v4531_v31 }
 0x3c5   :  { %1799 = vmatpush1.bf16.msra.mxu0 %v4535_v34  ;;  %1840 = vmatpush1.bf16.msra.mxu1 %v4537_v40 }
 0x3c6   :  { %1944 = vmatprep.subr.bf16.mxu0 %v4106_v1  ;;  %1985 = vmatprep.subr.bf16.mxu1 %v4108_v3 }
 0x3c8   :  { %1801 = vmatmul.mubr.bf16.vlgmr.msra.gmra.mrb[16].mxu0 %v4627_v58  ;;  %1842 = vmatmul.mubr.bf16.vlgmr.msra.gmra.mrb[28].mxu1 %v4627_v58  ;;  %v6092_v58 = vld [vmem:[#allocation33_spill] sm:$0xff] }
 0x3c9   :  { %1945 = vmatpush1.bf16.msra.mxu0 %v4110_v4  ;;  %1986 = vmatpush1.bf16.msra.mxu1 %v4112_v5 }
 0x3ca   :  { %1946 = vmatprep.subr.bf16.mxu0 %v4118_v9  ;;  %1987 = vmatprep.subr.bf16.mxu1 %v4120_v11 }
 0x3cd   :  { %1947 = vmatpush1.bf16.msra.mxu0 %v4122_v12  ;;  %1988 = vmatpush1.bf16.msra.mxu1 %v4124_v13 }
 0x3ce   :  { %1948 = vmatprep.subr.bf16.mxu0 %v4130_v17  ;;  %1989 = vmatprep.subr.bf16.mxu1 %v4132_v19 }
 0x3d1   :  { %1949 = vmatpush1.bf16.msra.mxu0 %v4134_v20  ;;  %1990 = vmatpush1.bf16.msra.mxu1 %v4136_v21 }
 0x3d2   :  { %1950 = vmatprep.subr.bf16.mxu0 %v4142_v25  ;;  %1991 = vmatprep.subr.bf16.mxu1 %v4144_v27  ;;  %v6131_v25 = vld [vmem:[#allocation80_spill] sm:$0xff] }
 0x3d5   :  { %1951 = vmatpush1.bf16.msra.mxu0 %v4146_v28  ;;  %1992 = vmatpush1.bf16.msra.mxu1 %v4148_v29  ;;  %v6130_v28 = vld [vmem:[#allocation79_spill] sm:$0xff] }
 0x3d6   :  { %1952 = vmatprep.subr.bf16.mxu0 %v4154_v33  ;;  %1993 = vmatprep.subr.bf16.mxu1 %v4156_v35 }
 0x3d9   :  { %1953 = vmatpush1.bf16.msra.mxu0 %v4158_v36  ;;  %1994 = vmatpush1.bf16.msra.mxu1 %v4160_v37  ;;  %v6093_v36 = vld [vmem:[#allocation34_spill] sm:$0xff]  ;;  %v6094_v37 = vld [vmem:[#allocation35_spill] sm:$0xff] }
 0x3da   :  { %1954 = vmatprep.subr.bf16.mxu0 %v4166_v41  ;;  %1995 = vmatprep.subr.bf16.mxu1 %v4168_v43  ;;  %v6095_v41 = vld [vmem:[#allocation36_spill] sm:$0xff]  ;;  %v6096_v43 = vld [vmem:[#allocation37_spill] sm:$0xff] }
 0x3dd   :  { %1955 = vmatpush1.bf16.msra.mxu0 %v4170_v44  ;;  %1996 = vmatpush1.bf16.msra.mxu1 %v4172_v45  ;;  %v6097_v44 = vld [vmem:[#allocation38_spill] sm:$0xff]  ;;  %v6098_v45 = vld [vmem:[#allocation39_spill] sm:$0xff] }
 0x3de   :  { %1956 = vmatprep.subr.bf16.mxu0 %v4178_v49  ;;  %1997 = vmatprep.subr.bf16.mxu1 %v4180_v51  ;;  %v6099_v49 = vld [vmem:[#allocation40_spill] sm:$0xff]  ;;  %v6100_v51 = vld [vmem:[#allocation41_spill] sm:$0xff] }
 0x3e1   :  { %1957 = vmatpush1.bf16.msra.mxu0 %v4182_v52  ;;  %1998 = vmatpush1.bf16.msra.mxu1 %v4184_v53  ;;  %v6101_v52 = vld [vmem:[#allocation42_spill] sm:$0xff]  ;;  %v6102_v53 = vld [vmem:[#allocation43_spill] sm:$0xff] }
 0x3e2   :  { %1958 = vmatprep.subr.bf16.mxu0 %v6092_v58  ;;  %1999 = vmatprep.subr.bf16.mxu1 %v6093_v36  ;;  %v6103_v58 = vld [vmem:[#allocation44_spill] sm:$0xff]  ;;  %v6104_v36 = vld [vmem:[#allocation45_spill] sm:$0xff] }
 0x3e5   :  { %1959 = vmatpush1.bf16.msra.mxu0 %v6094_v37  ;;  %2000 = vmatpush1.bf16.msra.mxu1 %v6095_v41  ;;  %v6105_v37 = vld [vmem:[#allocation46_spill] sm:$0xff]  ;;  %v6106_v41 = vld [vmem:[#allocation47_spill] sm:$0xff] }
 0x3e6   :  { %1960 = vmatprep.subr.bf16.mxu0 %v6096_v43  ;;  %2001 = vmatprep.subr.bf16.mxu1 %v6097_v44  ;;  %v6107_v43 = vld [vmem:[#allocation48_spill] sm:$0xff]  ;;  %v6108_v44 = vld [vmem:[#allocation49_spill] sm:$0xff] }
 0x3e9   :  { %1961 = vmatpush1.bf16.msra.mxu0 %v6098_v45  ;;  %2002 = vmatpush1.bf16.msra.mxu1 %v6099_v49  ;;  %v6109_v45 = vld [vmem:[#allocation50_spill] sm:$0xff]  ;;  %v6110_v49 = vld [vmem:[#allocation51_spill] sm:$0xff] }
 0x3ea   :  { %1962 = vmatprep.subr.bf16.mxu0 %v6100_v51  ;;  %2003 = vmatprep.subr.bf16.mxu1 %v6101_v52  ;;  %v6111_v51 = vld [vmem:[#allocation52_spill] sm:$0xff]  ;;  %v6112_v52 = vld [vmem:[#allocation53_spill] sm:$0xff] }
 0x3ed   :  { %1963 = vmatpush1.bf16.msra.mxu0 %v6102_v53  ;;  %2004 = vmatpush1.bf16.msra.mxu1 %v6103_v58  ;;  %v6113_v53 = vld [vmem:[#allocation55_spill] sm:$0xff]  ;;  %v6114_v58 = vld [vmem:[#allocation54_spill] sm:$0xff] }
 0x3ee   :  { %1964 = vmatprep.subr.bf16.mxu0 %v6104_v36  ;;  %2005 = vmatprep.subr.bf16.mxu1 %v6105_v37  ;;  %v6115_v36 = vld [vmem:[#allocation56_spill] sm:$0xff]  ;;  %v6116_v37 = vld [vmem:[#allocation57_spill] sm:$0xff] }
 0x3f1   :  { %1965 = vmatpush1.bf16.msra.mxu0 %v6106_v41  ;;  %2006 = vmatpush1.bf16.msra.mxu1 %v6107_v43  ;;  %v6117_v41 = vld [vmem:[#allocation58_spill] sm:$0xff]  ;;  %v6118_v43 = vld [vmem:[#allocation59_spill] sm:$0xff] }
 0x3f2   :  { %1966 = vmatprep.subr.bf16.mxu0 %v6108_v44  ;;  %2007 = vmatprep.subr.bf16.mxu1 %v6109_v45  ;;  %v6119_v44 = vld [vmem:[#allocation60_spill] sm:$0xff]  ;;  %v6120_v45 = vld [vmem:[#allocation61_spill] sm:$0xff] }
 0x3f5   :  { %1967 = vmatpush1.bf16.msra.mxu0 %v6110_v49  ;;  %2008 = vmatpush1.bf16.msra.mxu1 %v6111_v51  ;;  %v6121_v49 = vld [vmem:[#allocation62_spill] sm:$0xff]  ;;  %v6122_v51 = vld [vmem:[#allocation63_spill] sm:$0xff] }
 0x3f6   :  { %1968 = vmatprep.subr.bf16.mxu0 %v6112_v52  ;;  %2009 = vmatprep.subr.bf16.mxu1 %v6113_v53  ;;  %v6123_v52 = vld [vmem:[#allocation64_spill] sm:$0xff]  ;;  %v6124_v53 = vld [vmem:[#allocation65_spill] sm:$0xff] }
 0x3f9   :  { %1969 = vmatpush1.bf16.msra.mxu0 %v6114_v58  ;;  %2010 = vmatpush1.bf16.msra.mxu1 %v6115_v36  ;;  %v6125_v58 = vld [vmem:[#allocation66_spill] sm:$0xff]  ;;  %v6126_v36 = vld [vmem:[#allocation67_spill] sm:$0xff] }
 0x3fa   :  { %1970 = vmatprep.subr.bf16.mxu0 %v6116_v37  ;;  %2011 = vmatprep.subr.bf16.mxu1 %v6117_v41  ;;  %v6127_v37 = vld [vmem:[#allocation68_spill] sm:$0xff]  ;;  %v6128_v41 = vld [vmem:[#allocation69_spill] sm:$0xff] }
 0x3fd   :  { %1971 = vmatpush1.bf16.msra.mxu0 %v6118_v43  ;;  %2012 = vmatpush1.bf16.msra.mxu1 %v6119_v44  ;;  %v6129_v43 = vld [vmem:[#allocation70_spill] sm:$0xff] }
 0x3fe   :  { %1972 = vmatprep.subr.bf16.mxu0 %v6120_v45  ;;  %2013 = vmatprep.subr.bf16.mxu1 %v6121_v49 }
 0x401   :  { %1973 = vmatpush1.bf16.msra.mxu0 %v6122_v51  ;;  %2014 = vmatpush1.bf16.msra.mxu1 %v6123_v52 }
 0x402   :  { %1974 = vmatprep.subr.bf16.mxu0 %v6124_v53  ;;  %2015 = vmatprep.subr.bf16.mxu1 %v6125_v58 }
 0x405   :  { %1975 = vmatpush1.bf16.msra.mxu0 %v6126_v36  ;;  %2016 = vmatpush1.bf16.msra.mxu1 %v6127_v37 }
 0x406   :  { %2026 = vmatprep.subr.bf16.mxu0 %v6128_v41  ;;  %2067 = vmatprep.subr.bf16.mxu1 %v6129_v43 }
 0x45b   :  { %v1720_v44 = vpop.f32.mrb[12].mxu0  ;;  %v1761_v45 = vpop.f32.mrb[24].mxu1 }
 0x45c   :  { %v1860_v35 = vrot.slane %v1761_v45, 4  ;;  %v1722_v49 = vpop.f32.mrb[13].mxu0  ;;  %v1763_v33 = vpop.f32.mrb[25].mxu1 }
 0x45d   :  { %v1861_v51 = vrot.slane %v1763_v33, 4  ;;  %v1724_v29 = vpop.f32.mrb[14].mxu0  ;;  %v1765_v52 = vpop.f32.mrb[26].mxu1  ;;  %v1922_v33 = vrot.slane %v4621_v63, 6 }
 0x45e   :  { %v1876_v53 = vadd.f32 %v1860_v35, %v6130_v28  ;;  %v1725_v27 = vpop.f32.mrb[15].mxu0  ;;  %v1766_v58 = vpop.f32.mrb[27].mxu1  ;;  %v1923_v52 = vrot.slane %v4623_v61, 6  ;;  %v1858_v28 = vrot.slane %v1720_v44, 4 }
 0x45f   :  { %v1877_v36 = vadd.f32 %v1861_v51, %v6131_v25  ;;  %v1859_v51 = vrot.slane %v1722_v49, 4 }
 0x460   :  { %v3528_v21 = vmul.f32 -1.442695, %v1876_v53  ;;  %v6132_v53 = vld [vmem:[#allocation77_spill] sm:$0xff] }
 0x461   :  { %v3529_v37 = vmul.f32 -1.442695, %v1877_v36  ;;  %v1874_v36 = vadd.f32 %v1858_v28, %v6132_v53 }
 0x462   :  { %3733 = vpow2.f32 %v3528_v21  ;;  %v6133_v21 = vld [vmem:[#allocation78_spill] sm:$0xff] }
 0x463   :  { %3735 = vpow2.f32 %v3529_v37  ;;  %v1875_v37 = vadd.f32 %v1859_v51, %v6133_v21  ;;  %v3526_v25 = vmul.f32 -1.442695, %v1874_v36 }
 0x46c   :  { %v3734_v41 = vpop.eup %3733 }
 0x46d   :  { %v1902_v43 = vadd.f32 1.0, %v3734_v41  ;;  %v3736_v20 = vpop.eup %3735  ;;  %v3527_v41 = vmul.f32 -1.442695, %v1875_v37 }
 0x46e   :  { %v1903_v45 = vadd.f32 1.0, %v3736_v20 }
 0x46f   :  { %3737 = vrcp.f32 %v1902_v43 }
 0x470   :  { %3739 = vrcp.f32 %v1903_v45 }
 0x471   :  { %3741 = vpow2.f32 %v3526_v25 }
 0x472   :  { %3743 = vpow2.f32 %v3527_v41  ;;  %v6134_v41 = vld [vmem:[#allocation83_spill] sm:$0xff] }
 0x479   :  { %v3738_v29 = vpop.eup %3737 }
 0x47a   :  { %v1926_v35 = vmul.f32 %v3738_v29, %v1922_v33  ;;  %v3740_v27 = vpop.eup %3739 }
 0x47b   :  { %v1927_v58 = vmul.f32 %v3740_v27, %v1923_v52  ;;  %v3742_v20 = vpop.eup %3741 }
 0x47c   :  { %v3744_v43 = vpop.eup %3743  ;;  %v1900_v45 = vadd.f32 1.0, %v3742_v20 }
 0x47d   :  { %v1901_v63 = vadd.f32 1.0, %v3744_v43 }
 0x47e   :  { %3745 = vrcp.f32 %v1900_v45 }
 0x47f   :  { %3747 = vrcp.f32 %v1901_v63 }
 0x49b   :  { %v1802_v19 = vpop.f32.mrb[16].mxu0  ;;  %v1843_v17 = vpop.f32.mrb[28].mxu1 }
 0x49c   :  { %v1862_v61 = vrot.slane %v1802_v19, 4  ;;  %v1864_v33 = vrot.slane %v1843_v17, 4  ;;  %v1804_v29 = vpop.f32.mrb[17].mxu0  ;;  %v1845_v52 = vpop.f32.mrb[29].mxu1 }
 0x49d   :  { %v1863_v44 = vrot.slane %v1804_v29, 4  ;;  %v1865_v49 = vrot.slane %v1845_v52, 4  ;;  %v1806_v27 = vpop.f32.mrb[18].mxu0  ;;  %v1847_v28 = vpop.f32.mrb[30].mxu1 }
 0x49e   :  { %v1878_v51 = vadd.f32 %v1862_v61, %v4335_v56  ;;  %v1880_v25 = vadd.f32 %v1864_v33, %v6039_v22  ;;  %v1807_v36 = vpop.f32.mrb[19].mxu0  ;;  %v1848_v37 = vpop.f32.mrb[31].mxu1 }
 0x49f   :  { %v1879_v20 = vadd.f32 %v1863_v44, %v6134_v41  ;;  %v1881_v43 = vadd.f32 %v1865_v49, %v6041_v62  ;;  %v3746_v29 = vpop.eup %3745 }
 0x4a0   :  { %v3530_v19 = vmul.f32 -1.442695, %v1878_v51  ;;  %3749 = vtanh.f32 %v1880_v25  ;;  %v3748_v52 = vpop.eup %3747 }
 0x4a1   :  { %v3531_v17 = vmul.f32 -1.442695, %v1879_v20  ;;  %3751 = vtanh.f32 %v1881_v43 }
 0x4a2   :  { %3753 = vpow2.f32 %v3530_v19 }
 0x4a3   :  { %3755 = vpow2.f32 %v3531_v17 }
 0x4aa   :  { %v3750_v45 = vpop.eup %3749 }
 0x4ab   :  { %v3752_v27 = vpop.eup %3751  ;;  %v1928_v61 = vmul.f32 %v3750_v45, %v3746_v29  ;;  %v6136_v45 = vld [vmem:[#allocation94_spill] sm:$0xff] }
 0x4ac   :  { %v3754_v28 = vpop.eup %3753  ;;  %v1929_v33 = vmul.f32 %v3752_v27, %v3748_v52  ;;  %v6137_v27 = vld [vmem:[#allocation95_spill] sm:$0xff] }
 0x4ad   :  { %v3756_v36 = vpop.eup %3755  ;;  %v1904_v37 = vadd.f32 1.0, %v3754_v28  ;;  %v4771_v63 = vadd.f32 %v1928_v61, %v1926_v35  ;;  %v6138_v61 = vld [vmem:[#allocation96_spill] sm:$0xff]  ;;  %v6139_v28 = vld [vmem:[#allocation97_spill] sm:$0xff] }
 0x4ae   :  { %v1905_v44 = vadd.f32 1.0, %v3756_v36  ;;  %v4773_v41 = vadd.f32 %v1929_v33, %v1927_v58  ;;  %v6135_v58 = vld [vmem:[#allocation93_spill] sm:$0xff]  ;;  %v6140_v33 = vld [vmem:[#allocation98_spill] sm:$0xff]  ;;  %v6141_v36 = vld [vmem:[#allocation99_spill] sm:$0xff] }
 0x4af   :  { %3757 = vrcp.f32 %v1904_v37  ;;  %v6142_v37 = vld [vmem:[#allocation100_spill] sm:$0xff] }
 0x4b0   :  { %3759 = vtanh.f32 %v4771_v63 }
 0x4b1   :  { %3761 = vrcp.f32 %v1905_v44  ;;  %v6143_v44 = vld [vmem:[#allocation101_spill] sm:$0xff] }
 0x4b2   :  { %3763 = vtanh.f32 %v4773_v41 }
 0x4b9   :  { %v3758_v49 = vpop.eup %3757 }
 0x4ba   :  { %v3760_v51 = vpop.eup %3759 }
 0x4bb   :  { %v3762_v25 = vpop.eup %3761  ;;  %v1934_v20 = vmul.f32 %v3760_v51, %v3758_v49  ;;  %v6144_v49 = vld [vmem:[#allocation102_spill] sm:$0xff]  ;;  %v6145_v51 = vld [vmem:[#allocation103_spill] sm:$0xff] }
 0x4bc   :  { %v3764_v43 = vpop.eup %3763 }
 0x4bd   :  { %v1935_v19 = vmul.f32 %v3764_v43, %v3762_v25  ;;  %v1936_v17 = vpack.c.bf16 %v1934_v20, %v1934_v20  ;;  %v6146_v25 = vld [vmem:[#allocation104_spill] sm:$0xff]  ;;  %v6147_v20 = vld [vmem:[#allocation105_spill] sm:$0xff]  ;;  %v6148_v43 = vld [vmem:[#allocation106_spill] sm:$0xff] }
 0x4bf   :  { %v1937_v29 = vpack.c.bf16 %v1935_v19, %v1935_v19  ;;  %v4777_v35 = vrot.slane %v1936_v17, 2  ;;  %v6149_v19 = vld [vmem:[#allocation107_spill] sm:$0xff]  ;;  %v6150_v17 = vld [vmem:[#allocation108_spill] sm:$0xff] }
 0x4c1   :  { %v1941_v52 = vrot.slane %v1937_v29, 2  ;;  %v6151_v29 = vld [vmem:[#allocation109_spill] sm:$0xff] }
 0x4c3   :  { %1976 = vmatprep.mubr.bf16.mxu0 %v1941_v52  ;;  %2017 = vmatprep.mubr.bf16.mxu1 %v1941_v52 }
 0x4c4   :  { %1977 = vmatmul.mubr.bf16.vlgmr.msra.gmra.mrb[20].mxu0 %v4777_v35  ;;  %2018 = vmatmul.mubr.bf16.vlgmr.msra.gmra.mrb[32].mxu1 %v4777_v35 }
 0x4c5   :  { %2027 = vmatpush1.bf16.msra.mxu0 %v6042_v26  ;;  %2068 = vmatpush1.bf16.msra.mxu1 %v6043_v15 }
 0x4c6   :  { %2058 = vmatprep.mubr.bf16.mxu0 %v1941_v52  ;;  %2099 = vmatprep.mubr.bf16.mxu1 %v1941_v52  ;;  %v6152_v52 = vld [vmem:[#allocation110_spill] sm:$0xff] }
 0x4c7   :  { %2028 = vmatprep.subr.bf16.mxu0 %v6044_v7  ;;  %2069 = vmatprep.subr.bf16.mxu1 %v6045_v10 }
 0x4c9   :  { %2029 = vmatpush1.bf16.msra.mxu0 %v6046_v8  ;;  %2070 = vmatpush1.bf16.msra.mxu1 %v6047_v30 }
 0x4ca   :  { %2030 = vmatprep.subr.bf16.mxu0 %v6048_v38  ;;  %2071 = vmatprep.subr.bf16.mxu1 %v6135_v58 }
 0x4cd   :  { %2031 = vmatpush1.bf16.msra.mxu0 %v6136_v45  ;;  %2072 = vmatpush1.bf16.msra.mxu1 %v6137_v27 }
 0x4ce   :  { %2032 = vmatprep.subr.bf16.mxu0 %v6138_v61  ;;  %2073 = vmatprep.subr.bf16.mxu1 %v6139_v28 }
 0x4d1   :  { %2033 = vmatpush1.bf16.msra.mxu0 %v6140_v33  ;;  %2074 = vmatpush1.bf16.msra.mxu1 %v6141_v36 }
 0x4d2   :  { %2034 = vmatprep.subr.bf16.mxu0 %v6142_v37  ;;  %2075 = vmatprep.subr.bf16.mxu1 %v6143_v44  ;;  %v6153_v37 = vld [vmem:[#allocation111_spill] sm:$0xff]  ;;  %v6154_v44 = vld [vmem:[#allocation112_spill] sm:$0xff] }
 0x4d5   :  { %2035 = vmatpush1.bf16.msra.mxu0 %v6144_v49  ;;  %2076 = vmatpush1.bf16.msra.mxu1 %v6145_v51  ;;  %v6155_v49 = vld [vmem:[#allocation113_spill] sm:$0xff]  ;;  %v6156_v51 = vld [vmem:[#allocation114_spill] sm:$0xff] }
 0x4d6   :  { %2036 = vmatprep.subr.bf16.mxu0 %v6146_v25  ;;  %2077 = vmatprep.subr.bf16.mxu1 %v6147_v20  ;;  %v6157_v25 = vld [vmem:[#allocation115_spill] sm:$0xff]  ;;  %v6158_v20 = vld [vmem:[#allocation116_spill] sm:$0xff] }
 0x4d9   :  { %2037 = vmatpush1.bf16.msra.mxu0 %v6148_v43  ;;  %2078 = vmatpush1.bf16.msra.mxu1 %v6149_v19  ;;  %v6159_v43 = vld [vmem:[#allocation117_spill] sm:$0xff]  ;;  %v6160_v19 = vld [vmem:[#allocation118_spill] sm:$0xff] }
 0x4da   :  { %2038 = vmatprep.subr.bf16.mxu0 %v6150_v17  ;;  %2079 = vmatprep.subr.bf16.mxu1 %v6151_v29  ;;  %v6161_v17 = vld [vmem:[#allocation119_spill] sm:$0xff]  ;;  %v6162_v29 = vld [vmem:[#allocation120_spill] sm:$0xff] }
 0x4dd   :  { %2039 = vmatpush1.bf16.msra.mxu0 %v6152_v52  ;;  %2080 = vmatpush1.bf16.msra.mxu1 %v6153_v37  ;;  %v6163_v52 = vld [vmem:[#allocation121_spill] sm:$0xff]  ;;  %v6164_v37 = vld [vmem:[#allocation122_spill] sm:$0xff] }
 0x4de   :  { %2040 = vmatprep.subr.bf16.mxu0 %v6154_v44  ;;  %2081 = vmatprep.subr.bf16.mxu1 %v6155_v49 }
 0x4e1   :  { %2041 = vmatpush1.bf16.msra.mxu0 %v6156_v51  ;;  %2082 = vmatpush1.bf16.msra.mxu1 %v6157_v25  ;;  %v6165_v25 = vld [vmem:[#allocation126_spill] sm:$0xff] }
 0x4e2   :  { %2042 = vmatprep.subr.bf16.mxu0 %v6158_v20  ;;  %2083 = vmatprep.subr.bf16.mxu1 %v6159_v43  ;;  %v6166_v20 = vld [vmem:[#allocation127_spill] sm:$0xff] }
 0x4e5   :  { %2043 = vmatpush1.bf16.msra.mxu0 %v6160_v19  ;;  %2084 = vmatpush1.bf16.msra.mxu1 %v6161_v17 }
 0x4e6   :  { %2044 = vmatprep.subr.bf16.mxu0 %v6162_v29  ;;  %2085 = vmatprep.subr.bf16.mxu1 %v6163_v52 }
 0x4e9   :  { %2045 = vmatpush1.bf16.msra.mxu0 %v6164_v37  ;;  %2086 = vmatpush1.bf16.msra.mxu1 %v6079_v18 }
 0x4ea   :  { %2046 = vmatprep.subr.bf16.mxu0 %v6080_v57  ;;  %2087 = vmatprep.subr.bf16.mxu1 %v6081_v23 }
 0x4ed   :  { %2047 = vmatpush1.bf16.msra.mxu0 %v6165_v25  ;;  %2088 = vmatpush1.bf16.msra.mxu1 %v6166_v20 }
 0x4ee   :  { %2048 = vmatprep.subr.bf16.mxu0 %v6084_v24  ;;  %2089 = vmatprep.subr.bf16.mxu1 %v6085_v46 }
 0x4f1   :  { %2049 = vmatpush1.bf16.msra.mxu0 %v6086_v48  ;;  %2090 = vmatpush1.bf16.msra.mxu1 %v6087_v2 }
 0x4f2   :  { %2050 = vmatprep.subr.bf16.mxu0 %v6088_v50  ;;  %2091 = vmatprep.subr.bf16.mxu1 %v6089_v60 }
 0x4f5   :  { %2051 = vmatpush1.bf16.msra.mxu0 %v4499_v47  ;;  %2092 = vmatpush1.bf16.msra.mxu1 %v4501_v54 }
 0x4f6   :  { %2052 = vmatprep.subr.bf16.mxu0 %v4505_v16  ;;  %2093 = vmatprep.subr.bf16.mxu1 %v6090_v39 }
 0x4f9   :  { %2053 = vmatpush1.bf16.msra.mxu0 %v6091_v55  ;;  %2094 = vmatpush1.bf16.msra.mxu1 %v4513_v59 }
 0x4fa   :  { %2054 = vmatprep.subr.bf16.mxu0 %v4517_v42  ;;  %2095 = vmatprep.subr.bf16.mxu1 %v4519_v32  ;;  %v6226_v42 = vld [vmem:[#allocation80_spill] sm:$0xff] }
 0x4fd   :  { %2055 = vmatpush1.bf16.msra.mxu0 %v4523_v6  ;;  %2096 = vmatpush1.bf16.msra.mxu1 %v4525_v0  ;;  %v6225_v6 = vld [vmem:[#allocation79_spill] sm:$0xff] }
 0x4fe   :  { %2056 = vmatprep.subr.bf16.mxu0 %v4529_v14  ;;  %2097 = vmatprep.subr.bf16.mxu1 %v4531_v31 }
 0x501   :  { %2057 = vmatpush1.bf16.msra.mxu0 %v4535_v34  ;;  %2098 = vmatpush1.bf16.msra.mxu1 %v4537_v40  ;;  %v6167_v40 = vld [vmem:[#allocation13_spill] sm:$0xff]  ;;  %v6170_v34 = vld [vmem:[#allocation16_spill] sm:$0xff] }
 0x502   :  { %2202 = vmatprep.subr.bf16.mxu0 %v4106_v1  ;;  %2243 = vmatprep.subr.bf16.mxu1 %v4108_v3  ;;  %v6168_v1 = vld [vmem:[#allocation14_spill] sm:$0xff]  ;;  %v6169_v3 = vld [vmem:[#allocation15_spill] sm:$0xff] }
 0x504   :  { %2059 = vmatmul.mubr.bf16.vlgmr.msra.gmra.mrb[24].mxu0 %v4777_v35  ;;  %2100 = vmatmul.mubr.bf16.vlgmr.msra.gmra.mrb[36].mxu1 %v4777_v35  ;;  %v6171_v35 = vld [vmem:[#allocation17_spill] sm:$0xff] }
 0x505   :  { %2203 = vmatpush1.bf16.msra.mxu0 %v4110_v4  ;;  %2244 = vmatpush1.bf16.msra.mxu1 %v4112_v5  ;;  %v6172_v4 = vld [vmem:[#allocation18_spill] sm:$0xff]  ;;  %v6173_v5 = vld [vmem:[#allocation19_spill] sm:$0xff] }
 0x506   :  { %2204 = vmatprep.subr.bf16.mxu0 %v4118_v9  ;;  %2245 = vmatprep.subr.bf16.mxu1 %v4120_v11  ;;  %v6174_v9 = vld [vmem:[#allocation20_spill] sm:$0xff]  ;;  %v6175_v11 = vld [vmem:[#allocation21_spill] sm:$0xff] }
 0x509   :  { %2205 = vmatpush1.bf16.msra.mxu0 %v4122_v12  ;;  %2246 = vmatpush1.bf16.msra.mxu1 %v4124_v13  ;;  %v6176_v12 = vld [vmem:[#allocation22_spill] sm:$0xff]  ;;  %v6177_v13 = vld [vmem:[#allocation23_spill] sm:$0xff] }
 0x50a   :  { %2206 = vmatprep.subr.bf16.mxu0 %v6167_v40  ;;  %2247 = vmatprep.subr.bf16.mxu1 %v6168_v1  ;;  %v6178_v40 = vld [vmem:[#allocation24_spill] sm:$0xff]  ;;  %v6179_v1 = vld [vmem:[#allocation25_spill] sm:$0xff] }
 0x50d   :  { %2207 = vmatpush1.bf16.msra.mxu0 %v6169_v3  ;;  %2248 = vmatpush1.bf16.msra.mxu1 %v6170_v34  ;;  %v6180_v3 = vld [vmem:[#allocation26_spill] sm:$0xff]  ;;  %v6181_v34 = vld [vmem:[#allocation27_spill] sm:$0xff] }
 0x50e   :  { %2208 = vmatprep.subr.bf16.mxu0 %v6171_v35  ;;  %2249 = vmatprep.subr.bf16.mxu1 %v6172_v4  ;;  %v6182_v35 = vld [vmem:[#allocation28_spill] sm:$0xff]  ;;  %v6183_v4 = vld [vmem:[#allocation29_spill] sm:$0xff] }
 0x511   :  { %2209 = vmatpush1.bf16.msra.mxu0 %v6173_v5  ;;  %2250 = vmatpush1.bf16.msra.mxu1 %v6174_v9  ;;  %v6184_v5 = vld [vmem:[#allocation30_spill] sm:$0xff]  ;;  %v6185_v9 = vld [vmem:[#allocation31_spill] sm:$0xff] }
 0x512   :  { %2210 = vmatprep.subr.bf16.mxu0 %v6175_v11  ;;  %2251 = vmatprep.subr.bf16.mxu1 %v6176_v12  ;;  %v6186_v11 = vld [vmem:[#allocation32_spill] sm:$0xff]  ;;  %v6187_v12 = vld [vmem:[#allocation33_spill] sm:$0xff] }
 0x515   :  { %2211 = vmatpush1.bf16.msra.mxu0 %v6177_v13  ;;  %2252 = vmatpush1.bf16.msra.mxu1 %v6178_v40  ;;  %v6188_v13 = vld [vmem:[#allocation34_spill] sm:$0xff]  ;;  %v6189_v40 = vld [vmem:[#allocation35_spill] sm:$0xff] }
 0x516   :  { %2212 = vmatprep.subr.bf16.mxu0 %v6179_v1  ;;  %2253 = vmatprep.subr.bf16.mxu1 %v6180_v3  ;;  %v6190_v1 = vld [vmem:[#allocation36_spill] sm:$0xff]  ;;  %v6191_v3 = vld [vmem:[#allocation37_spill] sm:$0xff] }
 0x519   :  { %2213 = vmatpush1.bf16.msra.mxu0 %v6181_v34  ;;  %2254 = vmatpush1.bf16.msra.mxu1 %v6182_v35  ;;  %v6192_v34 = vld [vmem:[#allocation38_spill] sm:$0xff]  ;;  %v6193_v35 = vld [vmem:[#allocation39_spill] sm:$0xff] }
 0x51a   :  { %2214 = vmatprep.subr.bf16.mxu0 %v6183_v4  ;;  %2255 = vmatprep.subr.bf16.mxu1 %v6184_v5  ;;  %v6194_v4 = vld [vmem:[#allocation40_spill] sm:$0xff]  ;;  %v6195_v5 = vld [vmem:[#allocation41_spill] sm:$0xff] }
 0x51d   :  { %2215 = vmatpush1.bf16.msra.mxu0 %v6185_v9  ;;  %2256 = vmatpush1.bf16.msra.mxu1 %v6186_v11  ;;  %v6196_v9 = vld [vmem:[#allocation42_spill] sm:$0xff]  ;;  %v6197_v11 = vld [vmem:[#allocation43_spill] sm:$0xff] }
 0x51e   :  { %2216 = vmatprep.subr.bf16.mxu0 %v6187_v12  ;;  %2257 = vmatprep.subr.bf16.mxu1 %v6188_v13  ;;  %v6198_v12 = vld [vmem:[#allocation44_spill] sm:$0xff]  ;;  %v6199_v13 = vld [vmem:[#allocation45_spill] sm:$0xff] }
 0x521   :  { %2217 = vmatpush1.bf16.msra.mxu0 %v6189_v40  ;;  %2258 = vmatpush1.bf16.msra.mxu1 %v6190_v1  ;;  %v6200_v40 = vld [vmem:[#allocation46_spill] sm:$0xff]  ;;  %v6201_v1 = vld [vmem:[#allocation47_spill] sm:$0xff] }
 0x522   :  { %2218 = vmatprep.subr.bf16.mxu0 %v6191_v3  ;;  %2259 = vmatprep.subr.bf16.mxu1 %v6192_v34  ;;  %v6202_v3 = vld [vmem:[#allocation48_spill] sm:$0xff]  ;;  %v6203_v34 = vld [vmem:[#allocation49_spill] sm:$0xff] }
 0x525   :  { %2219 = vmatpush1.bf16.msra.mxu0 %v6193_v35  ;;  %2260 = vmatpush1.bf16.msra.mxu1 %v6194_v4  ;;  %v6204_v35 = vld [vmem:[#allocation50_spill] sm:$0xff]  ;;  %v6205_v4 = vld [vmem:[#allocation51_spill] sm:$0xff] }
 0x526   :  { %2220 = vmatprep.subr.bf16.mxu0 %v6195_v5  ;;  %2261 = vmatprep.subr.bf16.mxu1 %v6196_v9  ;;  %v6206_v5 = vld [vmem:[#allocation52_spill] sm:$0xff]  ;;  %v6207_v9 = vld [vmem:[#allocation53_spill] sm:$0xff] }
 0x529   :  { %2221 = vmatpush1.bf16.msra.mxu0 %v6197_v11  ;;  %2262 = vmatpush1.bf16.msra.mxu1 %v6198_v12  ;;  %v6208_v11 = vld [vmem:[#allocation55_spill] sm:$0xff]  ;;  %v6209_v12 = vld [vmem:[#allocation54_spill] sm:$0xff] }
 0x52a   :  { %2222 = vmatprep.subr.bf16.mxu0 %v6199_v13  ;;  %2263 = vmatprep.subr.bf16.mxu1 %v6200_v40  ;;  %v6210_v13 = vld [vmem:[#allocation56_spill] sm:$0xff]  ;;  %v6211_v40 = vld [vmem:[#allocation57_spill] sm:$0xff] }
 0x52d   :  { %2223 = vmatpush1.bf16.msra.mxu0 %v6201_v1  ;;  %2264 = vmatpush1.bf16.msra.mxu1 %v6202_v3  ;;  %v6212_v1 = vld [vmem:[#allocation58_spill] sm:$0xff]  ;;  %v6213_v3 = vld [vmem:[#allocation59_spill] sm:$0xff] }
 0x52e   :  { %2224 = vmatprep.subr.bf16.mxu0 %v6203_v34  ;;  %2265 = vmatprep.subr.bf16.mxu1 %v6204_v35  ;;  %v6214_v34 = vld [vmem:[#allocation60_spill] sm:$0xff]  ;;  %v6215_v35 = vld [vmem:[#allocation61_spill] sm:$0xff] }
 0x531   :  { %2225 = vmatpush1.bf16.msra.mxu0 %v6205_v4  ;;  %2266 = vmatpush1.bf16.msra.mxu1 %v6206_v5  ;;  %v6216_v4 = vld [vmem:[#allocation62_spill] sm:$0xff]  ;;  %v6217_v5 = vld [vmem:[#allocation63_spill] sm:$0xff] }
 0x532   :  { %2226 = vmatprep.subr.bf16.mxu0 %v6207_v9  ;;  %2267 = vmatprep.subr.bf16.mxu1 %v6208_v11  ;;  %v6218_v9 = vld [vmem:[#allocation64_spill] sm:$0xff]  ;;  %v6219_v11 = vld [vmem:[#allocation65_spill] sm:$0xff] }
 0x535   :  { %2227 = vmatpush1.bf16.msra.mxu0 %v6209_v12  ;;  %2268 = vmatpush1.bf16.msra.mxu1 %v6210_v13  ;;  %v6220_v12 = vld [vmem:[#allocation66_spill] sm:$0xff]  ;;  %v6221_v13 = vld [vmem:[#allocation67_spill] sm:$0xff] }
 0x536   :  { %2228 = vmatprep.subr.bf16.mxu0 %v6211_v40  ;;  %2269 = vmatprep.subr.bf16.mxu1 %v6212_v1  ;;  %v6222_v40 = vld [vmem:[#allocation68_spill] sm:$0xff]  ;;  %v6223_v1 = vld [vmem:[#allocation69_spill] sm:$0xff] }
 0x539   :  { %2229 = vmatpush1.bf16.msra.mxu0 %v6213_v3  ;;  %2270 = vmatpush1.bf16.msra.mxu1 %v6214_v34  ;;  %v6224_v3 = vld [vmem:[#allocation70_spill] sm:$0xff] }
 0x53a   :  { %2230 = vmatprep.subr.bf16.mxu0 %v6215_v35  ;;  %2271 = vmatprep.subr.bf16.mxu1 %v6216_v4 }
 0x53d   :  { %2231 = vmatpush1.bf16.msra.mxu0 %v6217_v5  ;;  %2272 = vmatpush1.bf16.msra.mxu1 %v6218_v9 }
 0x53e   :  { %2232 = vmatprep.subr.bf16.mxu0 %v6219_v11  ;;  %2273 = vmatprep.subr.bf16.mxu1 %v6220_v12 }
 0x541   :  { %2233 = vmatpush1.bf16.msra.mxu0 %v6221_v13  ;;  %2274 = vmatpush1.bf16.msra.mxu1 %v6222_v40 }
 0x542   :  { %2284 = vmatprep.subr.bf16.mxu0 %v6223_v1  ;;  %2325 = vmatprep.subr.bf16.mxu1 %v6224_v3 }
 0x597   :  { %v1978_v34 = vpop.f32.mrb[20].mxu0  ;;  %v2019_v35 = vpop.f32.mrb[32].mxu1 }
 0x598   :  { %v2118_v31 = vrot.slane %v2019_v35, 2  ;;  %v1980_v4 = vpop.f32.mrb[21].mxu0  ;;  %v2021_v14 = vpop.f32.mrb[33].mxu1 }
 0x599   :  { %v2119_v5 = vrot.slane %v2021_v14, 2  ;;  %v1982_v0 = vpop.f32.mrb[22].mxu0  ;;  %v2023_v9 = vpop.f32.mrb[34].mxu1  ;;  %v2180_v14 = vrot.slane %v4771_v63, 6 }
 0x59a   :  { %v2134_v11 = vadd.f32 %v2118_v31, %v6225_v6  ;;  %v1983_v32 = vpop.f32.mrb[23].mxu0  ;;  %v2024_v12 = vpop.f32.mrb[35].mxu1  ;;  %v2181_v9 = vrot.slane %v4773_v41, 6  ;;  %v2116_v31 = vrot.slane %v1978_v34, 2 }
 0x59b   :  { %v2135_v13 = vadd.f32 %v2119_v5, %v6226_v42  ;;  %v2117_v5 = vrot.slane %v1980_v4, 2 }
 0x59c   :  { %v3534_v59 = vmul.f32 -1.442695, %v2134_v11  ;;  %v2132_v11 = vadd.f32 %v2116_v31, %v6132_v53 }
 0x59d   :  { %v3535_v40 = vmul.f32 -1.442695, %v2135_v13  ;;  %v2133_v13 = vadd.f32 %v2117_v5, %v6133_v21 }
 0x59e   :  { %3765 = vpow2.f32 %v3534_v59 }
 0x59f   :  { %3767 = vpow2.f32 %v3535_v40  ;;  %v3532_v40 = vmul.f32 -1.442695, %v2132_v11 }
 0x5a8   :  { %v3766_v1 = vpop.eup %3765 }
 0x5a9   :  { %v2160_v3 = vadd.f32 1.0, %v3766_v1  ;;  %v3768_v55 = vpop.eup %3767  ;;  %v3533_v1 = vmul.f32 -1.442695, %v2133_v13  ;;  %v6227_v13 = vld [vmem:[#allocation83_spill] sm:$0xff] }
 0x5aa   :  { %v2161_v35 = vadd.f32 1.0, %v3768_v55 }
 0x5ab   :  { %3769 = vrcp.f32 %v2160_v3 }
 0x5ac   :  { %3771 = vrcp.f32 %v2161_v35 }
 0x5ad   :  { %3773 = vpow2.f32 %v3532_v40 }
 0x5ae   :  { %3775 = vpow2.f32 %v3533_v1 }
 0x5b5   :  { %v3770_v0 = vpop.eup %3769 }
 0x5b6   :  { %v2184_v6 = vmul.f32 %v3770_v0, %v2180_v14  ;;  %v3772_v32 = vpop.eup %3771 }
 0x5b7   :  { %v2185_v12 = vmul.f32 %v3772_v32, %v2181_v9  ;;  %v3774_v3 = vpop.eup %3773 }
 0x5b8   :  { %v3776_v59 = vpop.eup %3775  ;;  %v2158_v42 = vadd.f32 1.0, %v3774_v3 }
 0x5b9   :  { %v2159_v55 = vadd.f32 1.0, %v3776_v59 }
 0x5ba   :  { %3777 = vrcp.f32 %v2158_v42 }
 0x5bb   :  { %3779 = vrcp.f32 %v2159_v55 }
 0x5d7   :  { %v2060_v63 = vpop.f32.mrb[24].mxu0  ;;  %v2101_v35 = vpop.f32.mrb[36].mxu1 }
 0x5d8   :  { %v2120_v41 = vrot.slane %v2060_v63, 2  ;;  %v2122_v14 = vrot.slane %v2101_v35, 2  ;;  %v2062_v0 = vpop.f32.mrb[25].mxu0  ;;  %v2103_v9 = vpop.f32.mrb[37].mxu1 }
 0x5d9   :  { %v2121_v34 = vrot.slane %v2062_v0, 2  ;;  %v2123_v4 = vrot.slane %v2103_v9, 2  ;;  %v2064_v32 = vpop.f32.mrb[26].mxu0  ;;  %v2105_v53 = vpop.f32.mrb[38].mxu1 }
 0x5da   :  { %v2136_v21 = vadd.f32 %v2120_v41, %v4335_v56  ;;  %v2138_v31 = vadd.f32 %v2122_v14, %v6039_v22  ;;  %v2065_v5 = vpop.f32.mrb[27].mxu0  ;;  %v2106_v11 = vpop.f32.mrb[39].mxu1 }
 0x5db   :  { %v2137_v40 = vadd.f32 %v2121_v34, %v6227_v13  ;;  %v2139_v1 = vadd.f32 %v2123_v4, %v6041_v62  ;;  %v3778_v63 = vpop.eup %3777 }
 0x5dc   :  { %v3536_v3 = vmul.f32 -1.442695, %v2136_v21  ;;  %3781 = vtanh.f32 %v2138_v31  ;;  %v3780_v35 = vpop.eup %3779 }
 0x5dd   :  { %v3537_v59 = vmul.f32 -1.442695, %v2137_v40  ;;  %3783 = vtanh.f32 %v2139_v1  ;;  %v6229_v1 = vld [vmem:[#allocation101_spill] sm:$0xff] }
 0x5de   :  { %3785 = vpow2.f32 %v3536_v3  ;;  %v6230_v3 = vld [vmem:[#allocation102_spill] sm:$0xff] }
 0x5df   :  { %3787 = vpow2.f32 %v3537_v59  ;;  %v6231_v59 = vld [vmem:[#allocation103_spill] sm:$0xff] }
 0x5e6   :  { %v3782_v42 = vpop.eup %3781 }
 0x5e7   :  { %v3784_v0 = vpop.eup %3783  ;;  %v2186_v56 = vmul.f32 %v3782_v42, %v3778_v63  ;;  %v6232_v63 = vld [vmem:[#allocation104_spill] sm:$0xff]  ;;  %v6234_v42 = vld [vmem:[#allocation106_spill] sm:$0xff] }
 0x5e8   :  { %v3786_v41 = vpop.eup %3785  ;;  %v2187_v22 = vmul.f32 %v3784_v0, %v3780_v35  ;;  %v6233_v35 = vld [vmem:[#allocation105_spill] sm:$0xff]  ;;  %v6235_v0 = vld [vmem:[#allocation107_spill] sm:$0xff] }
 0x5e9   :  { %v3788_v14 = vpop.eup %3787  ;;  %v2162_v9 = vadd.f32 1.0, %v3786_v41  ;;  %v4921_v55 = vadd.f32 %v2186_v56, %v2184_v6  ;;  %v6236_v56 = vld [vmem:[#allocation108_spill] sm:$0xff]  ;;  %v6237_v41 = vld [vmem:[#allocation109_spill] sm:$0xff] }
 0x5ea   :  { %v2163_v34 = vadd.f32 1.0, %v3788_v14  ;;  %v4923_v32 = vadd.f32 %v2187_v22, %v2185_v12  ;;  %v6228_v12 = vld [vmem:[#allocation100_spill] sm:$0xff]  ;;  %v6238_v22 = vld [vmem:[#allocation110_spill] sm:$0xff]  ;;  %v6239_v14 = vld [vmem:[#allocation111_spill] sm:$0xff] }
 0x5eb   :  { %3789 = vrcp.f32 %v2162_v9  ;;  %v6240_v9 = vld [vmem:[#allocation115_spill] sm:$0xff] }
 0x5ec   :  { %3791 = vtanh.f32 %v4921_v55 }
 0x5ed   :  { %3793 = vrcp.f32 %v2163_v34  ;;  %v6241_v34 = vld [vmem:[#allocation116_spill] sm:$0xff] }
 0x5ee   :  { %3795 = vtanh.f32 %v4923_v32 }
 0x5f5   :  { %v3790_v62 = vpop.eup %3789 }
 0x5f6   :  { %v3792_v4 = vpop.eup %3791 }
 0x5f7   :  { %v3794_v53 = vpop.eup %3793  ;;  %v2192_v21 = vmul.f32 %v3792_v4, %v3790_v62  ;;  %v6242_v62 = vld [vmem:[#allocation138_spill] sm:$0xff]  ;;  %v6243_v4 = vld [vmem:[#allocation139_spill] sm:$0xff] }
 0x5f8   :  { %v3796_v31 = vpop.eup %3795 }
 0x5f9   :  { %v2193_v5 = vmul.f32 %v3796_v31, %v3794_v53  ;;  %v2194_v11 = vpack.c.bf16 %v2192_v21, %v2192_v21  ;;  %v6244_v53 = vld [vmem:[#allocation140_spill] sm:$0xff]  ;;  %v6245_v21 = vld [vmem:[#allocation141_spill] sm:$0xff]  ;;  %v6246_v31 = vld [vmem:[#allocation142_spill] sm:$0xff] }
 0x5fb   :  { %v2195_v13 = vpack.c.bf16 %v2193_v5, %v2193_v5  ;;  %v4927_v6 = vrot.slane %v2194_v11, 3  ;;  %v6247_v5 = vld [vmem:[#allocation143_spill] sm:$0xff]  ;;  %v6248_v11 = vld [vmem:[#allocation144_spill] sm:$0xff] }
 0x5fd   :  { %v2199_v40 = vrot.slane %v2195_v13, 3  ;;  %v6249_v13 = vld [vmem:[#allocation145_spill] sm:$0xff] }
 0x5ff   :  { %2234 = vmatprep.mubr.bf16.mxu0 %v2199_v40  ;;  %2275 = vmatprep.mubr.bf16.mxu1 %v2199_v40 }
 0x600   :  { %2235 = vmatmul.mubr.bf16.vlgmr.msra.gmra.mrb[28].mxu0 %v4927_v6  ;;  %2276 = vmatmul.mubr.bf16.vlgmr.msra.gmra.mrb[40].mxu1 %v4927_v6 }
 0x601   :  { %2285 = vmatpush1.bf16.msra.mxu0 %v6042_v26  ;;  %2326 = vmatpush1.bf16.msra.mxu1 %v6043_v15 }
 0x602   :  { %2316 = vmatprep.mubr.bf16.mxu0 %v2199_v40  ;;  %2357 = vmatprep.mubr.bf16.mxu1 %v2199_v40  ;;  %v6250_v40 = vld [vmem:[#allocation146_spill] sm:$0xff] }
 0x603   :  { %2286 = vmatprep.subr.bf16.mxu0 %v6044_v7  ;;  %2327 = vmatprep.subr.bf16.mxu1 %v6045_v10 }
 0x605   :  { %2287 = vmatpush1.bf16.msra.mxu0 %v6046_v8  ;;  %2328 = vmatpush1.bf16.msra.mxu1 %v6047_v30 }
 0x606   :  { %2288 = vmatprep.subr.bf16.mxu0 %v6048_v38  ;;  %2329 = vmatprep.subr.bf16.mxu1 %v6135_v58 }
 0x609   :  { %2289 = vmatpush1.bf16.msra.mxu0 %v6136_v45  ;;  %2330 = vmatpush1.bf16.msra.mxu1 %v6137_v27 }
 0x60a   :  { %2290 = vmatprep.subr.bf16.mxu0 %v6138_v61  ;;  %2331 = vmatprep.subr.bf16.mxu1 %v6139_v28 }
 0x60d   :  { %2291 = vmatpush1.bf16.msra.mxu0 %v6140_v33  ;;  %2332 = vmatpush1.bf16.msra.mxu1 %v6141_v36 }
 0x60e   :  { %2292 = vmatprep.subr.bf16.mxu0 %v6228_v12  ;;  %2333 = vmatprep.subr.bf16.mxu1 %v6229_v1 }
 0x611   :  { %2293 = vmatpush1.bf16.msra.mxu0 %v6230_v3  ;;  %2334 = vmatpush1.bf16.msra.mxu1 %v6231_v59 }
 0x612   :  { %2294 = vmatprep.subr.bf16.mxu0 %v6232_v63  ;;  %2335 = vmatprep.subr.bf16.mxu1 %v6233_v35 }
 0x615   :  { %2295 = vmatpush1.bf16.msra.mxu0 %v6234_v42  ;;  %2336 = vmatpush1.bf16.msra.mxu1 %v6235_v0 }
 0x616   :  { %2296 = vmatprep.subr.bf16.mxu0 %v6236_v56  ;;  %2337 = vmatprep.subr.bf16.mxu1 %v6237_v41 }
 0x619   :  { %2297 = vmatpush1.bf16.msra.mxu0 %v6238_v22  ;;  %2338 = vmatpush1.bf16.msra.mxu1 %v6239_v14 }
 0x61a   :  { %2298 = vmatprep.subr.bf16.mxu0 %v6154_v44  ;;  %2339 = vmatprep.subr.bf16.mxu1 %v6155_v49 }
 0x61d   :  { %2299 = vmatpush1.bf16.msra.mxu0 %v6156_v51  ;;  %2340 = vmatpush1.bf16.msra.mxu1 %v6240_v9 }
 0x61e   :  { %2300 = vmatprep.subr.bf16.mxu0 %v6241_v34  ;;  %2341 = vmatprep.subr.bf16.mxu1 %v6159_v43 }
 0x621   :  { %2301 = vmatpush1.bf16.msra.mxu0 %v6160_v19  ;;  %2342 = vmatpush1.bf16.msra.mxu1 %v6161_v17 }
 0x622   :  { %2302 = vmatprep.subr.bf16.mxu0 %v6162_v29  ;;  %2343 = vmatprep.subr.bf16.mxu1 %v6163_v52 }
 0x625   :  { %2303 = vmatpush1.bf16.msra.mxu0 %v6164_v37  ;;  %2344 = vmatpush1.bf16.msra.mxu1 %v6079_v18 }
 0x626   :  { %2304 = vmatprep.subr.bf16.mxu0 %v6080_v57  ;;  %2345 = vmatprep.subr.bf16.mxu1 %v6081_v23 }
 0x629   :  { %2305 = vmatpush1.bf16.msra.mxu0 %v6165_v25  ;;  %2346 = vmatpush1.bf16.msra.mxu1 %v6166_v20 }
 0x62a   :  { %2306 = vmatprep.subr.bf16.mxu0 %v6084_v24  ;;  %2347 = vmatprep.subr.bf16.mxu1 %v6085_v46 }
 0x62d   :  { %2307 = vmatpush1.bf16.msra.mxu0 %v6086_v48  ;;  %2348 = vmatpush1.bf16.msra.mxu1 %v6087_v2 }
 0x62e   :  { %2308 = vmatprep.subr.bf16.mxu0 %v6088_v50  ;;  %2349 = vmatprep.subr.bf16.mxu1 %v6089_v60 }
 0x631   :  { %2309 = vmatpush1.bf16.msra.mxu0 %v4499_v47  ;;  %2350 = vmatpush1.bf16.msra.mxu1 %v4501_v54  ;;  %v6319_v47 = vld [vmem:[#allocation76_spill] sm:$0xff] }
 0x632   :  { %2310 = vmatprep.subr.bf16.mxu0 %v4505_v16  ;;  %2351 = vmatprep.subr.bf16.mxu1 %v6090_v39  ;;  %v6251_v16 = vld [vmem:[#allocation147_spill] sm:$0xff]  ;;  %v6252_v39 = vld [vmem:[#allocation5_spill] sm:$0xff] }
 0x635   :  { %2311 = vmatpush1.bf16.msra.mxu0 %v6242_v62  ;;  %2352 = vmatpush1.bf16.msra.mxu1 %v6243_v4  ;;  %v6253_v62 = vld [vmem:[#allocation6_spill] sm:$0xff]  ;;  %v6318_v4 = vld [vmem:[#allocation75_spill] sm:$0xff] }
 0x636   :  { %2312 = vmatprep.subr.bf16.mxu0 %v6244_v53  ;;  %2353 = vmatprep.subr.bf16.mxu1 %v6245_v21  ;;  %v6254_v21 = vld [vmem:[#allocation7_spill] sm:$0xff]  ;;  %v6263_v53 = vld [vmem:[#allocation16_spill] sm:$0xff] }
 0x639   :  { %2313 = vmatpush1.bf16.msra.mxu0 %v6246_v31  ;;  %2354 = vmatpush1.bf16.msra.mxu1 %v6247_v5  ;;  %v6255_v31 = vld [vmem:[#allocation8_spill] sm:$0xff]  ;;  %v6256_v5 = vld [vmem:[#allocation9_spill] sm:$0xff] }
 0x63a   :  { %2314 = vmatprep.subr.bf16.mxu0 %v6248_v11  ;;  %2355 = vmatprep.subr.bf16.mxu1 %v6249_v13  ;;  %v6257_v11 = vld [vmem:[#allocation10_spill] sm:$0xff]  ;;  %v6258_v13 = vld [vmem:[#allocation11_spill] sm:$0xff] }
 0x63d   :  { %2315 = vmatpush1.bf16.msra.mxu0 %v6250_v40  ;;  %2356 = vmatpush1.bf16.msra.mxu1 %v6251_v16  ;;  %v6259_v40 = vld [vmem:[#allocation12_spill] sm:$0xff]  ;;  %v6260_v16 = vld [vmem:[#allocation13_spill] sm:$0xff] }
 0x63e   :  { %2430 = vmatprep.subr.bf16.mxu0 %v6252_v39  ;;  %2471 = vmatprep.subr.bf16.mxu1 %v6253_v62  ;;  %v6261_v39 = vld [vmem:[#allocation14_spill] sm:$0xff]  ;;  %v6262_v62 = vld [vmem:[#allocation15_spill] sm:$0xff] }
 0x640   :  { %2317 = vmatmul.mubr.bf16.vlgmr.msra.gmra.mrb[32].mxu0 %v4927_v6  ;;  %2358 = vmatmul.mubr.bf16.vlgmr.msra.gmra.mrb[44].mxu1 %v4927_v6  ;;  %v6264_v6 = vld [vmem:[#allocation17_spill] sm:$0xff] }
 0x641   :  { %2431 = vmatpush1.bf16.msra.mxu0 %v6254_v21  ;;  %2472 = vmatpush1.bf16.msra.mxu1 %v6255_v31  ;;  %v6265_v21 = vld [vmem:[#allocation18_spill] sm:$0xff]  ;;  %v6266_v31 = vld [vmem:[#allocation19_spill] sm:$0xff] }
 0x642   :  { %2432 = vmatprep.subr.bf16.mxu0 %v6256_v5  ;;  %2473 = vmatprep.subr.bf16.mxu1 %v6257_v11  ;;  %v6267_v5 = vld [vmem:[#allocation20_spill] sm:$0xff]  ;;  %v6268_v11 = vld [vmem:[#allocation21_spill] sm:$0xff] }
 0x645   :  { %2433 = vmatpush1.bf16.msra.mxu0 %v6258_v13  ;;  %2474 = vmatpush1.bf16.msra.mxu1 %v6259_v40  ;;  %v6269_v13 = vld [vmem:[#allocation22_spill] sm:$0xff]  ;;  %v6270_v40 = vld [vmem:[#allocation23_spill] sm:$0xff] }
 0x646   :  { %2434 = vmatprep.subr.bf16.mxu0 %v6260_v16  ;;  %2475 = vmatprep.subr.bf16.mxu1 %v6261_v39  ;;  %v6271_v16 = vld [vmem:[#allocation24_spill] sm:$0xff]  ;;  %v6272_v39 = vld [vmem:[#allocation25_spill] sm:$0xff] }
 0x649   :  { %2435 = vmatpush1.bf16.msra.mxu0 %v6262_v62  ;;  %2476 = vmatpush1.bf16.msra.mxu1 %v6263_v53  ;;  %v6273_v62 = vld [vmem:[#allocation26_spill] sm:$0xff]  ;;  %v6274_v53 = vld [vmem:[#allocation27_spill] sm:$0xff] }
 0x64a   :  { %2436 = vmatprep.subr.bf16.mxu0 %v6264_v6  ;;  %2477 = vmatprep.subr.bf16.mxu1 %v6265_v21  ;;  %v6275_v6 = vld [vmem:[#allocation28_spill] sm:$0xff]  ;;  %v6276_v21 = vld [vmem:[#allocation29_spill] sm:$0xff] }
 0x64d   :  { %2437 = vmatpush1.bf16.msra.mxu0 %v6266_v31  ;;  %2478 = vmatpush1.bf16.msra.mxu1 %v6267_v5  ;;  %v6277_v31 = vld [vmem:[#allocation30_spill] sm:$0xff]  ;;  %v6278_v5 = vld [vmem:[#allocation31_spill] sm:$0xff] }
 0x64e   :  { %2438 = vmatprep.subr.bf16.mxu0 %v6268_v11  ;;  %2479 = vmatprep.subr.bf16.mxu1 %v6269_v13  ;;  %v6279_v11 = vld [vmem:[#allocation32_spill] sm:$0xff]  ;;  %v6280_v13 = vld [vmem:[#allocation33_spill] sm:$0xff] }
 0x651   :  { %2439 = vmatpush1.bf16.msra.mxu0 %v6270_v40  ;;  %2480 = vmatpush1.bf16.msra.mxu1 %v6271_v16  ;;  %v6281_v40 = vld [vmem:[#allocation34_spill] sm:$0xff]  ;;  %v6282_v16 = vld [vmem:[#allocation35_spill] sm:$0xff] }
 0x652   :  { %2440 = vmatprep.subr.bf16.mxu0 %v6272_v39  ;;  %2481 = vmatprep.subr.bf16.mxu1 %v6273_v62  ;;  %v6283_v39 = vld [vmem:[#allocation36_spill] sm:$0xff]  ;;  %v6284_v62 = vld [vmem:[#allocation37_spill] sm:$0xff] }
 0x655   :  { %2441 = vmatpush1.bf16.msra.mxu0 %v6274_v53  ;;  %2482 = vmatpush1.bf16.msra.mxu1 %v6275_v6  ;;  %v6285_v53 = vld [vmem:[#allocation38_spill] sm:$0xff]  ;;  %v6286_v6 = vld [vmem:[#allocation39_spill] sm:$0xff] }
 0x656   :  { %2442 = vmatprep.subr.bf16.mxu0 %v6276_v21  ;;  %2483 = vmatprep.subr.bf16.mxu1 %v6277_v31  ;;  %v6287_v21 = vld [vmem:[#allocation40_spill] sm:$0xff]  ;;  %v6288_v31 = vld [vmem:[#allocation41_spill] sm:$0xff] }
 0x659   :  { %2443 = vmatpush1.bf16.msra.mxu0 %v6278_v5  ;;  %2484 = vmatpush1.bf16.msra.mxu1 %v6279_v11  ;;  %v6289_v5 = vld [vmem:[#allocation42_spill] sm:$0xff]  ;;  %v6290_v11 = vld [vmem:[#allocation43_spill] sm:$0xff] }
 0x65a   :  { %2444 = vmatprep.subr.bf16.mxu0 %v6280_v13  ;;  %2485 = vmatprep.subr.bf16.mxu1 %v6281_v40  ;;  %v6291_v13 = vld [vmem:[#allocation44_spill] sm:$0xff]  ;;  %v6292_v40 = vld [vmem:[#allocation45_spill] sm:$0xff] }
 0x65d   :  { %2445 = vmatpush1.bf16.msra.mxu0 %v6282_v16  ;;  %2486 = vmatpush1.bf16.msra.mxu1 %v6283_v39  ;;  %v6293_v16 = vld [vmem:[#allocation46_spill] sm:$0xff]  ;;  %v6294_v39 = vld [vmem:[#allocation47_spill] sm:$0xff] }
 0x65e   :  { %2446 = vmatprep.subr.bf16.mxu0 %v6284_v62  ;;  %2487 = vmatprep.subr.bf16.mxu1 %v6285_v53  ;;  %v6295_v62 = vld [vmem:[#allocation48_spill] sm:$0xff]  ;;  %v6296_v53 = vld [vmem:[#allocation49_spill] sm:$0xff] }
 0x661   :  { %2447 = vmatpush1.bf16.msra.mxu0 %v6286_v6  ;;  %2488 = vmatpush1.bf16.msra.mxu1 %v6287_v21  ;;  %v6297_v6 = vld [vmem:[#allocation50_spill] sm:$0xff]  ;;  %v6298_v21 = vld [vmem:[#allocation51_spill] sm:$0xff] }
 0x662   :  { %2448 = vmatprep.subr.bf16.mxu0 %v6288_v31  ;;  %2489 = vmatprep.subr.bf16.mxu1 %v6289_v5  ;;  %v6299_v31 = vld [vmem:[#allocation52_spill] sm:$0xff]  ;;  %v6300_v5 = vld [vmem:[#allocation53_spill] sm:$0xff] }
 0x665   :  { %2449 = vmatpush1.bf16.msra.mxu0 %v6290_v11  ;;  %2490 = vmatpush1.bf16.msra.mxu1 %v6291_v13  ;;  %v6301_v11 = vld [vmem:[#allocation55_spill] sm:$0xff]  ;;  %v6302_v13 = vld [vmem:[#allocation54_spill] sm:$0xff] }
 0x666   :  { %2450 = vmatprep.subr.bf16.mxu0 %v6292_v40  ;;  %2491 = vmatprep.subr.bf16.mxu1 %v6293_v16  ;;  %v6303_v40 = vld [vmem:[#allocation56_spill] sm:$0xff]  ;;  %v6304_v16 = vld [vmem:[#allocation57_spill] sm:$0xff] }
 0x669   :  { %2451 = vmatpush1.bf16.msra.mxu0 %v6294_v39  ;;  %2492 = vmatpush1.bf16.msra.mxu1 %v6295_v62  ;;  %v6305_v39 = vld [vmem:[#allocation58_spill] sm:$0xff]  ;;  %v6306_v62 = vld [vmem:[#allocation59_spill] sm:$0xff] }
 0x66a   :  { %2452 = vmatprep.subr.bf16.mxu0 %v6296_v53  ;;  %2493 = vmatprep.subr.bf16.mxu1 %v6297_v6  ;;  %v6307_v53 = vld [vmem:[#allocation60_spill] sm:$0xff]  ;;  %v6308_v6 = vld [vmem:[#allocation61_spill] sm:$0xff] }
 0x66d   :  { %2453 = vmatpush1.bf16.msra.mxu0 %v6298_v21  ;;  %2494 = vmatpush1.bf16.msra.mxu1 %v6299_v31  ;;  %v6309_v21 = vld [vmem:[#allocation62_spill] sm:$0xff]  ;;  %v6310_v31 = vld [vmem:[#allocation63_spill] sm:$0xff] }
 0x66e   :  { %2454 = vmatprep.subr.bf16.mxu0 %v6300_v5  ;;  %2495 = vmatprep.subr.bf16.mxu1 %v6301_v11  ;;  %v6311_v5 = vld [vmem:[#allocation64_spill] sm:$0xff]  ;;  %v6312_v11 = vld [vmem:[#allocation65_spill] sm:$0xff] }
 0x671   :  { %2455 = vmatpush1.bf16.msra.mxu0 %v6302_v13  ;;  %2496 = vmatpush1.bf16.msra.mxu1 %v6303_v40  ;;  %v6313_v13 = vld [vmem:[#allocation66_spill] sm:$0xff]  ;;  %v6314_v40 = vld [vmem:[#allocation67_spill] sm:$0xff] }
 0x672   :  { %2456 = vmatprep.subr.bf16.mxu0 %v6304_v16  ;;  %2497 = vmatprep.subr.bf16.mxu1 %v6305_v39  ;;  %v6315_v16 = vld [vmem:[#allocation68_spill] sm:$0xff]  ;;  %v6316_v39 = vld [vmem:[#allocation69_spill] sm:$0xff] }
 0x675   :  { %2457 = vmatpush1.bf16.msra.mxu0 %v6306_v62  ;;  %2498 = vmatpush1.bf16.msra.mxu1 %v6307_v53  ;;  %v6317_v62 = vld [vmem:[#allocation70_spill] sm:$0xff] }
 0x676   :  { %2458 = vmatprep.subr.bf16.mxu0 %v6308_v6  ;;  %2499 = vmatprep.subr.bf16.mxu1 %v6309_v21 }
 0x679   :  { %2459 = vmatpush1.bf16.msra.mxu0 %v6310_v31  ;;  %2500 = vmatpush1.bf16.msra.mxu1 %v6311_v5 }
 0x67a   :  { %2460 = vmatprep.subr.bf16.mxu0 %v6312_v11  ;;  %2501 = vmatprep.subr.bf16.mxu1 %v6313_v13 }
 0x67d   :  { %2461 = vmatpush1.bf16.msra.mxu0 %v6314_v40  ;;  %2502 = vmatpush1.bf16.msra.mxu1 %v6315_v16 }
 0x67e   :  { %2512 = vmatprep.subr.bf16.mxu0 %v6316_v39  ;;  %2553 = vmatprep.subr.bf16.mxu1 %v6317_v62 }
 0x6d3   :  { %v2236_v53 = vpop.f32.mrb[28].mxu0  ;;  %v2277_v6 = vpop.f32.mrb[40].mxu1 }
 0x6d4   :  { %v2368_v21 = vadd.f32 %v2277_v6, %v6318_v4  ;;  %v2238_v54 = vpop.f32.mrb[29].mxu0  ;;  %v2279_v31 = vpop.f32.mrb[41].mxu1  ;;  %v2414_v6 = vrot.slane %v4921_v55, 6 }
 0x6d5   :  { %v2369_v5 = vadd.f32 %v2279_v31, %v6319_v47  ;;  %v2240_v60 = vpop.f32.mrb[30].mxu0  ;;  %v2281_v11 = vpop.f32.mrb[42].mxu1  ;;  %v2415_v31 = vrot.slane %v4923_v32, 6  ;;  %v6323_v32 = vld [vmem:[#allocation86_spill] sm:$0xff] }
 0x6d6   :  { %v3540_v50 = vmul.f32 -1.442695, %v2368_v21  ;;  %v2241_v13 = vpop.f32.mrb[31].mxu0  ;;  %v2282_v2 = vpop.f32.mrb[43].mxu1  ;;  %v6320_v21 = vld [vmem:[#allocation73_spill] sm:$0xff] }
 0x6d7   :  { %v3541_v40 = vmul.f32 -1.442695, %v2369_v5  ;;  %v2366_v13 = vadd.f32 %v2236_v53, %v6320_v21  ;;  %v6321_v2 = vld [vmem:[#allocation74_spill] sm:$0xff] }
 0x6d8   :  { %3797 = vpow2.f32 %v3540_v50  ;;  %v2367_v5 = vadd.f32 %v2238_v54, %v6321_v2  ;;  %v6324_v53 = vld [vmem:[#allocation82_spill] sm:$0xff] }
 0x6d9   :  { %3799 = vpow2.f32 %v3541_v40  ;;  %v3538_v50 = vmul.f32 -1.442695, %v2366_v13  ;;  %v6325_v13 = vld [vmem:[#allocation87_spill] sm:$0xff] }
 0x6da   :  { %v3539_v40 = vmul.f32 -1.442695, %v2367_v5 }
 0x6e2   :  { %v3798_v16 = vpop.eup %3797 }
 0x6e3   :  { %v2394_v39 = vadd.f32 1.0, %v3798_v16  ;;  %v3800_v48 = vpop.eup %3799 }
 0x6e4   :  { %v2395_v62 = vadd.f32 1.0, %v3800_v48 }
 0x6e5   :  { %3801 = vrcp.f32 %v2394_v39 }
 0x6e6   :  { %3803 = vrcp.f32 %v2395_v62 }
 0x6e7   :  { %3805 = vpow2.f32 %v3538_v50 }
 0x6e8   :  { %3807 = vpow2.f32 %v3539_v40 }
 0x6ef   :  { %v3802_v4 = vpop.eup %3801 }
 0x6f0   :  { %v2418_v46 = vmul.f32 %v3802_v4, %v2414_v6  ;;  %v3804_v60 = vpop.eup %3803  ;;  %v6322_v4 = vld [vmem:[#allocation81_spill] sm:$0xff] }
 0x6f1   :  { %v2419_v11 = vmul.f32 %v3804_v60, %v2415_v31  ;;  %v3806_v16 = vpop.eup %3805 }
 0x6f2   :  { %v3808_v39 = vpop.eup %3807  ;;  %v2392_v48 = vadd.f32 1.0, %v3806_v16 }
 0x6f3   :  { %v2393_v62 = vadd.f32 1.0, %v3808_v39 }
 0x6f4   :  { %3809 = vrcp.f32 %v2392_v48 }
 0x6f5   :  { %3811 = vrcp.f32 %v2393_v62 }
 0x713   :  { %v2318_v47 = vpop.f32.mrb[32].mxu0  ;;  %v2359_v55 = vpop.f32.mrb[44].mxu1 }
 0x714   :  { %v2370_v6 = vadd.f32 %v2318_v47, %v6322_v4  ;;  %v2372_v24 = vadd.f32 %v2359_v55, %v6323_v32  ;;  %v2320_v31 = vpop.f32.mrb[33].mxu0  ;;  %v2361_v60 = vpop.f32.mrb[45].mxu1 }
 0x715   :  { %v2371_v54 = vadd.f32 %v2320_v31, %v6324_v53  ;;  %v2373_v5 = vadd.f32 %v2361_v60, %v6325_v13  ;;  %v2322_v50 = vpop.f32.mrb[34].mxu0  ;;  %v2363_v40 = vpop.f32.mrb[46].mxu1 }
 0x716   :  { %v3542_v2 = vmul.f32 -1.442695, %v2370_v6  ;;  %3813 = vtanh.f32 %v2372_v24  ;;  %v2323_v16 = vpop.f32.mrb[35].mxu0  ;;  %v2364_v39 = vpop.f32.mrb[47].mxu1 }
 0x717   :  { %v3543_v21 = vmul.f32 -1.442695, %v2371_v54  ;;  %3815 = vtanh.f32 %v2373_v5  ;;  %v3810_v47 = vpop.eup %3809  ;;  %v6331_v39 = vld [vmem:[#allocation132_spill] sm:$0xff] }
 0x718   :  { %3817 = vpow2.f32 %v3542_v2  ;;  %v3812_v48 = vpop.eup %3811 }
 0x719   :  { %3819 = vpow2.f32 %v3543_v21 }
 0x720   :  { %v3814_v55 = vpop.eup %3813 }
 0x721   :  { %v3816_v32 = vpop.eup %3815  ;;  %v2420_v4 = vmul.f32 %v3814_v55, %v3810_v47  ;;  %v6332_v47 = vld [vmem:[#allocation133_spill] sm:$0xff]  ;;  %v6334_v55 = vld [vmem:[#allocation135_spill] sm:$0xff] }
 0x722   :  { %v3818_v62 = vpop.eup %3817  ;;  %v2421_v20 = vmul.f32 %v3816_v32, %v3812_v48  ;;  %v6333_v48 = vld [vmem:[#allocation134_spill] sm:$0xff] }
 0x723   :  { %v3820_v31 = vpop.eup %3819  ;;  %v2396_v53 = vadd.f32 1.0, %v3818_v62  ;;  %v5071_v60 = vadd.f32 %v2420_v4, %v2418_v46  ;;  %v6326_v46 = vld [vmem:[#allocation127_spill] sm:$0xff]  ;;  %v6329_v4 = vld [vmem:[#allocation130_spill] sm:$0xff]  ;;  %v6335_v62 = vld [vmem:[#allocation136_spill] sm:$0xff] }
 0x724   :  { %v2397_v50 = vadd.f32 1.0, %v3820_v31  ;;  %v5073_v6 = vadd.f32 %v2421_v20, %v2419_v11  ;;  %v6327_v20 = vld [vmem:[#allocation128_spill] sm:$0xff]  ;;  %v6328_v11 = vld [vmem:[#allocation129_spill] sm:$0xff] }
 0x725   :  { %3821 = vrcp.f32 %v2396_v53  ;;  %v6330_v53 = vld [vmem:[#allocation131_spill] sm:$0xff]  ;;  %v6336_v31 = vld [vmem:[#allocation137_spill] sm:$0xff] }
 0x726   :  { %3823 = vtanh.f32 %v5071_v60 }
 0x727   :  { %3825 = vrcp.f32 %v2397_v50  ;;  %v6337_v50 = vld [vmem:[#allocation138_spill] sm:$0xff] }
 0x728   :  { %3827 = vtanh.f32 %v5073_v6 }
 0x72f   :  { %v3822_v24 = vpop.eup %3821 }
 0x730   :  { %v3824_v21 = vpop.eup %3823 }
 0x731   :  { %v3826_v2 = vpop.eup %3825  ;;  %v2426_v54 = vmul.f32 %v3824_v21, %v3822_v24  ;;  %v6338_v24 = vld [vmem:[#allocation139_spill] sm:$0xff]  ;;  %v6339_v21 = vld [vmem:[#allocation140_spill] sm:$0xff] }
 0x732   :  { %v3828_v5 = vpop.eup %3827 }
 0x733   :  { %v2427_v40 = vmul.f32 %v3828_v5, %v3826_v2  ;;  %v5077_v16 = vpack.c.bf16 %v2426_v54, %v2426_v54  ;;  %v6340_v2 = vld [vmem:[#allocation141_spill] sm:$0xff]  ;;  %v6341_v54 = vld [vmem:[#allocation142_spill] sm:$0xff]  ;;  %v6342_v5 = vld [vmem:[#allocation143_spill] sm:$0xff] }
 0x735   :  { %v2429_v32 = vpack.c.bf16 %v2427_v40, %v2427_v40  ;;  %v6343_v40 = vld [vmem:[#allocation144_spill] sm:$0xff] }
 0x737   :  { %2462 = vmatprep.mubr.bf16.mxu0 %v2429_v32  ;;  %2503 = vmatprep.mubr.bf16.mxu1 %v2429_v32 }
 0x738   :  { %2463 = vmatmul.mubr.bf16.vlgmr.msra.gmra.mrb[36].mxu0 %v5077_v16  ;;  %2504 = vmatmul.mubr.bf16.vlgmr.msra.gmra.mrb[48].mxu1 %v5077_v16 }
 0x739   :  { %2513 = vmatpush1.bf16.msra.mxu0 %v6042_v26  ;;  %2554 = vmatpush1.bf16.msra.mxu1 %v6043_v15 }
 0x73a   :  { %2544 = vmatprep.mubr.bf16.mxu0 %v2429_v32  ;;  %2585 = vmatprep.mubr.bf16.mxu1 %v2429_v32  ;;  %v6344_v32 = vld [vmem:[#allocation145_spill] sm:$0xff] }
 0x73b   :  { %2514 = vmatprep.subr.bf16.mxu0 %v6044_v7  ;;  %2555 = vmatprep.subr.bf16.mxu1 %v6045_v10 }
 0x73d   :  { %2515 = vmatpush1.bf16.msra.mxu0 %v6046_v8  ;;  %2556 = vmatpush1.bf16.msra.mxu1 %v6047_v30 }
 0x73e   :  { %2516 = vmatprep.subr.bf16.mxu0 %v6048_v38  ;;  %2557 = vmatprep.subr.bf16.mxu1 %v6135_v58 }
 0x741   :  { %2517 = vmatpush1.bf16.msra.mxu0 %v6136_v45  ;;  %2558 = vmatpush1.bf16.msra.mxu1 %v6137_v27 }
 0x742   :  { %2518 = vmatprep.subr.bf16.mxu0 %v6138_v61  ;;  %2559 = vmatprep.subr.bf16.mxu1 %v6139_v28 }
 0x745   :  { %2519 = vmatpush1.bf16.msra.mxu0 %v6140_v33  ;;  %2560 = vmatpush1.bf16.msra.mxu1 %v6141_v36 }
 0x746   :  { %2520 = vmatprep.subr.bf16.mxu0 %v6228_v12  ;;  %2561 = vmatprep.subr.bf16.mxu1 %v6229_v1 }
 0x749   :  { %2521 = vmatpush1.bf16.msra.mxu0 %v6230_v3  ;;  %2562 = vmatpush1.bf16.msra.mxu1 %v6231_v59 }
 0x74a   :  { %2522 = vmatprep.subr.bf16.mxu0 %v6232_v63  ;;  %2563 = vmatprep.subr.bf16.mxu1 %v6233_v35 }
 0x74d   :  { %2523 = vmatpush1.bf16.msra.mxu0 %v6234_v42  ;;  %2564 = vmatpush1.bf16.msra.mxu1 %v6235_v0 }
 0x74e   :  { %2524 = vmatprep.subr.bf16.mxu0 %v6236_v56  ;;  %2565 = vmatprep.subr.bf16.mxu1 %v6237_v41 }
 0x751   :  { %2525 = vmatpush1.bf16.msra.mxu0 %v6238_v22  ;;  %2566 = vmatpush1.bf16.msra.mxu1 %v6239_v14 }
 0x752   :  { %2526 = vmatprep.subr.bf16.mxu0 %v6154_v44  ;;  %2567 = vmatprep.subr.bf16.mxu1 %v6155_v49 }
 0x755   :  { %2527 = vmatpush1.bf16.msra.mxu0 %v6156_v51  ;;  %2568 = vmatpush1.bf16.msra.mxu1 %v6240_v9 }
 0x756   :  { %2528 = vmatprep.subr.bf16.mxu0 %v6241_v34  ;;  %2569 = vmatprep.subr.bf16.mxu1 %v6159_v43 }
 0x759   :  { %2529 = vmatpush1.bf16.msra.mxu0 %v6160_v19  ;;  %2570 = vmatpush1.bf16.msra.mxu1 %v6161_v17 }
 0x75a   :  { %2530 = vmatprep.subr.bf16.mxu0 %v6162_v29  ;;  %2571 = vmatprep.subr.bf16.mxu1 %v6163_v52 }
 0x75d   :  { %2531 = vmatpush1.bf16.msra.mxu0 %v6164_v37  ;;  %2572 = vmatpush1.bf16.msra.mxu1 %v6079_v18 }
 0x75e   :  { %2532 = vmatprep.subr.bf16.mxu0 %v6080_v57  ;;  %2573 = vmatprep.subr.bf16.mxu1 %v6081_v23 }
 0x761   :  { %2533 = vmatpush1.bf16.msra.mxu0 %v6165_v25  ;;  %2574 = vmatpush1.bf16.msra.mxu1 %v6326_v46 }
 0x762   :  { %2534 = vmatprep.subr.bf16.mxu0 %v6327_v20  ;;  %2575 = vmatprep.subr.bf16.mxu1 %v6328_v11 }
 0x765   :  { %2535 = vmatpush1.bf16.msra.mxu0 %v6329_v4  ;;  %2576 = vmatpush1.bf16.msra.mxu1 %v6330_v53  ;;  %v6414_v4 = vld [vmem:[#allocation76_spill] sm:$0xff] }
 0x766   :  { %2536 = vmatprep.subr.bf16.mxu0 %v6331_v39  ;;  %2577 = vmatprep.subr.bf16.mxu1 %v6332_v47  ;;  %v6413_v39 = vld [vmem:[#allocation75_spill] sm:$0xff] }
 0x769   :  { %2537 = vmatpush1.bf16.msra.mxu0 %v6333_v48  ;;  %2578 = vmatpush1.bf16.msra.mxu1 %v6334_v55  ;;  %v6345_v55 = vld [vmem:[#allocation146_spill] sm:$0xff] }
 0x76a   :  { %2538 = vmatprep.subr.bf16.mxu0 %v6335_v62  ;;  %2579 = vmatprep.subr.bf16.mxu1 %v6336_v31  ;;  %v6346_v62 = vld [vmem:[#allocation147_spill] sm:$0xff]  ;;  %v6347_v31 = vld [vmem:[#allocation5_spill] sm:$0xff] }
 0x76d   :  { %2539 = vmatpush1.bf16.msra.mxu0 %v6337_v50  ;;  %2580 = vmatpush1.bf16.msra.mxu1 %v6338_v24  ;;  %v6348_v50 = vld [vmem:[#allocation6_spill] sm:$0xff] }
 0x76e   :  { %2540 = vmatprep.subr.bf16.mxu0 %v6339_v21  ;;  %2581 = vmatprep.subr.bf16.mxu1 %v6340_v2  ;;  %v6349_v2 = vld [vmem:[#allocation7_spill] sm:$0xff]  ;;  %v6358_v21 = vld [vmem:[#allocation16_spill] sm:$0xff] }
 0x771   :  { %2541 = vmatpush1.bf16.msra.mxu0 %v6341_v54  ;;  %2582 = vmatpush1.bf16.msra.mxu1 %v6342_v5  ;;  %v6350_v54 = vld [vmem:[#allocation8_spill] sm:$0xff]  ;;  %v6351_v5 = vld [vmem:[#allocation9_spill] sm:$0xff] }
 0x772   :  { %2542 = vmatprep.subr.bf16.mxu0 %v6343_v40  ;;  %2583 = vmatprep.subr.bf16.mxu1 %v6344_v32  ;;  %v6352_v40 = vld [vmem:[#allocation10_spill] sm:$0xff]  ;;  %v6353_v32 = vld [vmem:[#allocation11_spill] sm:$0xff] }
 0x775   :  { %2543 = vmatpush1.bf16.msra.mxu0 %v6345_v55  ;;  %2584 = vmatpush1.bf16.msra.mxu1 %v6346_v62  ;;  %v6354_v55 = vld [vmem:[#allocation12_spill] sm:$0xff]  ;;  %v6355_v62 = vld [vmem:[#allocation13_spill] sm:$0xff] }
 0x776   :  { %2688 = vmatprep.subr.bf16.mxu0 %v6347_v31  ;;  %2729 = vmatprep.subr.bf16.mxu1 %v6348_v50  ;;  %v6356_v31 = vld [vmem:[#allocation14_spill] sm:$0xff]  ;;  %v6357_v50 = vld [vmem:[#allocation15_spill] sm:$0xff] }
 0x778   :  { %2545 = vmatmul.mubr.bf16.vlgmr.msra.gmra.mrb[40].mxu0 %v5077_v16  ;;  %2586 = vmatmul.mubr.bf16.vlgmr.msra.gmra.mrb[52].mxu1 %v5077_v16  ;;  %v6359_v16 = vld [vmem:[#allocation17_spill] sm:$0xff] }
 0x779   :  { %2689 = vmatpush1.bf16.msra.mxu0 %v6349_v2  ;;  %2730 = vmatpush1.bf16.msra.mxu1 %v6350_v54  ;;  %v6360_v2 = vld [vmem:[#allocation18_spill] sm:$0xff]  ;;  %v6361_v54 = vld [vmem:[#allocation19_spill] sm:$0xff] }
 0x77a   :  { %2690 = vmatprep.subr.bf16.mxu0 %v6351_v5  ;;  %2731 = vmatprep.subr.bf16.mxu1 %v6352_v40  ;;  %v6362_v5 = vld [vmem:[#allocation20_spill] sm:$0xff]  ;;  %v6363_v40 = vld [vmem:[#allocation21_spill] sm:$0xff] }
 0x77d   :  { %2691 = vmatpush1.bf16.msra.mxu0 %v6353_v32  ;;  %2732 = vmatpush1.bf16.msra.mxu1 %v6354_v55  ;;  %v6364_v32 = vld [vmem:[#allocation22_spill] sm:$0xff]  ;;  %v6365_v55 = vld [vmem:[#allocation23_spill] sm:$0xff] }
 0x77e   :  { %2692 = vmatprep.subr.bf16.mxu0 %v6355_v62  ;;  %2733 = vmatprep.subr.bf16.mxu1 %v6356_v31  ;;  %v6366_v62 = vld [vmem:[#allocation24_spill] sm:$0xff]  ;;  %v6367_v31 = vld [vmem:[#allocation25_spill] sm:$0xff] }
 0x781   :  { %2693 = vmatpush1.bf16.msra.mxu0 %v6357_v50  ;;  %2734 = vmatpush1.bf16.msra.mxu1 %v6358_v21  ;;  %v6368_v50 = vld [vmem:[#allocation26_spill] sm:$0xff]  ;;  %v6369_v21 = vld [vmem:[#allocation27_spill] sm:$0xff] }
 0x782   :  { %2694 = vmatprep.subr.bf16.mxu0 %v6359_v16  ;;  %2735 = vmatprep.subr.bf16.mxu1 %v6360_v2  ;;  %v6370_v16 = vld [vmem:[#allocation28_spill] sm:$0xff]  ;;  %v6371_v2 = vld [vmem:[#allocation29_spill] sm:$0xff] }
 0x785   :  { %2695 = vmatpush1.bf16.msra.mxu0 %v6361_v54  ;;  %2736 = vmatpush1.bf16.msra.mxu1 %v6362_v5  ;;  %v6372_v54 = vld [vmem:[#allocation30_spill] sm:$0xff]  ;;  %v6373_v5 = vld [vmem:[#allocation31_spill] sm:$0xff] }
 0x786   :  { %2696 = vmatprep.subr.bf16.mxu0 %v6363_v40  ;;  %2737 = vmatprep.subr.bf16.mxu1 %v6364_v32  ;;  %v6374_v40 = vld [vmem:[#allocation32_spill] sm:$0xff]  ;;  %v6375_v32 = vld [vmem:[#allocation33_spill] sm:$0xff] }
 0x789   :  { %2697 = vmatpush1.bf16.msra.mxu0 %v6365_v55  ;;  %2738 = vmatpush1.bf16.msra.mxu1 %v6366_v62  ;;  %v6376_v55 = vld [vmem:[#allocation34_spill] sm:$0xff]  ;;  %v6377_v62 = vld [vmem:[#allocation35_spill] sm:$0xff] }
 0x78a   :  { %2698 = vmatprep.subr.bf16.mxu0 %v6367_v31  ;;  %2739 = vmatprep.subr.bf16.mxu1 %v6368_v50  ;;  %v6378_v31 = vld [vmem:[#allocation36_spill] sm:$0xff]  ;;  %v6379_v50 = vld [vmem:[#allocation37_spill] sm:$0xff] }
 0x78d   :  { %2699 = vmatpush1.bf16.msra.mxu0 %v6369_v21  ;;  %2740 = vmatpush1.bf16.msra.mxu1 %v6370_v16  ;;  %v6380_v21 = vld [vmem:[#allocation38_spill] sm:$0xff]  ;;  %v6381_v16 = vld [vmem:[#allocation39_spill] sm:$0xff] }
 0x78e   :  { %2700 = vmatprep.subr.bf16.mxu0 %v6371_v2  ;;  %2741 = vmatprep.subr.bf16.mxu1 %v6372_v54  ;;  %v6382_v2 = vld [vmem:[#allocation40_spill] sm:$0xff]  ;;  %v6383_v54 = vld [vmem:[#allocation41_spill] sm:$0xff] }
 0x791   :  { %2701 = vmatpush1.bf16.msra.mxu0 %v6373_v5  ;;  %2742 = vmatpush1.bf16.msra.mxu1 %v6374_v40  ;;  %v6384_v5 = vld [vmem:[#allocation42_spill] sm:$0xff]  ;;  %v6385_v40 = vld [vmem:[#allocation43_spill] sm:$0xff] }
 0x792   :  { %2702 = vmatprep.subr.bf16.mxu0 %v6375_v32  ;;  %2743 = vmatprep.subr.bf16.mxu1 %v6376_v55  ;;  %v6386_v32 = vld [vmem:[#allocation44_spill] sm:$0xff]  ;;  %v6387_v55 = vld [vmem:[#allocation45_spill] sm:$0xff] }
 0x795   :  { %2703 = vmatpush1.bf16.msra.mxu0 %v6377_v62  ;;  %2744 = vmatpush1.bf16.msra.mxu1 %v6378_v31  ;;  %v6388_v62 = vld [vmem:[#allocation46_spill] sm:$0xff]  ;;  %v6389_v31 = vld [vmem:[#allocation47_spill] sm:$0xff] }
 0x796   :  { %2704 = vmatprep.subr.bf16.mxu0 %v6379_v50  ;;  %2745 = vmatprep.subr.bf16.mxu1 %v6380_v21  ;;  %v6390_v50 = vld [vmem:[#allocation48_spill] sm:$0xff]  ;;  %v6391_v21 = vld [vmem:[#allocation49_spill] sm:$0xff] }
 0x799   :  { %2705 = vmatpush1.bf16.msra.mxu0 %v6381_v16  ;;  %2746 = vmatpush1.bf16.msra.mxu1 %v6382_v2  ;;  %v6392_v16 = vld [vmem:[#allocation50_spill] sm:$0xff]  ;;  %v6393_v2 = vld [vmem:[#allocation51_spill] sm:$0xff] }
 0x79a   :  { %2706 = vmatprep.subr.bf16.mxu0 %v6383_v54  ;;  %2747 = vmatprep.subr.bf16.mxu1 %v6384_v5  ;;  %v6394_v54 = vld [vmem:[#allocation52_spill] sm:$0xff]  ;;  %v6395_v5 = vld [vmem:[#allocation53_spill] sm:$0xff] }
 0x79d   :  { %2707 = vmatpush1.bf16.msra.mxu0 %v6385_v40  ;;  %2748 = vmatpush1.bf16.msra.mxu1 %v6386_v32  ;;  %v6396_v40 = vld [vmem:[#allocation55_spill] sm:$0xff]  ;;  %v6397_v32 = vld [vmem:[#allocation54_spill] sm:$0xff] }
 0x79e   :  { %2708 = vmatprep.subr.bf16.mxu0 %v6387_v55  ;;  %2749 = vmatprep.subr.bf16.mxu1 %v6388_v62  ;;  %v6398_v55 = vld [vmem:[#allocation56_spill] sm:$0xff]  ;;  %v6399_v62 = vld [vmem:[#allocation57_spill] sm:$0xff] }
 0x7a1   :  { %2709 = vmatpush1.bf16.msra.mxu0 %v6389_v31  ;;  %2750 = vmatpush1.bf16.msra.mxu1 %v6390_v50  ;;  %v6400_v31 = vld [vmem:[#allocation58_spill] sm:$0xff]  ;;  %v6401_v50 = vld [vmem:[#allocation59_spill] sm:$0xff] }
 0x7a2   :  { %2710 = vmatprep.subr.bf16.mxu0 %v6391_v21  ;;  %2751 = vmatprep.subr.bf16.mxu1 %v6392_v16  ;;  %v6402_v21 = vld [vmem:[#allocation60_spill] sm:$0xff]  ;;  %v6403_v16 = vld [vmem:[#allocation61_spill] sm:$0xff] }
 0x7a5   :  { %2711 = vmatpush1.bf16.msra.mxu0 %v6393_v2  ;;  %2752 = vmatpush1.bf16.msra.mxu1 %v6394_v54  ;;  %v6404_v2 = vld [vmem:[#allocation62_spill] sm:$0xff]  ;;  %v6405_v54 = vld [vmem:[#allocation63_spill] sm:$0xff] }
 0x7a6   :  { %2712 = vmatprep.subr.bf16.mxu0 %v6395_v5  ;;  %2753 = vmatprep.subr.bf16.mxu1 %v6396_v40  ;;  %v6406_v5 = vld [vmem:[#allocation64_spill] sm:$0xff]  ;;  %v6407_v40 = vld [vmem:[#allocation65_spill] sm:$0xff] }
 0x7a9   :  { %2713 = vmatpush1.bf16.msra.mxu0 %v6397_v32  ;;  %2754 = vmatpush1.bf16.msra.mxu1 %v6398_v55  ;;  %v6408_v32 = vld [vmem:[#allocation66_spill] sm:$0xff]  ;;  %v6409_v55 = vld [vmem:[#allocation67_spill] sm:$0xff] }
 0x7aa   :  { %2714 = vmatprep.subr.bf16.mxu0 %v6399_v62  ;;  %2755 = vmatprep.subr.bf16.mxu1 %v6400_v31  ;;  %v6410_v62 = vld [vmem:[#allocation68_spill] sm:$0xff]  ;;  %v6411_v31 = vld [vmem:[#allocation69_spill] sm:$0xff] }
 0x7ad   :  { %2715 = vmatpush1.bf16.msra.mxu0 %v6401_v50  ;;  %2756 = vmatpush1.bf16.msra.mxu1 %v6402_v21  ;;  %v6412_v50 = vld [vmem:[#allocation70_spill] sm:$0xff] }
 0x7ae   :  { %2716 = vmatprep.subr.bf16.mxu0 %v6403_v16  ;;  %2757 = vmatprep.subr.bf16.mxu1 %v6404_v2 }
 0x7b1   :  { %2717 = vmatpush1.bf16.msra.mxu0 %v6405_v54  ;;  %2758 = vmatpush1.bf16.msra.mxu1 %v6406_v5 }
 0x7b2   :  { %2718 = vmatprep.subr.bf16.mxu0 %v6407_v40  ;;  %2759 = vmatprep.subr.bf16.mxu1 %v6408_v32 }
 0x7b5   :  { %2719 = vmatpush1.bf16.msra.mxu0 %v6409_v55  ;;  %2760 = vmatpush1.bf16.msra.mxu1 %v6410_v62 }
 0x7b6   :  { %2770 = vmatprep.subr.bf16.mxu0 %v6411_v31  ;;  %2811 = vmatprep.subr.bf16.mxu1 %v6412_v50 }
 0x80b   :  { %v2464_v21 = vpop.f32.mrb[36].mxu0  ;;  %v2505_v16 = vpop.f32.mrb[48].mxu1 }
 0x80c   :  { %v2604_v24 = vrot.slane %v2505_v16, 6  ;;  %v2466_v2 = vpop.f32.mrb[37].mxu0  ;;  %v2507_v48 = vpop.f32.mrb[49].mxu1 }
 0x80d   :  { %v2605_v54 = vrot.slane %v2507_v48, 6  ;;  %v2468_v47 = vpop.f32.mrb[38].mxu0  ;;  %v2509_v5 = vpop.f32.mrb[50].mxu1  ;;  %v2666_v48 = vrot.slane %v5071_v60, 6 }
 0x80e   :  { %v2620_v40 = vadd.f32 %v2604_v24, %v6413_v39  ;;  %v2469_v53 = vpop.f32.mrb[39].mxu0  ;;  %v2510_v32 = vpop.f32.mrb[51].mxu1  ;;  %v2667_v5 = vrot.slane %v5073_v6, 6  ;;  %v2602_v39 = vrot.slane %v2464_v21, 6 }
 0x80f   :  { %v2621_v55 = vadd.f32 %v2605_v54, %v6414_v4  ;;  %v2603_v54 = vrot.slane %v2466_v2, 6 }
 0x810   :  { %v3546_v11 = vmul.f32 -1.442695, %v2620_v40  ;;  %v6415_v40 = vld [vmem:[#allocation73_spill] sm:$0xff] }
 0x811   :  { %v3547_v62 = vmul.f32 -1.442695, %v2621_v55  ;;  %v2618_v55 = vadd.f32 %v2602_v39, %v6415_v40 }
 0x812   :  { %3829 = vpow2.f32 %v3546_v11  ;;  %v6416_v11 = vld [vmem:[#allocation74_spill] sm:$0xff] }
 0x813   :  { %3831 = vpow2.f32 %v3547_v62  ;;  %v2619_v62 = vadd.f32 %v2603_v54, %v6416_v11  ;;  %v3544_v4 = vmul.f32 -1.442695, %v2618_v55  ;;  %v6417_v54 = vld [vmem:[#allocation81_spill] sm:$0xff] }
 0x81c   :  { %v3830_v31 = vpop.eup %3829 }
 0x81d   :  { %v2646_v50 = vadd.f32 1.0, %v3830_v31  ;;  %v3832_v20 = vpop.eup %3831  ;;  %v3545_v31 = vmul.f32 -1.442695, %v2619_v62  ;;  %v6418_v62 = vld [vmem:[#allocation86_spill] sm:$0xff] }
 0x81e   :  { %v2647_v16 = vadd.f32 1.0, %v3832_v20 }
 0x81f   :  { %3833 = vrcp.f32 %v2646_v50 }
 0x820   :  { %3835 = vrcp.f32 %v2647_v16 }
 0x821   :  { %3837 = vpow2.f32 %v3544_v4 }
 0x822   :  { %3839 = vpow2.f32 %v3545_v31 }
 0x829   :  { %v3834_v47 = vpop.eup %3833 }
 0x82a   :  { %v2670_v24 = vmul.f32 %v3834_v47, %v2666_v48  ;;  %v3836_v53 = vpop.eup %3835 }
 0x82b   :  { %v2671_v32 = vmul.f32 %v3836_v53, %v2667_v5  ;;  %v3838_v20 = vpop.eup %3837 }
 0x82c   :  { %v3840_v50 = vpop.eup %3839  ;;  %v2644_v16 = vadd.f32 1.0, %v3838_v20  ;;  %v6419_v20 = vld [vmem:[#allocation82_spill] sm:$0xff] }
 0x82d   :  { %v2645_v60 = vadd.f32 1.0, %v3840_v50 }
 0x82e   :  { %3841 = vrcp.f32 %v2644_v16 }
 0x82f   :  { %3843 = vrcp.f32 %v2645_v60 }
 0x84b   :  { %v2546_v46 = vpop.f32.mrb[40].mxu0  ;;  %v2587_v25 = vpop.f32.mrb[52].mxu1 }
 0x84c   :  { %v2606_v6 = vrot.slane %v2546_v46, 6  ;;  %v2608_v48 = vrot.slane %v2587_v25, 6  ;;  %v2548_v47 = vpop.f32.mrb[41].mxu0  ;;  %v2589_v5 = vpop.f32.mrb[53].mxu1 }
 0x84d   :  { %v2607_v21 = vrot.slane %v2548_v47, 6  ;;  %v2609_v2 = vrot.slane %v2589_v5, 6  ;;  %v2550_v53 = vpop.f32.mrb[42].mxu0  ;;  %v2591_v39 = vpop.f32.mrb[54].mxu1 }
 0x84e   :  { %v2622_v55 = vadd.f32 %v2606_v6, %v6417_v54  ;;  %v2624_v4 = vadd.f32 %v2608_v48, %v6418_v62  ;;  %v2551_v31 = vpop.f32.mrb[43].mxu0  ;;  %v2592_v11 = vpop.f32.mrb[55].mxu1 }
 0x84f   :  { %v2623_v50 = vadd.f32 %v2607_v21, %v6419_v20  ;;  %v2625_v40 = vadd.f32 %v2609_v2, %v6325_v13  ;;  %v3842_v47 = vpop.eup %3841 }
 0x850   :  { %v3548_v46 = vmul.f32 -1.442695, %v2622_v55  ;;  %3845 = vtanh.f32 %v2624_v4  ;;  %v3844_v5 = vpop.eup %3843 }
 0x851   :  { %v3549_v25 = vmul.f32 -1.442695, %v2623_v50  ;;  %3847 = vtanh.f32 %v2625_v40 }
 0x852   :  { %3849 = vpow2.f32 %v3548_v46 }
 0x853   :  { %3851 = vpow2.f32 %v3549_v25 }
 0x85a   :  { %v3846_v16 = vpop.eup %3845 }
 0x85b   :  { %v3848_v53 = vpop.eup %3847  ;;  %v2672_v6 = vmul.f32 %v3846_v16, %v3842_v47  ;;  %v6421_v16 = vld [vmem:[#allocation127_spill] sm:$0xff] }
 0x85c   :  { %v3850_v39 = vpop.eup %3849  ;;  %v2673_v48 = vmul.f32 %v3848_v53, %v3844_v5  ;;  %v6422_v53 = vld [vmem:[#allocation128_spill] sm:$0xff] }
 0x85d   :  { %v3852_v31 = vpop.eup %3851  ;;  %v2648_v11 = vadd.f32 1.0, %v3850_v39  ;;  %v5221_v60 = vadd.f32 %v2672_v6, %v2670_v24  ;;  %v6423_v6 = vld [vmem:[#allocation129_spill] sm:$0xff]  ;;  %v6424_v39 = vld [vmem:[#allocation130_spill] sm:$0xff] }
 0x85e   :  { %v2649_v21 = vadd.f32 1.0, %v3852_v31  ;;  %v5223_v20 = vadd.f32 %v2673_v48, %v2671_v32  ;;  %v6420_v32 = vld [vmem:[#allocation126_spill] sm:$0xff]  ;;  %v6425_v48 = vld [vmem:[#allocation131_spill] sm:$0xff]  ;;  %v6426_v31 = vld [vmem:[#allocation132_spill] sm:$0xff] }
 0x85f   :  { %3853 = vrcp.f32 %v2648_v11  ;;  %v6427_v11 = vld [vmem:[#allocation133_spill] sm:$0xff] }
 0x860   :  { %3855 = vtanh.f32 %v5221_v60 }
 0x861   :  { %3857 = vrcp.f32 %v2649_v21  ;;  %v6428_v21 = vld [vmem:[#allocation134_spill] sm:$0xff] }
 0x862   :  { %3859 = vtanh.f32 %v5223_v20 }
 0x869   :  { %v3854_v40 = vpop.eup %3853 }
 0x86a   :  { %v3856_v2 = vpop.eup %3855 }
 0x86b   :  { %v3858_v55 = vpop.eup %3857  ;;  %v2678_v4 = vmul.f32 %v3856_v2, %v3854_v40  ;;  %v6429_v40 = vld [vmem:[#allocation135_spill] sm:$0xff]  ;;  %v6430_v2 = vld [vmem:[#allocation136_spill] sm:$0xff] }
 0x86c   :  { %v3860_v50 = vpop.eup %3859 }
 0x86d   :  { %v2679_v46 = vmul.f32 %v3860_v50, %v3858_v55  ;;  %v2680_v25 = vpack.c.bf16 %v2678_v4, %v2678_v4  ;;  %v6431_v55 = vld [vmem:[#allocation137_spill] sm:$0xff]  ;;  %v6432_v4 = vld [vmem:[#allocation138_spill] sm:$0xff]  ;;  %v6433_v50 = vld [vmem:[#allocation139_spill] sm:$0xff] }
 0x86f   :  { %v2681_v47 = vpack.c.bf16 %v2679_v46, %v2679_v46  ;;  %v5227_v24 = vrot.slane %v2680_v25, 1  ;;  %v6434_v46 = vld [vmem:[#allocation140_spill] sm:$0xff]  ;;  %v6435_v25 = vld [vmem:[#allocation141_spill] sm:$0xff] }
 0x871   :  { %v2685_v5 = vrot.slane %v2681_v47, 1  ;;  %v6436_v47 = vld [vmem:[#allocation142_spill] sm:$0xff] }
 0x873   :  { %2720 = vmatprep.mubr.bf16.mxu0 %v2685_v5  ;;  %2761 = vmatprep.mubr.bf16.mxu1 %v2685_v5 }
 0x874   :  { %2721 = vmatmul.mubr.bf16.vlgmr.msra.gmra.mrb[44].mxu0 %v5227_v24  ;;  %2762 = vmatmul.mubr.bf16.vlgmr.msra.gmra.mrb[56].mxu1 %v5227_v24 }
 0x875   :  { %2771 = vmatpush1.bf16.msra.mxu0 %v6042_v26  ;;  %2812 = vmatpush1.bf16.msra.mxu1 %v6043_v15 }
 0x876   :  { %2802 = vmatprep.mubr.bf16.mxu0 %v2685_v5  ;;  %2843 = vmatprep.mubr.bf16.mxu1 %v2685_v5  ;;  %v6437_v5 = vld [vmem:[#allocation143_spill] sm:$0xff] }
 0x877   :  { %2772 = vmatprep.subr.bf16.mxu0 %v6044_v7  ;;  %2813 = vmatprep.subr.bf16.mxu1 %v6045_v10 }
 0x879   :  { %2773 = vmatpush1.bf16.msra.mxu0 %v6046_v8  ;;  %2814 = vmatpush1.bf16.msra.mxu1 %v6047_v30 }
 0x87a   :  { %2774 = vmatprep.subr.bf16.mxu0 %v6048_v38  ;;  %2815 = vmatprep.subr.bf16.mxu1 %v6135_v58 }
 0x87d   :  { %2775 = vmatpush1.bf16.msra.mxu0 %v6136_v45  ;;  %2816 = vmatpush1.bf16.msra.mxu1 %v6137_v27 }
 0x87e   :  { %2776 = vmatprep.subr.bf16.mxu0 %v6138_v61  ;;  %2817 = vmatprep.subr.bf16.mxu1 %v6139_v28 }
 0x881   :  { %2777 = vmatpush1.bf16.msra.mxu0 %v6140_v33  ;;  %2818 = vmatpush1.bf16.msra.mxu1 %v6141_v36 }
 0x882   :  { %2778 = vmatprep.subr.bf16.mxu0 %v6228_v12  ;;  %2819 = vmatprep.subr.bf16.mxu1 %v6229_v1 }
 0x885   :  { %2779 = vmatpush1.bf16.msra.mxu0 %v6230_v3  ;;  %2820 = vmatpush1.bf16.msra.mxu1 %v6231_v59 }
 0x886   :  { %2780 = vmatprep.subr.bf16.mxu0 %v6232_v63  ;;  %2821 = vmatprep.subr.bf16.mxu1 %v6233_v35 }
 0x889   :  { %2781 = vmatpush1.bf16.msra.mxu0 %v6234_v42  ;;  %2822 = vmatpush1.bf16.msra.mxu1 %v6235_v0 }
 0x88a   :  { %2782 = vmatprep.subr.bf16.mxu0 %v6236_v56  ;;  %2823 = vmatprep.subr.bf16.mxu1 %v6237_v41 }
 0x88d   :  { %2783 = vmatpush1.bf16.msra.mxu0 %v6238_v22  ;;  %2824 = vmatpush1.bf16.msra.mxu1 %v6239_v14 }
 0x88e   :  { %2784 = vmatprep.subr.bf16.mxu0 %v6154_v44  ;;  %2825 = vmatprep.subr.bf16.mxu1 %v6155_v49 }
 0x891   :  { %2785 = vmatpush1.bf16.msra.mxu0 %v6156_v51  ;;  %2826 = vmatpush1.bf16.msra.mxu1 %v6240_v9 }
 0x892   :  { %2786 = vmatprep.subr.bf16.mxu0 %v6241_v34  ;;  %2827 = vmatprep.subr.bf16.mxu1 %v6159_v43 }
 0x895   :  { %2787 = vmatpush1.bf16.msra.mxu0 %v6160_v19  ;;  %2828 = vmatpush1.bf16.msra.mxu1 %v6161_v17 }
 0x896   :  { %2788 = vmatprep.subr.bf16.mxu0 %v6162_v29  ;;  %2829 = vmatprep.subr.bf16.mxu1 %v6163_v52 }
 0x899   :  { %2789 = vmatpush1.bf16.msra.mxu0 %v6164_v37  ;;  %2830 = vmatpush1.bf16.msra.mxu1 %v6079_v18 }
 0x89a   :  { %2790 = vmatprep.subr.bf16.mxu0 %v6080_v57  ;;  %2831 = vmatprep.subr.bf16.mxu1 %v6081_v23 }
 0x89d   :  { %2791 = vmatpush1.bf16.msra.mxu0 %v6420_v32  ;;  %2832 = vmatpush1.bf16.msra.mxu1 %v6421_v16 }
 0x89e   :  { %2792 = vmatprep.subr.bf16.mxu0 %v6422_v53  ;;  %2833 = vmatprep.subr.bf16.mxu1 %v6423_v6  ;;  %v6509_v53 = vld [vmem:[#allocation76_spill] sm:$0xff] }
 0x8a1   :  { %2793 = vmatpush1.bf16.msra.mxu0 %v6424_v39  ;;  %2834 = vmatpush1.bf16.msra.mxu1 %v6425_v48  ;;  %v6508_v39 = vld [vmem:[#allocation75_spill] sm:$0xff] }
 0x8a2   :  { %2794 = vmatprep.subr.bf16.mxu0 %v6426_v31  ;;  %2835 = vmatprep.subr.bf16.mxu1 %v6427_v11  ;;  %v6438_v11 = vld [vmem:[#allocation144_spill] sm:$0xff] }
 0x8a5   :  { %2795 = vmatpush1.bf16.msra.mxu0 %v6428_v21  ;;  %2836 = vmatpush1.bf16.msra.mxu1 %v6429_v40  ;;  %v6439_v21 = vld [vmem:[#allocation145_spill] sm:$0xff]  ;;  %v6440_v40 = vld [vmem:[#allocation146_spill] sm:$0xff] }
 0x8a6   :  { %2796 = vmatprep.subr.bf16.mxu0 %v6430_v2  ;;  %2837 = vmatprep.subr.bf16.mxu1 %v6431_v55  ;;  %v6441_v2 = vld [vmem:[#allocation147_spill] sm:$0xff]  ;;  %v6442_v55 = vld [vmem:[#allocation5_spill] sm:$0xff] }
 0x8a9   :  { %2797 = vmatpush1.bf16.msra.mxu0 %v6432_v4  ;;  %2838 = vmatpush1.bf16.msra.mxu1 %v6433_v50  ;;  %v6443_v4 = vld [vmem:[#allocation6_spill] sm:$0xff] }
 0x8aa   :  { %2798 = vmatprep.subr.bf16.mxu0 %v6434_v46  ;;  %2839 = vmatprep.subr.bf16.mxu1 %v6435_v25  ;;  %v6444_v25 = vld [vmem:[#allocation7_spill] sm:$0xff]  ;;  %v6453_v46 = vld [vmem:[#allocation16_spill] sm:$0xff] }
 0x8ad   :  { %2799 = vmatpush1.bf16.msra.mxu0 %v6436_v47  ;;  %2840 = vmatpush1.bf16.msra.mxu1 %v6437_v5  ;;  %v6445_v47 = vld [vmem:[#allocation8_spill] sm:$0xff]  ;;  %v6446_v5 = vld [vmem:[#allocation9_spill] sm:$0xff] }
 0x8ae   :  { %2800 = vmatprep.subr.bf16.mxu0 %v6438_v11  ;;  %2841 = vmatprep.subr.bf16.mxu1 %v6439_v21  ;;  %v6447_v11 = vld [vmem:[#allocation10_spill] sm:$0xff]  ;;  %v6448_v21 = vld [vmem:[#allocation11_spill] sm:$0xff] }
 0x8b1   :  { %2801 = vmatpush1.bf16.msra.mxu0 %v6440_v40  ;;  %2842 = vmatpush1.bf16.msra.mxu1 %v6441_v2  ;;  %v6449_v40 = vld [vmem:[#allocation12_spill] sm:$0xff]  ;;  %v6450_v2 = vld [vmem:[#allocation13_spill] sm:$0xff] }
 0x8b2   :  { %2946 = vmatprep.subr.bf16.mxu0 %v6442_v55  ;;  %2987 = vmatprep.subr.bf16.mxu1 %v6443_v4  ;;  %v6451_v55 = vld [vmem:[#allocation14_spill] sm:$0xff]  ;;  %v6452_v4 = vld [vmem:[#allocation15_spill] sm:$0xff] }
 0x8b4   :  { %2803 = vmatmul.mubr.bf16.vlgmr.msra.gmra.mrb[48].mxu0 %v5227_v24  ;;  %2844 = vmatmul.mubr.bf16.vlgmr.msra.gmra.mrb[60].mxu1 %v5227_v24  ;;  %v6454_v24 = vld [vmem:[#allocation17_spill] sm:$0xff] }
 0x8b5   :  { %2947 = vmatpush1.bf16.msra.mxu0 %v6444_v25  ;;  %2988 = vmatpush1.bf16.msra.mxu1 %v6445_v47  ;;  %v6455_v25 = vld [vmem:[#allocation18_spill] sm:$0xff]  ;;  %v6456_v47 = vld [vmem:[#allocation19_spill] sm:$0xff] }
 0x8b6   :  { %2948 = vmatprep.subr.bf16.mxu0 %v6446_v5  ;;  %2989 = vmatprep.subr.bf16.mxu1 %v6447_v11  ;;  %v6457_v5 = vld [vmem:[#allocation20_spill] sm:$0xff]  ;;  %v6458_v11 = vld [vmem:[#allocation21_spill] sm:$0xff] }
 0x8b9   :  { %2949 = vmatpush1.bf16.msra.mxu0 %v6448_v21  ;;  %2990 = vmatpush1.bf16.msra.mxu1 %v6449_v40  ;;  %v6459_v21 = vld [vmem:[#allocation22_spill] sm:$0xff]  ;;  %v6460_v40 = vld [vmem:[#allocation23_spill] sm:$0xff] }
 0x8ba   :  { %2950 = vmatprep.subr.bf16.mxu0 %v6450_v2  ;;  %2991 = vmatprep.subr.bf16.mxu1 %v6451_v55  ;;  %v6461_v2 = vld [vmem:[#allocation24_spill] sm:$0xff]  ;;  %v6462_v55 = vld [vmem:[#allocation25_spill] sm:$0xff] }
 0x8bd   :  { %2951 = vmatpush1.bf16.msra.mxu0 %v6452_v4  ;;  %2992 = vmatpush1.bf16.msra.mxu1 %v6453_v46  ;;  %v6463_v4 = vld [vmem:[#allocation26_spill] sm:$0xff]  ;;  %v6464_v46 = vld [vmem:[#allocation27_spill] sm:$0xff] }
 0x8be   :  { %2952 = vmatprep.subr.bf16.mxu0 %v6454_v24  ;;  %2993 = vmatprep.subr.bf16.mxu1 %v6455_v25  ;;  %v6465_v24 = vld [vmem:[#allocation28_spill] sm:$0xff]  ;;  %v6466_v25 = vld [vmem:[#allocation29_spill] sm:$0xff] }
 0x8c1   :  { %2953 = vmatpush1.bf16.msra.mxu0 %v6456_v47  ;;  %2994 = vmatpush1.bf16.msra.mxu1 %v6457_v5  ;;  %v6467_v47 = vld [vmem:[#allocation30_spill] sm:$0xff]  ;;  %v6468_v5 = vld [vmem:[#allocation31_spill] sm:$0xff] }
 0x8c2   :  { %2954 = vmatprep.subr.bf16.mxu0 %v6458_v11  ;;  %2995 = vmatprep.subr.bf16.mxu1 %v6459_v21  ;;  %v6469_v11 = vld [vmem:[#allocation32_spill] sm:$0xff]  ;;  %v6470_v21 = vld [vmem:[#allocation33_spill] sm:$0xff] }
 0x8c5   :  { %2955 = vmatpush1.bf16.msra.mxu0 %v6460_v40  ;;  %2996 = vmatpush1.bf16.msra.mxu1 %v6461_v2  ;;  %v6471_v40 = vld [vmem:[#allocation34_spill] sm:$0xff]  ;;  %v6472_v2 = vld [vmem:[#allocation35_spill] sm:$0xff] }
 0x8c6   :  { %2956 = vmatprep.subr.bf16.mxu0 %v6462_v55  ;;  %2997 = vmatprep.subr.bf16.mxu1 %v6463_v4  ;;  %v6473_v55 = vld [vmem:[#allocation36_spill] sm:$0xff]  ;;  %v6474_v4 = vld [vmem:[#allocation37_spill] sm:$0xff] }
 0x8c9   :  { %2957 = vmatpush1.bf16.msra.mxu0 %v6464_v46  ;;  %2998 = vmatpush1.bf16.msra.mxu1 %v6465_v24  ;;  %v6475_v46 = vld [vmem:[#allocation38_spill] sm:$0xff]  ;;  %v6476_v24 = vld [vmem:[#allocation39_spill] sm:$0xff] }
 0x8ca   :  { %2958 = vmatprep.subr.bf16.mxu0 %v6466_v25  ;;  %2999 = vmatprep.subr.bf16.mxu1 %v6467_v47  ;;  %v6477_v25 = vld [vmem:[#allocation40_spill] sm:$0xff]  ;;  %v6478_v47 = vld [vmem:[#allocation41_spill] sm:$0xff] }
 0x8cd   :  { %2959 = vmatpush1.bf16.msra.mxu0 %v6468_v5  ;;  %3000 = vmatpush1.bf16.msra.mxu1 %v6469_v11  ;;  %v6479_v5 = vld [vmem:[#allocation42_spill] sm:$0xff]  ;;  %v6480_v11 = vld [vmem:[#allocation43_spill] sm:$0xff] }
 0x8ce   :  { %2960 = vmatprep.subr.bf16.mxu0 %v6470_v21  ;;  %3001 = vmatprep.subr.bf16.mxu1 %v6471_v40  ;;  %v6481_v21 = vld [vmem:[#allocation44_spill] sm:$0xff]  ;;  %v6482_v40 = vld [vmem:[#allocation45_spill] sm:$0xff] }
 0x8d1   :  { %2961 = vmatpush1.bf16.msra.mxu0 %v6472_v2  ;;  %3002 = vmatpush1.bf16.msra.mxu1 %v6473_v55  ;;  %v6483_v2 = vld [vmem:[#allocation46_spill] sm:$0xff]  ;;  %v6484_v55 = vld [vmem:[#allocation47_spill] sm:$0xff] }
 0x8d2   :  { %2962 = vmatprep.subr.bf16.mxu0 %v6474_v4  ;;  %3003 = vmatprep.subr.bf16.mxu1 %v6475_v46  ;;  %v6485_v4 = vld [vmem:[#allocation48_spill] sm:$0xff]  ;;  %v6486_v46 = vld [vmem:[#allocation49_spill] sm:$0xff] }
 0x8d5   :  { %2963 = vmatpush1.bf16.msra.mxu0 %v6476_v24  ;;  %3004 = vmatpush1.bf16.msra.mxu1 %v6477_v25  ;;  %v6487_v24 = vld [vmem:[#allocation50_spill] sm:$0xff]  ;;  %v6488_v25 = vld [vmem:[#allocation51_spill] sm:$0xff] }
 0x8d6   :  { %2964 = vmatprep.subr.bf16.mxu0 %v6478_v47  ;;  %3005 = vmatprep.subr.bf16.mxu1 %v6479_v5  ;;  %v6489_v47 = vld [vmem:[#allocation52_spill] sm:$0xff]  ;;  %v6490_v5 = vld [vmem:[#allocation53_spill] sm:$0xff] }
 0x8d9   :  { %2965 = vmatpush1.bf16.msra.mxu0 %v6480_v11  ;;  %3006 = vmatpush1.bf16.msra.mxu1 %v6481_v21  ;;  %v6491_v11 = vld [vmem:[#allocation55_spill] sm:$0xff]  ;;  %v6492_v21 = vld [vmem:[#allocation54_spill] sm:$0xff] }
 0x8da   :  { %2966 = vmatprep.subr.bf16.mxu0 %v6482_v40  ;;  %3007 = vmatprep.subr.bf16.mxu1 %v6483_v2  ;;  %v6493_v40 = vld [vmem:[#allocation56_spill] sm:$0xff]  ;;  %v6494_v2 = vld [vmem:[#allocation57_spill] sm:$0xff] }
 0x8dd   :  { %2967 = vmatpush1.bf16.msra.mxu0 %v6484_v55  ;;  %3008 = vmatpush1.bf16.msra.mxu1 %v6485_v4  ;;  %v6495_v55 = vld [vmem:[#allocation58_spill] sm:$0xff]  ;;  %v6496_v4 = vld [vmem:[#allocation59_spill] sm:$0xff] }
 0x8de   :  { %2968 = vmatprep.subr.bf16.mxu0 %v6486_v46  ;;  %3009 = vmatprep.subr.bf16.mxu1 %v6487_v24  ;;  %v6497_v46 = vld [vmem:[#allocation60_spill] sm:$0xff]  ;;  %v6498_v24 = vld [vmem:[#allocation61_spill] sm:$0xff] }
 0x8e1   :  { %2969 = vmatpush1.bf16.msra.mxu0 %v6488_v25  ;;  %3010 = vmatpush1.bf16.msra.mxu1 %v6489_v47  ;;  %v6499_v25 = vld [vmem:[#allocation62_spill] sm:$0xff]  ;;  %v6500_v47 = vld [vmem:[#allocation63_spill] sm:$0xff] }
 0x8e2   :  { %2970 = vmatprep.subr.bf16.mxu0 %v6490_v5  ;;  %3011 = vmatprep.subr.bf16.mxu1 %v6491_v11  ;;  %v6501_v5 = vld [vmem:[#allocation64_spill] sm:$0xff]  ;;  %v6502_v11 = vld [vmem:[#allocation65_spill] sm:$0xff] }
 0x8e5   :  { %2971 = vmatpush1.bf16.msra.mxu0 %v6492_v21  ;;  %3012 = vmatpush1.bf16.msra.mxu1 %v6493_v40  ;;  %v6503_v21 = vld [vmem:[#allocation66_spill] sm:$0xff]  ;;  %v6504_v40 = vld [vmem:[#allocation67_spill] sm:$0xff] }
 0x8e6   :  { %2972 = vmatprep.subr.bf16.mxu0 %v6494_v2  ;;  %3013 = vmatprep.subr.bf16.mxu1 %v6495_v55  ;;  %v6505_v2 = vld [vmem:[#allocation68_spill] sm:$0xff]  ;;  %v6506_v55 = vld [vmem:[#allocation69_spill] sm:$0xff] }
 0x8e9   :  { %2973 = vmatpush1.bf16.msra.mxu0 %v6496_v4  ;;  %3014 = vmatpush1.bf16.msra.mxu1 %v6497_v46  ;;  %v6507_v4 = vld [vmem:[#allocation70_spill] sm:$0xff] }
 0x8ea   :  { %2974 = vmatprep.subr.bf16.mxu0 %v6498_v24  ;;  %3015 = vmatprep.subr.bf16.mxu1 %v6499_v25 }
 0x8ed   :  { %2975 = vmatpush1.bf16.msra.mxu0 %v6500_v47  ;;  %3016 = vmatpush1.bf16.msra.mxu1 %v6501_v5 }
 0x8ee   :  { %2976 = vmatprep.subr.bf16.mxu0 %v6502_v11  ;;  %3017 = vmatprep.subr.bf16.mxu1 %v6503_v21 }
 0x8f1   :  { %2977 = vmatpush1.bf16.msra.mxu0 %v6504_v40  ;;  %3018 = vmatpush1.bf16.msra.mxu1 %v6505_v2 }
 0x8f2   :  { %3028 = vmatprep.subr.bf16.mxu0 %v6506_v55  ;;  %3069 = vmatprep.subr.bf16.mxu1 %v6507_v4 }
 0x947   :  { %v2722_v46 = vpop.f32.mrb[44].mxu0  ;;  %v2763_v24 = vpop.f32.mrb[56].mxu1 }
 0x948   :  { %v2862_v50 = vrot.slane %v2763_v24, 4  ;;  %v2724_v25 = vpop.f32.mrb[45].mxu0  ;;  %v2765_v31 = vpop.f32.mrb[57].mxu1 }
 0x949   :  { %v2863_v47 = vrot.slane %v2765_v31, 4  ;;  %v2726_v48 = vpop.f32.mrb[46].mxu0  ;;  %v2767_v5 = vpop.f32.mrb[58].mxu1  ;;  %v2924_v31 = vrot.slane %v5221_v60, 6 }
 0x94a   :  { %v2878_v11 = vadd.f32 %v2862_v50, %v6508_v39  ;;  %v2727_v6 = vpop.f32.mrb[47].mxu0  ;;  %v2768_v21 = vpop.f32.mrb[59].mxu1  ;;  %v2925_v5 = vrot.slane %v5223_v20, 6  ;;  %v2860_v39 = vrot.slane %v2722_v46, 4 }
 0x94b   :  { %v2879_v40 = vadd.f32 %v2863_v47, %v6509_v53  ;;  %v2861_v47 = vrot.slane %v2724_v25, 4 }
 0x94c   :  { %v3552_v16 = vmul.f32 -1.442695, %v2878_v11  ;;  %v6510_v11 = vld [vmem:[#allocation73_spill] sm:$0xff] }
 0x94d   :  { %v3553_v2 = vmul.f32 -1.442695, %v2879_v40  ;;  %v2876_v40 = vadd.f32 %v2860_v39, %v6510_v11 }
 0x94e   :  { %3861 = vpow2.f32 %v3552_v16  ;;  %v6511_v16 = vld [vmem:[#allocation74_spill] sm:$0xff] }
 0x94f   :  { %3863 = vpow2.f32 %v3553_v2  ;;  %v2877_v2 = vadd.f32 %v2861_v47, %v6511_v16  ;;  %v3550_v53 = vmul.f32 -1.442695, %v2876_v40 }
 0x958   :  { %v3862_v55 = vpop.eup %3861 }
 0x959   :  { %v2904_v4 = vadd.f32 1.0, %v3862_v55  ;;  %v3864_v32 = vpop.eup %3863  ;;  %v3551_v55 = vmul.f32 -1.442695, %v2877_v2 }
 0x95a   :  { %v2905_v24 = vadd.f32 1.0, %v3864_v32 }
 0x95b   :  { %3865 = vrcp.f32 %v2904_v4 }
 0x95c   :  { %3867 = vrcp.f32 %v2905_v24 }
 0x95d   :  { %3869 = vpow2.f32 %v3550_v53 }
 0x95e   :  { %3871 = vpow2.f32 %v3551_v55  ;;  %v6512_v55 = vld [vmem:[#allocation82_spill] sm:$0xff] }
 0x965   :  { %v3866_v48 = vpop.eup %3865 }
 0x966   :  { %v2928_v50 = vmul.f32 %v3866_v48, %v2924_v31  ;;  %v3868_v6 = vpop.eup %3867 }
 0x967   :  { %v2929_v21 = vmul.f32 %v3868_v6, %v2925_v5  ;;  %v3870_v32 = vpop.eup %3869 }
 0x968   :  { %v3872_v4 = vpop.eup %3871  ;;  %v2902_v24 = vadd.f32 1.0, %v3870_v32 }
 0x969   :  { %v2903_v60 = vadd.f32 1.0, %v3872_v4 }
 0x96a   :  { %3873 = vrcp.f32 %v2902_v24 }
 0x96b   :  { %3875 = vrcp.f32 %v2903_v60 }
 0x987   :  { %v2804_v23 = vpop.f32.mrb[48].mxu0  ;;  %v2845_v57 = vpop.f32.mrb[60].mxu1 }
 0x988   :  { %v2864_v20 = vrot.slane %v2804_v23, 4  ;;  %v2866_v31 = vrot.slane %v2845_v57, 4  ;;  %v2806_v48 = vpop.f32.mrb[49].mxu0  ;;  %v2847_v5 = vpop.f32.mrb[61].mxu1 }
 0x989   :  { %v2865_v46 = vrot.slane %v2806_v48, 4  ;;  %v2867_v25 = vrot.slane %v2847_v5, 4  ;;  %v2808_v6 = vpop.f32.mrb[50].mxu0  ;;  %v2849_v39 = vpop.f32.mrb[62].mxu1 }
 0x98a   :  { %v2880_v47 = vadd.f32 %v2864_v20, %v6417_v54  ;;  %v2882_v53 = vadd.f32 %v2866_v31, %v6418_v62  ;;  %v2809_v40 = vpop.f32.mrb[51].mxu0  ;;  %v2850_v2 = vpop.f32.mrb[63].mxu1 }
 0x98b   :  { %v2881_v32 = vadd.f32 %v2865_v46, %v6512_v55  ;;  %v2883_v4 = vadd.f32 %v2867_v25, %v6325_v13  ;;  %v3874_v48 = vpop.eup %3873 }
 0x98c   :  { %v3554_v23 = vmul.f32 -1.442695, %v2880_v47  ;;  %3877 = vtanh.f32 %v2882_v53  ;;  %v3876_v5 = vpop.eup %3875 }
 0x98d   :  { %v3555_v57 = vmul.f32 -1.442695, %v2881_v32  ;;  %3879 = vtanh.f32 %v2883_v4 }
 0x98e   :  { %3881 = vpow2.f32 %v3554_v23 }
 0x98f   :  { %3883 = vpow2.f32 %v3555_v57 }
 0x996   :  { %v3878_v24 = vpop.eup %3877 }
 0x997   :  { %v3880_v6 = vpop.eup %3879  ;;  %v2930_v20 = vmul.f32 %v3878_v24, %v3874_v48  ;;  %v3200_v24 = vld [vmem:[%s5574_s5 + $0x20] sm:$0xff] }
 0x998   :  { %v3882_v39 = vpop.eup %3881  ;;  %v2931_v31 = vmul.f32 %v3880_v6, %v3876_v5  ;;  %v3201_v6 = vld [vmem:[%s5574_s5 + $0x28] sm:$0xff] }
 0x999   :  { %v3884_v40 = vpop.eup %3883  ;;  %v2906_v2 = vadd.f32 1.0, %v3882_v39  ;;  %v5371_v60 = vadd.f32 %v2930_v20, %v2928_v50  ;;  %v3640_v20 = vpack.c.bf16 %v3201_v6, %v3200_v24  ;;  %v3218_v39 = vld [vmem:[%s5574_s5 + $0xb0] sm:$0xff] }
 0x99a   :  { %v2907_v46 = vadd.f32 1.0, %v3884_v40  ;;  %v5373_v55 = vadd.f32 %v2931_v31, %v2929_v21  ;;  %v3219_v31 = vld [vmem:[%s5574_s5 + $0xb8] sm:$0xff] }
 0x99b   :  { %3885 = vrcp.f32 %v2906_v2  ;;  %v3642_v40 = vpack.c.bf16 %v3219_v31, %v3218_v39  ;;  %v3202_v2 = vld [vmem:[%s5574_s5 + $0x30] sm:$0xff] }
 0x99c   :  { %3887 = vtanh.f32 %v5371_v60 }
 0x99d   :  { %3889 = vrcp.f32 %v2907_v46  ;;  %v3203_v46 = vld [vmem:[%s5574_s5 + $0x38] sm:$0xff] }
 0x99e   :  { %3891 = vtanh.f32 %v5373_v55 }
 0x9a5   :  { %v3886_v25 = vpop.eup %3885 }
 0x9a6   :  { %v3888_v47 = vpop.eup %3887 }
 0x9a7   :  { %v3890_v53 = vpop.eup %3889  ;;  %v2936_v32 = vmul.f32 %v3888_v47, %v3886_v25  ;;  %v3644_v25 = vpack.c.bf16 %v3203_v46, %v3202_v2  ;;  %v3220_v47 = vld [vmem:[%s5574_s5 + $0xc0] sm:$0xff] }
 0x9a8   :  { %v3892_v4 = vpop.eup %3891 }
 0x9a9   :  { %v2937_v23 = vmul.f32 %v3892_v4, %v3890_v53  ;;  %v2938_v57 = vpack.c.bf16 %v2936_v32, %v2936_v32  ;;  %v3221_v53 = vld [vmem:[%s5574_s5 + $0xc8] sm:$0xff]  ;;  %v3204_v4 = vld [vmem:[%s5574_s5 + $0x40] sm:$0xff] }
 0x9aa   :  { %v3646_v32 = vpack.c.bf16 %v3221_v53, %v3220_v47 }
 0x9ab   :  { %v2939_v48 = vpack.c.bf16 %v2937_v23, %v2937_v23  ;;  %v5377_v50 = vrot.slane %v2938_v57, 2  ;;  %v3205_v23 = vld [vmem:[%s5574_s5 + $0x48] sm:$0xff] }
 0x9ac   :  { %v3648_v57 = vpack.c.bf16 %v3205_v23, %v3204_v4 }
 0x9ad   :  { %v2943_v5 = vrot.slane %v2939_v48, 2  ;;  %v3222_v48 = vld [vmem:[%s5574_s5 + $0xd0] sm:$0xff] }
 0x9af   :  { %2978 = vmatprep.mubr.bf16.mxu0 %v2943_v5  ;;  %3019 = vmatprep.mubr.bf16.mxu1 %v2943_v5 }
 0x9b0   :  { %2979 = vmatmul.mubr.bf16.vlgmr.msra.gmra.mrb[52].mxu0 %v5377_v50  ;;  %3020 = vmatmul.mubr.bf16.vlgmr.msra.gmra.mrb[64].mxu1 %v5377_v50 }
 0x9b1   :  { %3029 = vmatpush1.bf16.msra.mxu0 %v6042_v26  ;;  %3070 = vmatpush1.bf16.msra.mxu1 %v6043_v15  ;;  %v6513_v26 = vld [vmem:[#allocation124_spill] sm:$0xff]  ;;  %v6514_v15 = vld [vmem:[#allocation125_spill] sm:$0xff] }
 0x9b2   :  { %3060 = vmatprep.mubr.bf16.mxu0 %v2943_v5  ;;  %3101 = vmatprep.mubr.bf16.mxu1 %v2943_v5  ;;  %v3223_v5 = vld [vmem:[%s5574_s5 + $0xd8] sm:$0xff] }
 0x9b3   :  { %3030 = vmatprep.subr.bf16.mxu0 %v6044_v7  ;;  %3071 = vmatprep.subr.bf16.mxu1 %v6045_v10  ;;  %v6515_v7 = vld [vmem:[#allocation126_spill] sm:$0xff]  ;;  %v6516_v10 = vld [vmem:[#allocation127_spill] sm:$0xff] }
 0x9b5   :  { %3031 = vmatpush1.bf16.msra.mxu0 %v6046_v8  ;;  %3072 = vmatpush1.bf16.msra.mxu1 %v6047_v30  ;;  %v6517_v8 = vld [vmem:[#allocation128_spill] sm:$0xff]  ;;  %v6518_v30 = vld [vmem:[#allocation129_spill] sm:$0xff] }
 0x9b6   :  { %3032 = vmatprep.subr.bf16.mxu0 %v6048_v38  ;;  %3073 = vmatprep.subr.bf16.mxu1 %v6135_v58  ;;  %v6519_v38 = vld [vmem:[#allocation130_spill] sm:$0xff]  ;;  %v6520_v58 = vld [vmem:[#allocation131_spill] sm:$0xff] }
 0x9b9   :  { %3033 = vmatpush1.bf16.msra.mxu0 %v6136_v45  ;;  %3074 = vmatpush1.bf16.msra.mxu1 %v6137_v27  ;;  %v6521_v45 = vld [vmem:[#allocation132_spill] sm:$0xff]  ;;  %v6522_v27 = vld [vmem:[#allocation133_spill] sm:$0xff] }
 0x9ba   :  { %3034 = vmatprep.subr.bf16.mxu0 %v6138_v61  ;;  %3075 = vmatprep.subr.bf16.mxu1 %v6139_v28  ;;  %v6524_v61 = vld [vmem:[#allocation135_spill] sm:$0xff]  ;;  %v6525_v28 = vld [vmem:[#allocation136_spill] sm:$0xff] }
 0x9bd   :  { %3035 = vmatpush1.bf16.msra.mxu0 %v6140_v33  ;;  %3076 = vmatpush1.bf16.msra.mxu1 %v6141_v36  ;;  %v6526_v33 = vld [vmem:[#allocation137_spill] sm:$0xff]  ;;  %v6527_v36 = vld [vmem:[#allocation138_spill] sm:$0xff] }
 0x9be   :  { %3036 = vmatprep.subr.bf16.mxu0 %v6228_v12  ;;  %3077 = vmatprep.subr.bf16.mxu1 %v6229_v1  ;;  %v3212_v12 = vld [vmem:[%s5574_s5 + $0x80] sm:$0xff]  ;;  %v3213_v1 = vld [vmem:[%s5574_s5 + $0x88] sm:$0xff] }
 0x9c1   :  { %3037 = vmatpush1.bf16.msra.mxu0 %v6230_v3  ;;  %3078 = vmatpush1.bf16.msra.mxu1 %v6231_v59  ;;  %v3630_v3 = vpack.c.bf16 %v3213_v1, %v3212_v12  ;;  %v3196_v59 = vld [vmem:[%s5574_s5] sm:$0xff]  ;;  %v6537_v12 = vld [vmem:[#allocation75_spill] sm:$0xff] }
 0x9c2   :  { %3038 = vmatprep.subr.bf16.mxu0 %v6232_v63  ;;  %3079 = vmatprep.subr.bf16.mxu1 %v6233_v35  ;;  %v3197_v63 = vld [vmem:[%s5574_s5 + $0x8] sm:$0xff] }
 0x9c3   :  { %v3632_v35 = vpack.c.bf16 %v3197_v63, %v3196_v59  ;;  %v6538_v63 = vld [vmem:[#allocation76_spill] sm:$0xff] }
 0x9c5   :  { %3039 = vmatpush1.bf16.msra.mxu0 %v6234_v42  ;;  %3080 = vmatpush1.bf16.msra.mxu1 %v6235_v0  ;;  %v3214_v42 = vld [vmem:[%s5574_s5 + $0x90] sm:$0xff]  ;;  %v3215_v0 = vld [vmem:[%s5574_s5 + $0x98] sm:$0xff] }
 0x9c6   :  { %3040 = vmatprep.subr.bf16.mxu0 %v6236_v56  ;;  %3081 = vmatprep.subr.bf16.mxu1 %v6237_v41  ;;  %v3634_v56 = vpack.c.bf16 %v3215_v0, %v3214_v42  ;;  %v3198_v41 = vld [vmem:[%s5574_s5 + $0x10] sm:$0xff] }
 0x9c9   :  { %3041 = vmatpush1.bf16.msra.mxu0 %v6238_v22  ;;  %3082 = vmatpush1.bf16.msra.mxu1 %v6239_v14  ;;  %v3199_v22 = vld [vmem:[%s5574_s5 + $0x18] sm:$0xff] }
 0x9ca   :  { %3042 = vmatprep.subr.bf16.mxu0 %v6154_v44  ;;  %3083 = vmatprep.subr.bf16.mxu1 %v6155_v49  ;;  %v6529_v44 = vld [vmem:[#allocation140_spill] sm:$0xff]  ;;  %v6530_v49 = vld [vmem:[#allocation141_spill] sm:$0xff]  ;;  %v3636_v14 = vpack.c.bf16 %v3199_v22, %v3198_v41 }
 0x9cd   :  { %3043 = vmatpush1.bf16.msra.mxu0 %v6156_v51  ;;  %3084 = vmatpush1.bf16.msra.mxu1 %v6240_v9  ;;  %v6531_v51 = vld [vmem:[#allocation142_spill] sm:$0xff]  ;;  %v3216_v9 = vld [vmem:[%s5574_s5 + $0xa0] sm:$0xff] }
 0x9ce   :  { %3044 = vmatprep.subr.bf16.mxu0 %v6241_v34  ;;  %3085 = vmatprep.subr.bf16.mxu1 %v6159_v43  ;;  %v6532_v43 = vld [vmem:[#allocation143_spill] sm:$0xff]  ;;  %v3217_v34 = vld [vmem:[%s5574_s5 + $0xa8] sm:$0xff] }
 0x9cf   :  { %v3638_v21 = vpack.c.bf16 %v3217_v34, %v3216_v9  ;;  %v3182_v9 = vrot.slane %v5371_v60, 6 }
 0x9d1   :  { %3045 = vmatpush1.bf16.msra.mxu0 %v6160_v19  ;;  %3086 = vmatpush1.bf16.msra.mxu1 %v6161_v17  ;;  %v6533_v19 = vld [vmem:[#allocation144_spill] sm:$0xff]  ;;  %v6534_v17 = vld [vmem:[#allocation145_spill] sm:$0xff] }
 0x9d2   :  { %3046 = vmatprep.subr.bf16.mxu0 %v6162_v29  ;;  %3087 = vmatprep.subr.bf16.mxu1 %v6163_v52  ;;  %v6535_v29 = vld [vmem:[#allocation146_spill] sm:$0xff]  ;;  %v6536_v52 = vld [vmem:[#allocation147_spill] sm:$0xff] }
 0x9d5   :  { %3047 = vmatpush1.bf16.msra.mxu0 %v6164_v37  ;;  %3088 = vmatpush1.bf16.msra.mxu1 %v6079_v18  ;;  %v6523_v18 = vld [vmem:[#allocation134_spill] sm:$0xff]  ;;  %v6528_v37 = vld [vmem:[#allocation139_spill] sm:$0xff] }
 0x9d6   :  { %3048 = vmatprep.subr.bf16.mxu0 %v6513_v26  ;;  %3089 = vmatprep.subr.bf16.mxu1 %v6514_v15  ;;  %v3650_v26 = vpack.c.bf16 %v3223_v5, %v3222_v48  ;;  %v3207_v15 = vld [vmem:[%s5574_s5 + $0x58] sm:$0xff] }
 0x9d9   :  { %3049 = vmatpush1.bf16.msra.mxu0 %v6515_v7  ;;  %3090 = vmatpush1.bf16.msra.mxu1 %v6516_v10  ;;  %v3224_v7 = vld [vmem:[%s5574_s5 + $0xe0] sm:$0xff]  ;;  %v3225_v10 = vld [vmem:[%s5574_s5 + $0xe8] sm:$0xff] }
 0x9da   :  { %3050 = vmatprep.subr.bf16.mxu0 %v6517_v8  ;;  %3091 = vmatprep.subr.bf16.mxu1 %v6518_v30  ;;  %v3654_v30 = vpack.c.bf16 %v3225_v10, %v3224_v7 }
 0x9dd   :  { %3051 = vmatpush1.bf16.msra.mxu0 %v6519_v38  ;;  %3092 = vmatpush1.bf16.msra.mxu1 %v6520_v58  ;;  %v3208_v38 = vld [vmem:[%s5574_s5 + $0x60] sm:$0xff]  ;;  %v3209_v58 = vld [vmem:[%s5574_s5 + $0x68] sm:$0xff] }
 0x9de   :  { %3052 = vmatprep.subr.bf16.mxu0 %v6521_v45  ;;  %3093 = vmatprep.subr.bf16.mxu1 %v6522_v27  ;;  %v3226_v45 = vld [vmem:[%s5574_s5 + $0xf0] sm:$0xff]  ;;  %v3227_v27 = vld [vmem:[%s5574_s5 + $0xf8] sm:$0xff] }
 0x9e1   :  { %3053 = vmatpush1.bf16.msra.mxu0 %v6523_v18  ;;  %3094 = vmatpush1.bf16.msra.mxu1 %v6524_v61  ;;  %v3656_v18 = vpack.c.bf16 %v3209_v58, %v3208_v38  ;;  %v3658_v61 = vpack.c.bf16 %v3227_v27, %v3226_v45 }
 0x9e2   :  { %3054 = vmatprep.subr.bf16.mxu0 %v6525_v28  ;;  %3095 = vmatprep.subr.bf16.mxu1 %v6526_v33  ;;  %v3210_v28 = vld [vmem:[%s5574_s5 + $0x70] sm:$0xff]  ;;  %v3211_v33 = vld [vmem:[%s5574_s5 + $0x78] sm:$0xff] }
 0x9e5   :  { %3055 = vmatpush1.bf16.msra.mxu0 %v6527_v36  ;;  %3096 = vmatpush1.bf16.msra.mxu1 %v6528_v37  ;;  %v3660_v36 = vpack.c.bf16 %v3211_v33, %v3210_v28  ;;  %v3313_v37 = vld [vmem:[%s5570_s1] sm:$0x3] }
 0x9e6   :  { %3056 = vmatprep.subr.bf16.mxu0 %v6529_v44  ;;  %3097 = vmatprep.subr.bf16.mxu1 %v6530_v49 }
 0x9e7   :  { %3315 = vrot.lane.b32.xlu0 %v3313_v37, %s3956_s19 }
 0x9e9   :  { %3057 = vmatpush1.bf16.msra.mxu0 %v6531_v51  ;;  %3098 = vmatpush1.bf16.msra.mxu1 %v6532_v43 }
 0x9ea   :  { %3058 = vmatprep.subr.bf16.mxu0 %v6533_v19  ;;  %3099 = vmatprep.subr.bf16.mxu1 %v6534_v17 }
 0x9ed   :  { %3059 = vmatpush1.bf16.msra.mxu0 %v6535_v29  ;;  %3100 = vmatpush1.bf16.msra.mxu1 %v6536_v52 }
 0x9ee   :  { %3631 = vmatprep.subr.bf16.mxu0 %v3630_v3 }
 0x9f0   :  { %3061 = vmatmul.mubr.bf16.vlgmr.msra.gmra.mrb[56].mxu0 %v5377_v50  ;;  %3102 = vmatmul.mubr.bf16.vlgmr.msra.gmra.mrb[68].mxu1 %v5377_v50  ;;  %v3206_v50 = vld [vmem:[%s5574_s5 + $0x50] sm:$0xff] }
 0x9f1   :  { %3633 = vmatpush3.bf16.msra.mxu0 %v3632_v35  ;;  %v3652_v8 = vpack.c.bf16 %v3207_v15, %v3206_v50 }
 0x9f2   :  { %3635 = vmatprep.subr.bf16.mxu0 %v3634_v56 }
 0x9f5   :  { %3637 = vmatpush3.bf16.msra.mxu0 %v3636_v14 }
 0x9f6   :  { %3639 = vmatprep.subr.bf16.mxu0 %v3638_v21  ;;  %v3183_v21 = vrot.slane %v5373_v55, 6 }
 0x9f9   :  { %3641 = vmatpush3.bf16.msra.mxu0 %v3640_v20 }
 0x9fa   :  { %3643 = vmatprep.subr.bf16.mxu0 %v3642_v40 }
 0x9fd   :  { %3645 = vmatpush3.bf16.msra.mxu0 %v3644_v25 }
 0x9fe   :  { %3647 = vmatprep.subr.bf16.mxu0 %v3646_v32 }
 0xa01   :  { %3649 = vmatpush3.bf16.msra.mxu0 %v3648_v57 }
 0xa02   :  { %3651 = vmatprep.subr.bf16.mxu0 %v3650_v26 }
 0xa05   :  { %3653 = vmatpush3.bf16.msra.mxu0 %v3652_v8 }
 0xa06   :  { %3655 = vmatprep.subr.bf16.mxu0 %v3654_v30  ;;  %v6539_v30 = vld [vmem:[#allocation82_spill] sm:$0xff] }
 0xa09   :  { %3657 = vmatpush3.bf16.msra.mxu0 %v3656_v18 }
 0xa0a   :  { %3659 = vmatprep.subr.bf16.mxu0 %v3658_v61 }
 0xa0d   :  { %3661 = vmatpush3.bf16.msra.mxu0 %v3660_v36 }
 0xa83   :  { %v2980_v44 = vpop.f32.mrb[52].mxu0  ;;  %v3021_v49 = vpop.f32.mrb[64].mxu1 }
 0xa84   :  { %v3120_v51 = vrot.slane %v3021_v49, 2  ;;  %v2982_v43 = vpop.f32.mrb[53].mxu0  ;;  %v3023_v19 = vpop.f32.mrb[65].mxu1  ;;  %v3118_v39 = vrot.slane %v2980_v44, 2 }
 0xa85   :  { %v3121_v17 = vrot.slane %v3023_v19, 2  ;;  %v2984_v29 = vpop.f32.mrb[54].mxu0  ;;  %v3025_v52 = vpop.f32.mrb[66].mxu1  ;;  %v3119_v31 = vrot.slane %v2982_v43, 2 }
 0xa86   :  { %v3136_v1 = vadd.f32 %v3120_v51, %v6537_v12  ;;  %v2985_v3 = vpop.f32.mrb[55].mxu0  ;;  %v3026_v59 = vpop.f32.mrb[67].mxu1  ;;  %v3134_v40 = vadd.f32 %v3118_v39, %v6510_v11 }
 0xa87   :  { %v3137_v35 = vadd.f32 %v3121_v17, %v6538_v63  ;;  %v3135_v2 = vadd.f32 %v3119_v31, %v6511_v16  ;;  %v3562_v63 = vld [vmem:[%s5574_s5 + $0x100] ss:$0 sm:$0xff] }
 0xa88   :  { %v3558_v42 = vmul.f32 -1.442695, %v3136_v1  ;;  %v3556_v46 = vmul.f32 -1.442695, %v3134_v40 }
 0xa89   :  { %v3559_v0 = vmul.f32 -1.442695, %v3137_v35  ;;  %v3557_v25 = vmul.f32 -1.442695, %v3135_v2 }
 0xa8a   :  { %3893 = vpow2.f32 %v3558_v42 }
 0xa8b   :  { %3895 = vpow2.f32 %v3559_v0 }
 0xa94   :  { %v3894_v56 = vpop.eup %3893 }
 0xa95   :  { %v3162_v41 = vadd.f32 1.0, %v3894_v56  ;;  %v3896_v22 = vpop.eup %3895 }
 0xa96   :  { %v3163_v14 = vadd.f32 1.0, %v3896_v22 }
 0xa97   :  { %3897 = vrcp.f32 %v3162_v41 }
 0xa98   :  { %3899 = vrcp.f32 %v3163_v14  ;;  %v3316_v14 = vpop.permute.xlu0 %3315 }
 0xa99   :  { %3901 = vpow2.f32 %v3556_v46 }
 0xa9a   :  { %3903 = vpow2.f32 %v3557_v25 }
 0xaa1   :  { %v3898_v34 = vpop.eup %3897 }
 0xaa2   :  { %v3186_v24 = vmul.f32 %v3898_v34, %v3182_v9  ;;  %v3900_v6 = vpop.eup %3899 }
 0xaa3   :  { %v3187_v20 = vmul.f32 %v3900_v6, %v3183_v21  ;;  %v3902_v47 = vpop.eup %3901 }
 0xaa4   :  { %v3904_v53 = vpop.eup %3903  ;;  %v3160_v32 = vadd.f32 1.0, %v3902_v47 }
 0xaa5   :  { %v3161_v60 = vadd.f32 1.0, %v3904_v53 }
 0xaa6   :  { %3905 = vrcp.f32 %v3160_v32 }
 0xaa7   :  { %3907 = vrcp.f32 %v3161_v60 }
 0xab0   :  { %v3906_v18 = vpop.eup %3905 }
 0xab1   :  { %v3908_v61 = vpop.eup %3907 }
 0xac3   :  { %v3062_v4 = vpop.f32.mrb[56].mxu0  ;;  %v3103_v23 = vpop.f32.mrb[68].mxu1 }
 0xac4   :  { %v3122_v55 = vrot.slane %v3062_v4, 2  ;;  %v3124_v57 = vrot.slane %v3103_v23, 2  ;;  %v3064_v48 = vpop.f32.mrb[57].mxu0  ;;  %v3105_v5 = vpop.f32.mrb[69].mxu1 }
 0xac5   :  { %v3123_v50 = vrot.slane %v3064_v48, 2  ;;  %v3125_v26 = vrot.slane %v3105_v5, 2  ;;  %v3066_v15 = vpop.f32.mrb[58].mxu0  ;;  %v3107_v11 = vpop.f32.mrb[70].mxu1 }
 0xac6   :  { %v3138_v16 = vadd.f32 %v3122_v55, %v6417_v54  ;;  %v3140_v7 = vadd.f32 %v3124_v57, %v6418_v62  ;;  %v3067_v10 = vpop.f32.mrb[59].mxu0  ;;  %v3108_v8 = vpop.f32.mrb[71].mxu1 }
 0xac7   :  { %v3139_v38 = vadd.f32 %v3123_v50, %v6539_v30  ;;  %v3141_v58 = vadd.f32 %v3125_v26, %v6325_v13 }
 0xac8   :  { %v3560_v45 = vmul.f32 -1.442695, %v3138_v16  ;;  %3909 = vtanh.f32 %v3140_v7 }
 0xac9   :  { %v3561_v27 = vmul.f32 -1.442695, %v3139_v38  ;;  %3911 = vtanh.f32 %v3141_v58 }
 0xaca   :  { %3913 = vpow2.f32 %v3560_v45 }
 0xacb   :  { %3915 = vpow2.f32 %v3561_v27 }
 0xad2   :  { %v3910_v28 = vpop.eup %3909 }
 0xad3   :  { %v3912_v33 = vpop.eup %3911  ;;  %v3188_v54 = vmul.f32 %v3910_v28, %v3906_v18 }
 0xad4   :  { %v3914_v36 = vpop.eup %3913  ;;  %v3189_v62 = vmul.f32 %v3912_v33, %v3908_v61 }
 0xad5   :  { %v3916_v37 = vpop.eup %3915  ;;  %v3164_v44 = vadd.f32 1.0, %v3914_v36  ;;  %v3190_v49 = vadd.f32 %v3188_v54, %v3186_v24 }
 0xad6   :  { %v3165_v51 = vadd.f32 1.0, %v3916_v37  ;;  %v3191_v43 = vadd.f32 %v3189_v62, %v3187_v20 }
 0xad7   :  { %3917 = vrcp.f32 %v3164_v44 }
 0xad8   :  { %3919 = vtanh.f32 %v3190_v49 }
 0xad9   :  { %3921 = vrcp.f32 %v3165_v51 }
 0xada   :  { %3923 = vtanh.f32 %v3191_v43 }
 0xae1   :  { %v3918_v13 = vpop.eup %3917 }
 0xae2   :  { %v3920_v19 = vpop.eup %3919 }
 0xae3   :  { %v3922_v17 = vpop.eup %3921  ;;  %v3194_v29 = vmul.f32 %v3920_v19, %v3918_v13 }
 0xae4   :  { %v3924_v52 = vpop.eup %3923 }
 0xae5   :  { %v3195_v12 = vmul.f32 %v3924_v52, %v3922_v17  ;;  %v3235_v3 = vrot.slane %v3194_v29, 6 }
 0xae7   :  { %v3236_v1 = vrot.slane %v3195_v12, 6 }
 0xae9   :  { %3303 = vmatprep.mubr.f32.mxu0 %v3236_v1 }
 0xaea   :  { %3304 = vmatmul.mubr.f32.vlgmr.msra.gmra.mrb[60].mxu0 %v3235_v3 }
 0xbbd   :  { %v3597_v59 = vpop.f32.mrb[60].mxu0 }
 0xbbe   :  { %v3598_v35 = vpop.f32.mrb[61].mxu0 }
 0xbbf   :  { %v3599_v42 = vadd.f32 %v3598_v35, %v3597_v59 }
 0xbc1   :  { %v3306_v0 = vadd.f32 %v3599_v42, %v3562_v63 }
 0xbc3   :  { %v3309_v56 = vmax.f32 %v3306_v0, -20.0  ;;  %3325 = vst.msk [vmem:[%s5575_s6] sm:$0x3] %vm3324_vm2, %v3306_v0 }
 0xbc5   :  { %v3310_v41 = vmin.f32 %v3309_v56, 2.0 }
 0xbc7   :  { %v3311_v22 = vmul.f32 1.442695, %v3310_v41 }
 0xbc9   :  { %3925 = vpow2.f32 %v3311_v22 }
 0xbd3   :  { %v3926_v9 = vpop.eup %3925 }
 0xbd4   :  { %v3318_v34 = vmul.f32 %v3926_v9, %v3316_v14  ;;  %3327 = vrot.lane.b32.xlu1 %v3926_v9, %s3957_s23 }
 0xbd6   :  { %3320 = vrot.lane.b32.xlu0 %v3318_v34, %s3957_s23 }
 0xc46   :  { %v3328_v21 = vpop.permute.xlu1 %3327 }
 0xc47   :  { %3563 = vst.msk [vmem:[%s5575_s6 + $0x2] sm:$0x3] %vm3324_vm2, %v3328_v21 }
 0xc48   :  { %v3321_v24 = vpop.permute.xlu0 %3320 }
 0xc49   :  { %v3323_v6 = vadd.f32 %v3321_v24, %v3306_v0 }
 0xc4b   :  { %3564 = vst.msk [vmem:[%s5575_s6 + $0x4] sm:$0x3] %vm3324_vm2, %v3323_v6 }
 0xc4c   :  { %3338 = vsyncpa [#allocation3], 1 }

</bundles_post_ra>
